<compile_context>
chip_gen: v5e
topology: v5e:2x2
jax: 0.10.0
libtpu: 0.0.40
codegen_flags: <defaults>
</compile_context>

<pallas_src>
import functools

import jax
import jax.numpy as jnp
from jax.experimental import pallas as pl
from jax.experimental.pallas import tpu as pltpu

EPS = 1e-5
IN_FEATURES = 784
IN_PAD = 896  # next multiple of 128


def _mlp_kernel(x_ref,
                w1_ref, b1_ref, g1_ref, be1_ref,
                w2_ref, b2_ref, g2_ref, be2_ref,
                w3_ref, b3_ref, g3_ref, be3_ref,
                w4_ref, b4_ref, g4_ref, be4_ref,
                o_ref):
    def layer(h_bf16, w_ref, b_ref, g_ref, be_ref):
        # Linear on the MXU: bf16 x bf16 inputs, f32 accumulation.
        z = jnp.dot(h_bf16, w_ref[...], preferred_element_type=jnp.float32)
        z = z + b_ref[...]
        # SiLU: sigmoid lowers to an EUP transcendental (frees VALU slots).
        a = z * jax.nn.sigmoid(z)
        # BatchNorm1d (training semantics), one-pass stats + folded affine.
        inv_n = 1.0 / a.shape[0]
        mu = jnp.sum(a, axis=0, keepdims=True) * inv_n
        var = jnp.sum(a * a, axis=0, keepdims=True) * inv_n - mu * mu
        scale = g_ref[...] * jax.lax.rsqrt(var + EPS)
        shift = be_ref[...] - mu * scale
        return a * scale + shift  # f32

    h = x_ref[...].astype(jnp.bfloat16)
    h = layer(h, w1_ref, b1_ref, g1_ref, be1_ref).astype(jnp.bfloat16)
    h = layer(h, w2_ref, b2_ref, g2_ref, be2_ref).astype(jnp.bfloat16)
    h = layer(h, w3_ref, b3_ref, g3_ref, be3_ref).astype(jnp.bfloat16)
    h = layer(h, w4_ref, b4_ref, g4_ref, be4_ref)  # keep last layer in f32

    # LogSoftmax over dim=1 (features), f32.
    m = jnp.max(h, axis=1, keepdims=True)
    s = h - m
    lse = jnp.log(jnp.sum(jnp.exp(s), axis=1, keepdims=True))
    o_ref[...] = s - lse


def init_params(key):
    """PyTorch-style init U(-1/sqrt(fan_in), 1/sqrt(fan_in)); weights in bf16."""
    dims = [(IN_FEATURES, 256), (256, 512), (512, 512), (512, 512)]
    params = []
    for li, (fan_in, fan_out) in enumerate(dims):
        key, kw, kb = jax.random.split(key, 3)
        bound = 1.0 / jnp.sqrt(float(fan_in))
        w = jax.random.uniform(kw, (fan_in, fan_out), jnp.float32, -bound, bound)
        if li == 0:
            # Zero-pad K from 784 -> 896 so the first matmul is lane-aligned.
            w = jnp.pad(w, ((0, IN_PAD - IN_FEATURES), (0, 0)))
        w = w.astype(jnp.bfloat16)
        b = jax.random.uniform(kb, (1, fan_out), jnp.float32, -bound, bound)
        gamma = jnp.ones((1, fan_out), jnp.float32)
        beta = jnp.zeros((1, fan_out), jnp.float32)
        params.extend([w, b, gamma, beta])
    return params


def _vmem_limit_bytes(batch, params):
    param_bytes = sum(int(p.size) * p.dtype.itemsize for p in params)
    # padded input + a few live f32 activation slabs per layer
    act_bytes = batch * (IN_PAD * 4 + 4 * 512 * 4)
    total = param_bytes + 4 * act_bytes + (8 << 20)  # headroom
    return int(min(total, 60 << 20))  # stay under v7x's 64 MiB physical VMEM


@functools.partial(jax.jit, static_argnames=())
def my_awesome_model(x, params):
    # x: (B, 1, 28, 28) or any (B, ...) flattening to 784 — mirrors x.view(B, -1)
    b = x.shape[0]
    x2d = x.reshape(b, -1).astype(jnp.float32)
    assert x2d.shape[1] == IN_FEATURES
    x2d = jnp.pad(x2d, ((0, 0), (0, IN_PAD - IN_FEATURES)))  # lane-align K

    n_in = 1 + len(params)
    vmem_spec = pl.BlockSpec(memory_space=pltpu.MemorySpace.VMEM)
    out = pl.pallas_call(
        _mlp_kernel,
        out_shape=jax.ShapeDtypeStruct((b, 512), jnp.float32),
        in_specs=[vmem_spec] * n_in,
        out_specs=vmem_spec,
        compiler_params=pltpu.CompilerParams(
            vmem_limit_bytes=_vmem_limit_bytes(b, params)),
    )(x2d, *params)
    return out


def reference(x, params):
    """Pure-JAX mirror of the kernel math (bf16 matmul inputs, f32 accum)."""
    b = x.shape[0]
    h = x.reshape(b, -1).astype(jnp.float32)
    h = jnp.pad(h, ((0, 0), (0, IN_PAD - IN_FEATURES)))
    for i in range(4):
        w, bb, g, be = params[4 * i:4 * i + 4]
        z = jnp.dot(h.astype(jnp.bfloat16), w,
                    preferred_element_type=jnp.float32) + bb
        a = z * jax.nn.sigmoid(z)
        inv_n = 1.0 / a.shape[0]
        mu = jnp.sum(a, axis=0, keepdims=True) * inv_n
        var = jnp.sum(a * a, axis=0, keepdims=True) * inv_n - mu * mu
        scale = g * jax.lax.rsqrt(var + EPS)
        shift = be - mu * scale
        h = a * scale + shift
    return jax.nn.log_softmax(h, axis=1)


if __name__ == "__main__":
    key = jax.random.PRNGKey(0)
    kx, kp = jax.random.split(key)
    x = jax.random.normal(kx, (8, 1, 28, 28), jnp.float32)
    params = init_params(kp)

    out = my_awesome_model(x, params)
    out = jax.block_until_ready(out)

    ref = reference(x, params)
    assert out.shape == (8, 512), out.shape
    err = float(jnp.max(jnp.abs(out - ref)))
    assert jnp.allclose(out, ref, atol=5e-3, rtol=1e-3), err
    # log-softmax rows should (approximately) sum to 1 in prob space
    assert jnp.allclose(jnp.sum(jnp.exp(out), axis=1), 1.0, atol=1e-3)

    print("KERNEL_OK")
</pallas_src>

<mosaic_0001>
module attributes {stable_mosaic.version = 11 : i64} {
  func.func @_mlp_kernel(%arg0: memref<8x896xf32, #tpu.memory_space<vmem>>, %arg1: memref<896x256xbf16, #tpu.memory_space<vmem>>, %arg2: memref<1x256xf32, #tpu.memory_space<vmem>>, %arg3: memref<1x256xf32, #tpu.memory_space<vmem>>, %arg4: memref<1x256xf32, #tpu.memory_space<vmem>>, %arg5: memref<256x512xbf16, #tpu.memory_space<vmem>>, %arg6: memref<1x512xf32, #tpu.memory_space<vmem>>, %arg7: memref<1x512xf32, #tpu.memory_space<vmem>>, %arg8: memref<1x512xf32, #tpu.memory_space<vmem>>, %arg9: memref<512x512xbf16, #tpu.memory_space<vmem>>, %arg10: memref<1x512xf32, #tpu.memory_space<vmem>>, %arg11: memref<1x512xf32, #tpu.memory_space<vmem>>, %arg12: memref<1x512xf32, #tpu.memory_space<vmem>>, %arg13: memref<512x512xbf16, #tpu.memory_space<vmem>>, %arg14: memref<1x512xf32, #tpu.memory_space<vmem>>, %arg15: memref<1x512xf32, #tpu.memory_space<vmem>>, %arg16: memref<1x512xf32, #tpu.memory_space<vmem>>, %arg17: memref<8x512xf32, #tpu.memory_space<vmem>>) attributes {dimension_semantics = [], scalar_prefetch = 0 : i64, scratch_operands = 0 : i64, tpu.core_type = #tpu.core_type<tc>} {
    %c0 = arith.constant 0 : index
    %c0_0 = arith.constant 0 : index
    %0 = vector.load %arg0[%c0, %c0_0] : memref<8x896xf32, #tpu.memory_space<vmem>>, vector<8x896xf32>
    %1 = arith.truncf %0 : vector<8x896xf32> to vector<8x896xbf16>
    %c0_1 = arith.constant 0 : index
    %c0_2 = arith.constant 0 : index
    %2 = vector.load %arg1[%c0_1, %c0_2] : memref<896x256xbf16, #tpu.memory_space<vmem>>, vector<896x256xbf16>
    %cst = arith.constant dense<0.000000e+00> : vector<8x256xf32>
    %3 = tpu.matmul %1, %2, %cst {dimension_numbers = #tpu.dot_dimension_numbers<[1], [0], [0], [1], [0, 0, 1, 1], [], []>} : vector<8x896xbf16>, vector<896x256xbf16>, vector<8x256xf32> -> vector<8x256xf32>
    %c0_3 = arith.constant 0 : index
    %c0_4 = arith.constant 0 : index
    %4 = vector.load %arg2[%c0_3, %c0_4] : memref<1x256xf32, #tpu.memory_space<vmem>>, vector<1x256xf32>
    %5 = vector.broadcast %4 : vector<1x256xf32> to vector<8x256xf32>
    %6 = arith.addf %3, %5 : vector<8x256xf32>
    %7 = arith.negf %6 : vector<8x256xf32>
    %8 = math.exp %7 : vector<8x256xf32>
    %cst_5 = arith.constant 1.000000e+00 : f32
    %9 = vector.broadcast %cst_5 : f32 to vector<8x256xf32>
    %10 = arith.addf %9, %8 : vector<8x256xf32>
    %11 = arith.divf %9, %10 : vector<8x256xf32>
    %12 = arith.mulf %6, %11 : vector<8x256xf32>
    %cst_6 = arith.constant dense<0.000000e+00> : vector<256xf32>
    %13 = vector.multi_reduction <add>, %12, %cst_6 [0] : vector<8x256xf32> to vector<256xf32>
    %14 = vector.shape_cast %13 : vector<256xf32> to vector<1x256xf32>
    %cst_7 = arith.constant 1.250000e-01 : f32
    %15 = vector.broadcast %cst_7 : f32 to vector<1x256xf32>
    %16 = arith.mulf %14, %15 : vector<1x256xf32>
    %17 = arith.mulf %12, %12 : vector<8x256xf32>
    %cst_8 = arith.constant dense<0.000000e+00> : vector<256xf32>
    %18 = vector.multi_reduction <add>, %17, %cst_8 [0] : vector<8x256xf32> to vector<256xf32>
    %19 = vector.shape_cast %18 : vector<256xf32> to vector<1x256xf32>
    %cst_9 = arith.constant 1.250000e-01 : f32
    %20 = vector.broadcast %cst_9 : f32 to vector<1x256xf32>
    %21 = arith.mulf %19, %20 : vector<1x256xf32>
    %22 = arith.mulf %16, %16 : vector<1x256xf32>
    %23 = arith.subf %21, %22 : vector<1x256xf32>
    %c0_10 = arith.constant 0 : index
    %c0_11 = arith.constant 0 : index
    %24 = vector.load %arg3[%c0_10, %c0_11] : memref<1x256xf32, #tpu.memory_space<vmem>>, vector<1x256xf32>
    %cst_12 = arith.constant 9.99999974E-6 : f32
    %25 = vector.broadcast %cst_12 : f32 to vector<1x256xf32>
    %26 = arith.addf %23, %25 : vector<1x256xf32>
    %27 = math.rsqrt %26 : vector<1x256xf32>
    %28 = arith.mulf %24, %27 : vector<1x256xf32>
    %c0_13 = arith.constant 0 : index
    %c0_14 = arith.constant 0 : index
    %29 = vector.load %arg4[%c0_13, %c0_14] : memref<1x256xf32, #tpu.memory_space<vmem>>, vector<1x256xf32>
    %30 = arith.mulf %16, %28 : vector<1x256xf32>
    %31 = arith.subf %29, %30 : vector<1x256xf32>
    %32 = vector.broadcast %28 : vector<1x256xf32> to vector<8x256xf32>
    %33 = arith.mulf %12, %32 : vector<8x256xf32>
    %34 = vector.broadcast %31 : vector<1x256xf32> to vector<8x256xf32>
    %35 = arith.addf %33, %34 : vector<8x256xf32>
    %36 = arith.truncf %35 : vector<8x256xf32> to vector<8x256xbf16>
    %c0_15 = arith.constant 0 : index
    %c0_16 = arith.constant 0 : index
    %37 = vector.load %arg5[%c0_15, %c0_16] : memref<256x512xbf16, #tpu.memory_space<vmem>>, vector<256x512xbf16>
    %cst_17 = arith.constant dense<0.000000e+00> : vector<8x512xf32>
    %38 = tpu.matmul %36, %37, %cst_17 {dimension_numbers = #tpu.dot_dimension_numbers<[1], [0], [0], [1], [0, 0, 1, 1], [], []>} : vector<8x256xbf16>, vector<256x512xbf16>, vector<8x512xf32> -> vector<8x512xf32>
    %c0_18 = arith.constant 0 : index
    %c0_19 = arith.constant 0 : index
    %39 = vector.load %arg6[%c0_18, %c0_19] : memref<1x512xf32, #tpu.memory_space<vmem>>, vector<1x512xf32>
    %40 = vector.broadcast %39 : vector<1x512xf32> to vector<8x512xf32>
    %41 = arith.addf %38, %40 : vector<8x512xf32>
    %42 = arith.negf %41 : vector<8x512xf32>
    %43 = math.exp %42 : vector<8x512xf32>
    %cst_20 = arith.constant 1.000000e+00 : f32
    %44 = vector.broadcast %cst_20 : f32 to vector<8x512xf32>
    %45 = arith.addf %44, %43 : vector<8x512xf32>
    %46 = arith.divf %44, %45 : vector<8x512xf32>
    %47 = arith.mulf %41, %46 : vector<8x512xf32>
    %cst_21 = arith.constant dense<0.000000e+00> : vector<512xf32>
    %48 = vector.multi_reduction <add>, %47, %cst_21 [0] : vector<8x512xf32> to vector<512xf32>
    %49 = vector.shape_cast %48 : vector<512xf32> to vector<1x512xf32>
    %cst_22 = arith.constant 1.250000e-01 : f32
    %50 = vector.broadcast %cst_22 : f32 to vector<1x512xf32>
    %51 = arith.mulf %49, %50 : vector<1x512xf32>
    %52 = arith.mulf %47, %47 : vector<8x512xf32>
    %cst_23 = arith.constant dense<0.000000e+00> : vector<512xf32>
    %53 = vector.multi_reduction <add>, %52, %cst_23 [0] : vector<8x512xf32> to vector<512xf32>
    %54 = vector.shape_cast %53 : vector<512xf32> to vector<1x512xf32>
    %cst_24 = arith.constant 1.250000e-01 : f32
    %55 = vector.broadcast %cst_24 : f32 to vector<1x512xf32>
    %56 = arith.mulf %54, %55 : vector<1x512xf32>
    %57 = arith.mulf %51, %51 : vector<1x512xf32>
    %58 = arith.subf %56, %57 : vector<1x512xf32>
    %c0_25 = arith.constant 0 : index
    %c0_26 = arith.constant 0 : index
    %59 = vector.load %arg7[%c0_25, %c0_26] : memref<1x512xf32, #tpu.memory_space<vmem>>, vector<1x512xf32>
    %cst_27 = arith.constant 9.99999974E-6 : f32
    %60 = vector.broadcast %cst_27 : f32 to vector<1x512xf32>
    %61 = arith.addf %58, %60 : vector<1x512xf32>
    %62 = math.rsqrt %61 : vector<1x512xf32>
    %63 = arith.mulf %59, %62 : vector<1x512xf32>
    %c0_28 = arith.constant 0 : index
    %c0_29 = arith.constant 0 : index
    %64 = vector.load %arg8[%c0_28, %c0_29] : memref<1x512xf32, #tpu.memory_space<vmem>>, vector<1x512xf32>
    %65 = arith.mulf %51, %63 : vector<1x512xf32>
    %66 = arith.subf %64, %65 : vector<1x512xf32>
    %67 = vector.broadcast %63 : vector<1x512xf32> to vector<8x512xf32>
    %68 = arith.mulf %47, %67 : vector<8x512xf32>
    %69 = vector.broadcast %66 : vector<1x512xf32> to vector<8x512xf32>
    %70 = arith.addf %68, %69 : vector<8x512xf32>
    %71 = arith.truncf %70 : vector<8x512xf32> to vector<8x512xbf16>
    %c0_30 = arith.constant 0 : index
    %c0_31 = arith.constant 0 : index
    %72 = vector.load %arg9[%c0_30, %c0_31] : memref<512x512xbf16, #tpu.memory_space<vmem>>, vector<512x512xbf16>
    %cst_32 = arith.constant dense<0.000000e+00> : vector<8x512xf32>
    %73 = tpu.matmul %71, %72, %cst_32 {dimension_numbers = #tpu.dot_dimension_numbers<[1], [0], [0], [1], [0, 0, 1, 1], [], []>} : vector<8x512xbf16>, vector<512x512xbf16>, vector<8x512xf32> -> vector<8x512xf32>
    %c0_33 = arith.constant 0 : index
    %c0_34 = arith.constant 0 : index
    %74 = vector.load %arg10[%c0_33, %c0_34] : memref<1x512xf32, #tpu.memory_space<vmem>>, vector<1x512xf32>
    %75 = vector.broadcast %74 : vector<1x512xf32> to vector<8x512xf32>
    %76 = arith.addf %73, %75 : vector<8x512xf32>
    %77 = arith.negf %76 : vector<8x512xf32>
    %78 = math.exp %77 : vector<8x512xf32>
    %cst_35 = arith.constant 1.000000e+00 : f32
    %79 = vector.broadcast %cst_35 : f32 to vector<8x512xf32>
    %80 = arith.addf %79, %78 : vector<8x512xf32>
    %81 = arith.divf %79, %80 : vector<8x512xf32>
    %82 = arith.mulf %76, %81 : vector<8x512xf32>
    %cst_36 = arith.constant dense<0.000000e+00> : vector<512xf32>
    %83 = vector.multi_reduction <add>, %82, %cst_36 [0] : vector<8x512xf32> to vector<512xf32>
    %84 = vector.shape_cast %83 : vector<512xf32> to vector<1x512xf32>
    %cst_37 = arith.constant 1.250000e-01 : f32
    %85 = vector.broadcast %cst_37 : f32 to vector<1x512xf32>
    %86 = arith.mulf %84, %85 : vector<1x512xf32>
    %87 = arith.mulf %82, %82 : vector<8x512xf32>
    %cst_38 = arith.constant dense<0.000000e+00> : vector<512xf32>
    %88 = vector.multi_reduction <add>, %87, %cst_38 [0] : vector<8x512xf32> to vector<512xf32>
    %89 = vector.shape_cast %88 : vector<512xf32> to vector<1x512xf32>
    %cst_39 = arith.constant 1.250000e-01 : f32
    %90 = vector.broadcast %cst_39 : f32 to vector<1x512xf32>
    %91 = arith.mulf %89, %90 : vector<1x512xf32>
    %92 = arith.mulf %86, %86 : vector<1x512xf32>
    %93 = arith.subf %91, %92 : vector<1x512xf32>
    %c0_40 = arith.constant 0 : index
    %c0_41 = arith.constant 0 : index
    %94 = vector.load %arg11[%c0_40, %c0_41] : memref<1x512xf32, #tpu.memory_space<vmem>>, vector<1x512xf32>
    %cst_42 = arith.constant 9.99999974E-6 : f32
    %95 = vector.broadcast %cst_42 : f32 to vector<1x512xf32>
    %96 = arith.addf %93, %95 : vector<1x512xf32>
    %97 = math.rsqrt %96 : vector<1x512xf32>
    %98 = arith.mulf %94, %97 : vector<1x512xf32>
    %c0_43 = arith.constant 0 : index
    %c0_44 = arith.constant 0 : index
    %99 = vector.load %arg12[%c0_43, %c0_44] : memref<1x512xf32, #tpu.memory_space<vmem>>, vector<1x512xf32>
    %100 = arith.mulf %86, %98 : vector<1x512xf32>
    %101 = arith.subf %99, %100 : vector<1x512xf32>
    %102 = vector.broadcast %98 : vector<1x512xf32> to vector<8x512xf32>
    %103 = arith.mulf %82, %102 : vector<8x512xf32>
    %104 = vector.broadcast %101 : vector<1x512xf32> to vector<8x512xf32>
    %105 = arith.addf %103, %104 : vector<8x512xf32>
    %106 = arith.truncf %105 : vector<8x512xf32> to vector<8x512xbf16>
    %c0_45 = arith.constant 0 : index
    %c0_46 = arith.constant 0 : index
    %107 = vector.load %arg13[%c0_45, %c0_46] : memref<512x512xbf16, #tpu.memory_space<vmem>>, vector<512x512xbf16>
    %cst_47 = arith.constant dense<0.000000e+00> : vector<8x512xf32>
    %108 = tpu.matmul %106, %107, %cst_47 {dimension_numbers = #tpu.dot_dimension_numbers<[1], [0], [0], [1], [0, 0, 1, 1], [], []>} : vector<8x512xbf16>, vector<512x512xbf16>, vector<8x512xf32> -> vector<8x512xf32>
    %c0_48 = arith.constant 0 : index
    %c0_49 = arith.constant 0 : index
    %109 = vector.load %arg14[%c0_48, %c0_49] : memref<1x512xf32, #tpu.memory_space<vmem>>, vector<1x512xf32>
    %110 = vector.broadcast %109 : vector<1x512xf32> to vector<8x512xf32>
    %111 = arith.addf %108, %110 : vector<8x512xf32>
    %112 = arith.negf %111 : vector<8x512xf32>
    %113 = math.exp %112 : vector<8x512xf32>
    %cst_50 = arith.constant 1.000000e+00 : f32
    %114 = vector.broadcast %cst_50 : f32 to vector<8x512xf32>
    %115 = arith.addf %114, %113 : vector<8x512xf32>
    %116 = arith.divf %114, %115 : vector<8x512xf32>
    %117 = arith.mulf %111, %116 : vector<8x512xf32>
    %cst_51 = arith.constant dense<0.000000e+00> : vector<512xf32>
    %118 = vector.multi_reduction <add>, %117, %cst_51 [0] : vector<8x512xf32> to vector<512xf32>
    %119 = vector.shape_cast %118 : vector<512xf32> to vector<1x512xf32>
    %cst_52 = arith.constant 1.250000e-01 : f32
    %120 = vector.broadcast %cst_52 : f32 to vector<1x512xf32>
    %121 = arith.mulf %119, %120 : vector<1x512xf32>
    %122 = arith.mulf %117, %117 : vector<8x512xf32>
    %cst_53 = arith.constant dense<0.000000e+00> : vector<512xf32>
    %123 = vector.multi_reduction <add>, %122, %cst_53 [0] : vector<8x512xf32> to vector<512xf32>
    %124 = vector.shape_cast %123 : vector<512xf32> to vector<1x512xf32>
    %cst_54 = arith.constant 1.250000e-01 : f32
    %125 = vector.broadcast %cst_54 : f32 to vector<1x512xf32>
    %126 = arith.mulf %124, %125 : vector<1x512xf32>
    %127 = arith.mulf %121, %121 : vector<1x512xf32>
    %128 = arith.subf %126, %127 : vector<1x512xf32>
    %c0_55 = arith.constant 0 : index
    %c0_56 = arith.constant 0 : index
    %129 = vector.load %arg15[%c0_55, %c0_56] : memref<1x512xf32, #tpu.memory_space<vmem>>, vector<1x512xf32>
    %cst_57 = arith.constant 9.99999974E-6 : f32
    %130 = vector.broadcast %cst_57 : f32 to vector<1x512xf32>
    %131 = arith.addf %128, %130 : vector<1x512xf32>
    %132 = math.rsqrt %131 : vector<1x512xf32>
    %133 = arith.mulf %129, %132 : vector<1x512xf32>
    %c0_58 = arith.constant 0 : index
    %c0_59 = arith.constant 0 : index
    %134 = vector.load %arg16[%c0_58, %c0_59] : memref<1x512xf32, #tpu.memory_space<vmem>>, vector<1x512xf32>
    %135 = arith.mulf %121, %133 : vector<1x512xf32>
    %136 = arith.subf %134, %135 : vector<1x512xf32>
    %137 = vector.broadcast %133 : vector<1x512xf32> to vector<8x512xf32>
    %138 = arith.mulf %117, %137 : vector<8x512xf32>
    %139 = vector.broadcast %136 : vector<1x512xf32> to vector<8x512xf32>
    %140 = arith.addf %138, %139 : vector<8x512xf32>
    %cst_60 = arith.constant dense<0xFF800000> : vector<8xf32>
    %141 = vector.multi_reduction <maximumf>, %140, %cst_60 [1] : vector<8x512xf32> to vector<8xf32>
    %142 = vector.shape_cast %141 : vector<8xf32> to vector<8x1xf32>
    %143 = vector.broadcast %142 : vector<8x1xf32> to vector<8x512xf32>
    %144 = arith.subf %140, %143 : vector<8x512xf32>
    %145 = math.exp %144 : vector<8x512xf32>
    %cst_61 = arith.constant dense<0.000000e+00> : vector<8xf32>
    %146 = vector.multi_reduction <add>, %145, %cst_61 [1] : vector<8x512xf32> to vector<8xf32>
    %147 = vector.shape_cast %146 : vector<8xf32> to vector<8x1xf32>
    %148 = math.log %147 : vector<8x1xf32>
    %149 = vector.broadcast %148 : vector<8x1xf32> to vector<8x512xf32>
    %150 = arith.subf %144, %149 : vector<8x512xf32>
    %c0_62 = arith.constant 0 : index
    %c0_63 = arith.constant 0 : index
    %151 = vector.load %arg17[%c0_62, %c0_63] : memref<8x512xf32, #tpu.memory_space<vmem>>, vector<8x512xf32>
    tpu.vector_store %arg17[%c0_62, %c0_63], %150 {strides = array<i32>} : memref<8x512xf32, #tpu.memory_space<vmem>>, vector<8x512xf32>,
    return
  }
}

</mosaic_0001>

<bundles_post_ra>
// kernel: my_awesome_model.1
= control target key start
LH: loop header
LB: loop body
LE: loop exit
PB: predicated region body
PF: predicated region fallthrough
CT: control target
= control target key end

     0   :  { %s8457_s0 = inlined_call_operand.vmem [shape: f32[8,896], index: 0, kind: input, shape index: {}]   ;;  %s8458_s1 = inlined_call_operand.vmem [shape: bf16[896,256], index: 1, kind: input, shape index: {}]   ;;  %s8459_s2 = inlined_call_operand.vmem [shape: f32[1,256], index: 2, kind: input, shape index: {}]   ;;  %s8460_s3 = inlined_call_operand.hbm [shape: f32[1,256], index: 3, kind: input, shape index: {}]   ;;  %s8461_s4 = inlined_call_operand.hbm [shape: f32[1,256], index: 4, kind: input, shape index: {}]   ;;  %s8462_s5 = inlined_call_operand.hbm [shape: bf16[256,512], index: 5, kind: input, shape index: {}]   ;;  %s8463_s6 = inlined_call_operand.vmem [shape: f32[1,512], index: 6, kind: input, shape index: {}]   ;;  %s8464_s7 = inlined_call_operand.vmem [shape: f32[1,512], index: 7, kind: input, shape index: {}]   ;;  %s8465_s8 = inlined_call_operand.hbm [shape: f32[1,512], index: 8, kind: input, shape index: {}]   ;;  %s8466_s9 = inlined_call_operand.hbm [shape: bf16[512,512], index: 9, kind: input, shape index: {}]   ;;  %s8467_s10 = inlined_call_operand.vmem [shape: f32[1,512], index: 10, kind: input, shape index: {}]   ;;  %s8468_s11 = inlined_call_operand.vmem [shape: f32[1,512], index: 11, kind: input, shape index: {}]   ;;  %s8469_s12 = inlined_call_operand.hbm [shape: f32[1,512], index: 12, kind: input, shape index: {}]   ;;  %s8470_s13 = inlined_call_operand.hbm [shape: bf16[512,512], index: 13, kind: input, shape index: {}]   ;;  %s8471_s14 = inlined_call_operand.hbm [shape: f32[1,512], index: 14, kind: input, shape index: {}]   ;;  %s8472_s15 = inlined_call_operand.hbm [shape: f32[1,512], index: 15, kind: input, shape index: {}]   ;;  %s8473_s16 = inlined_call_operand.hbm [shape: f32[1,512], index: 16, kind: input, shape index: {}]   ;;  %s8474_s17 = inlined_call_operand.hbm [shape: f32[8,512], index: 17, kind: output, shape index: {}]  }
   0x1   :  { %8477 = sst [smem:[#allocation27_spill]] %s8457_s0 }
   0x2   :  { %8478 = sst [smem:[#allocation28_spill]] %s8458_s1 }
   0x3   :  { %22 = vsyncpa [#allocation3], 0 }
   0x4   :  { %23 = vsyncpa [#allocation6], 0 }
   0x5   :  { %24 = vsyncpa [#allocation9], 0 }
   0x6   :  { %25 = vsyncpa [#allocation12], 0 }
   0x7   :  { %26 = vsyncpa [#allocation15], 0 }
   0x8   :  { %27 = vsyncpa [#allocation18], 0  ;;  %s51_s26 = sshll.u32 %s8461_s4, 4  ;;  %s52_s26 = int_to_ptr.hbm [resolvable:$true] %s51_s26 }
   0x9   :  { %28 = vsyncpa [#allocation4], 0  ;;  %s7039_s27 = smov [#allocation5]   ;;  %s79_s30 = sshll.u32 %s8465_s8, 4  ;;  %s80_s30 = int_to_ptr.hbm [resolvable:$true] %s79_s30 }
   0xa   :  { %s53_s28 = sshll.u32 %s7039_s27, 4  ;;  %s7040_s18 = smov [#allocation8]   ;;  %s54_s28 = int_to_ptr.vmem [resolvable:$true] %s53_s28 }
   0xb   :  { %56 = dma.hbm_to_vmem [thread:$0]  %s52_s26, 32, %s54_s28, [#allocation6]  }
   0xc   :  { %s81_s19 = sshll.u32 %s7040_s18, 4  ;;  %s107_s21 = sshll.u32 %s8469_s12, 4  ;;  %s82_s19 = int_to_ptr.vmem [resolvable:$true] %s81_s19  ;;  %s108_s21 = int_to_ptr.hbm [resolvable:$true] %s107_s21 }
   0xd   :  { %84 = dma.hbm_to_vmem [thread:$0]  %s80_s30, 64, %s82_s19, [#allocation9]  }
   0xe   :  { %s131_s23 = sshll.u32 %s8471_s14, 4  ;;  %s7041_s24 = smov [#allocation11]   ;;  %s132_s23 = int_to_ptr.hbm [resolvable:$true] %s131_s23 }
   0xf   :  { %s109_s25 = sshll.u32 %s7041_s24, 4  ;;  %s7042_s8 = smov [#allocation14]   ;;  %s110_s25 = int_to_ptr.vmem [resolvable:$true] %s109_s25 }
  0x10   :  { %112 = dma.hbm_to_vmem [thread:$0]  %s108_s21, 64, %s110_s25, [#allocation12]  }
  0x11   :  { %s133_s26 = sshll.u32 %s7042_s8, 4  ;;  %s40_s29 = sshll.u32 %s8460_s3, 4  ;;  %s134_s26 = int_to_ptr.vmem [resolvable:$true] %s133_s26  ;;  %s41_s29 = int_to_ptr.hbm [resolvable:$true] %s40_s29 }
  0x12   :  { %136 = dma.hbm_to_vmem [thread:$0]  %s132_s23, 64, %s134_s26, [#allocation15]  }
  0x13   :  { %s61_s30 = sshll.u32 %s8462_s5, 4  ;;  %s7043_s18 = smov [#allocation2]   ;;  %s62_s30 = int_to_ptr.hbm [resolvable:$true] %s61_s30 }
  0x14   :  { %s42_s14 = sshll.u32 %s7043_s18, 4  ;;  %s7044_s19 = smov [#allocation7]   ;;  %s43_s14 = int_to_ptr.vmem [resolvable:$true] %s42_s14 }
  0x15   :  { %45 = dma.hbm_to_vmem [thread:$0]  %s41_s29, 32, %s43_s14, [#allocation3]  }
  0x16   :  { %s63_s1 = sshll.u32 %s7044_s19, 4  ;;  %s7045_s20 = smov 256   ;;  %s64_s1 = int_to_ptr.vmem [resolvable:$true] %s63_s1 }
  0x17   :  { %s7046_s21 = smov 16   ;;  %s89_s22 = sshll.u32 %s8466_s9, 4  ;;  %s90_s22 = int_to_ptr.hbm [resolvable:$true] %s89_s22 }
  0x18   :  { %69 = dma.hbm_to_vmem [thread:$0]  %s62_s30, 8192, %s64_s1, [#allocation6], %s7045_s20, %s7045_s20, %s7046_s21  }
  0x19   :  { %s7047_s23 = smov [#allocation10]   ;;  %s117_s8 = sshll.u32 %s8470_s13, 4  ;;  %s118_s8 = int_to_ptr.hbm [resolvable:$true] %s117_s8 }
  0x1a   :  { %s91_s24 = sshll.u32 %s7047_s23, 4  ;;  %s7048_s26 = smov [#allocation13]   ;;  %s92_s24 = int_to_ptr.vmem [resolvable:$true] %s91_s24 }
  0x1b   :  { %97 = dma.hbm_to_vmem [thread:$0]  %s90_s22, 16384, %s92_s24, [#allocation9], %s7045_s20, %s7045_s20, %s7046_s21  }
  0x1c   :  { %s119_s27 = sshll.u32 %s7048_s26, 4  ;;  %s142_s12 = sshll.u32 %s8472_s15, 4  ;;  %s120_s27 = int_to_ptr.vmem [resolvable:$true] %s119_s27  ;;  %s143_s12 = int_to_ptr.hbm [resolvable:$true] %s142_s12 }
  0x1d   :  { %125 = dma.hbm_to_vmem [thread:$0]  %s118_s8, 16384, %s120_s27, [#allocation12], %s7045_s20, %s7045_s20, %s7046_s21  }
  0x1e   :  { %s153_s30 = sshll.u32 %s8473_s16, 4  ;;  %s7049_s18 = smov [#allocation16]   ;;  %s154_s30 = int_to_ptr.hbm [resolvable:$true] %s153_s30 }
  0x1f   :  { %s144_s14 = sshll.u32 %s7049_s18, 4  ;;  %s7050_s13 = smov [#allocation17]   ;;  %s145_s14 = int_to_ptr.vmem [resolvable:$true] %s144_s14 }
  0x20   :  { %147 = dma.hbm_to_vmem [thread:$0]  %s143_s12, 64, %s145_s14, [#allocation15]  }
  0x21   :  { %s155_s19 = sshll.u32 %s7050_s13, 4  ;;  %s156_s19 = int_to_ptr.vmem [resolvable:$true] %s155_s19 }
  0x22   :  { %158 = dma.hbm_to_vmem [thread:$0]  %s154_s30, 64, %s156_s19, [#allocation18]  }
  0x23   :  { %7025 = dma.done.wait [#allocation3], 32  }
  0x24   :  { %7026 = vsyncadd [#allocation3], 4294967264 }
  0x25   :  { %7027 = dma.done.wait [#allocation6], 8224  }
  0x26   :  { %7028 = vsyncadd [#allocation6], 4294959072 }
  0x27   :  { %7029 = dma.done.wait [#allocation9], 16448  }
  0x28   :  { %7030 = vsyncadd [#allocation9], 4294950848 }
  0x29   :  { %7031 = dma.done.wait [#allocation12], 16448  }
  0x2a   :  { %7032 = vsyncadd [#allocation12], 4294950848 }
  0x2b   :  { %7033 = dma.done.wait [#allocation15], 128  }
  0x2c   :  { %7034 = vsyncadd [#allocation15], 4294967168 }
  0x2d   :  { %7035 = dma.done.wait [#allocation18], 64  }
  0x2e   :  { %7036 = vsyncadd [#allocation18], 4294967232  ;;  %s8479_s1 = sld [smem:[#allocation28_spill]]  ;;  %vm1173_vm11 = vcmask 1040384   ;;  %s4465_s18 = sshll.u32 %s8474_s17, 4  ;;  %s4466_s18 = int_to_ptr.hbm [resolvable:$true] %s4465_s18 }
  0x2f   :  { %s8480_s20 = sld [smem:[#allocation27_spill]] }
  0x34   :  { %v4538_v0 = vld [vmem:[%s8479_s1 + $0x70] sm:$0xf]  ;;  %v6237_v1 = vld [vmem:[%s8479_s1 + $0x74] sm:$0xf0]  ;;  %v4530_v9 = vld [vmem:[%s8479_s1 + $0x60] sm:$0xf] }
  0x35   :  { %v4602_v2 = vld [vmem:[%s8479_s1 + $0xf0] sm:$0xf]  ;;  %v4539_v3 = vor.u32 %v6237_v1, %v4538_v0  ;;  %v6253_v4 = vld [vmem:[%s8479_s1 + $0xf4] sm:$0xf0]  ;;  %v6235_v10 = vld [vmem:[%s8479_s1 + $0x64] sm:$0xf0] }
  0x36   :  { %v4666_v5 = vld [vmem:[%s8479_s1 + $0x170] sm:$0xf]  ;;  %v6269_v6 = vld [vmem:[%s8479_s1 + $0x174] sm:$0xf0]  ;;  %v4603_v7 = vor.u32 %v6253_v4, %v4602_v2  ;;  %v4594_v11 = vld [vmem:[%s8479_s1 + $0xe0] sm:$0xf]  ;;  %v4531_v12 = vor.u32 %v6235_v10, %v4530_v9 }
  0x37   :  { %v4667_v8 = vor.u32 %v6269_v6, %v4666_v5  ;;  %891 = vmatpush.bf16.msra.mxu0 %v4539_v3  ;;  %v6251_v13 = vld [vmem:[%s8479_s1 + $0xe4] sm:$0xf0]  ;;  %v4658_v14 = vld [vmem:[%s8479_s1 + $0x160] sm:$0xf]  ;;  %v4522_v18 = vld [vmem:[%s8479_s1 + $0x50] sm:$0xf] }
  0x38   :  { %v6267_v15 = vld [vmem:[%s8479_s1 + $0x164] sm:$0xf0]  ;;  %904 = vmatpush.bf16.msra.mxu1 %v4603_v7  ;;  %v4595_v16 = vor.u32 %v6251_v13, %v4594_v11  ;;  %v6233_v19 = vld [vmem:[%s8479_s1 + $0x54] sm:$0xf0]  ;;  %v4586_v20 = vld [vmem:[%s8479_s1 + $0xd0] sm:$0xf] }
  0x39   :  { %917 = vmatpush.bf16.msra.mxu2 %v4667_v8  ;;  %v4659_v17 = vor.u32 %v6267_v15, %v4658_v14  ;;  %v6249_v21 = vld [vmem:[%s8479_s1 + $0xd4] sm:$0xf0]  ;;  %v4650_v22 = vld [vmem:[%s8479_s1 + $0x150] sm:$0xf]  ;;  %v4523_v24 = vor.u32 %v6233_v19, %v4522_v18  ;;  %v4514_v25 = vld [vmem:[%s8479_s1 + $0x40] sm:$0xf] }
  0x3a   :  { %v6265_v23 = vld [vmem:[%s8479_s1 + $0x154] sm:$0xf0]  ;;  %v6231_v26 = vld [vmem:[%s8479_s1 + $0x44] sm:$0xf0]  ;;  %v4587_v27 = vor.u32 %v6249_v21, %v4586_v20  ;;  %v4578_v29 = vld [vmem:[%s8479_s1 + $0xc0] sm:$0xf] }
  0x3b   :  { %892 = vmatpush.bf16.msra.mxu0 %v4531_v12  ;;  %v4651_v28 = vor.u32 %v6265_v23, %v4650_v22  ;;  %v4730_v30 = vld [vmem:[%s8479_s1 + $0x1f0] sm:$0xf]  ;;  %v6285_v31 = vld [vmem:[%s8479_s1 + $0x1f4] sm:$0xf0]  ;;  %v6247_v32 = vld [vmem:[%s8479_s1 + $0xc4] sm:$0xf0]  ;;  %v4515_v37 = vor.u32 %v6231_v26, %v4514_v25 }
  0x3c   :  { %905 = vmatpush.bf16.msra.mxu1 %v4595_v16  ;;  %v4642_v33 = vld [vmem:[%s8479_s1 + $0x140] sm:$0xf]  ;;  %v6263_v34 = vld [vmem:[%s8479_s1 + $0x144] sm:$0xf0]  ;;  %v4731_v35 = vor.u32 %v6285_v31, %v4730_v30  ;;  %v4506_v38 = vld [vmem:[%s8479_s1 + $0x30] sm:$0xf]  ;;  %v4579_v41 = vor.u32 %v6247_v32, %v4578_v29 }
  0x3d   :  { %918 = vmatpush.bf16.msra.mxu2 %v4659_v17  ;;  %v4722_v36 = vld [vmem:[%s8479_s1 + $0x1e0] sm:$0xf]  ;;  %v6229_v39 = vld [vmem:[%s8479_s1 + $0x34] sm:$0xf0]  ;;  %v6283_v40 = vld [vmem:[%s8479_s1 + $0x1e4] sm:$0xf0]  ;;  %v4643_v42 = vor.u32 %v6263_v34, %v4642_v33 }
  0x3e   :  { %930 = vmatpush.bf16.msra.mxu3 %v4731_v35  ;;  %v4570_v43 = vld [vmem:[%s8479_s1 + $0xb0] sm:$0xf]  ;;  %v6245_v44 = vld [vmem:[%s8479_s1 + $0xb4] sm:$0xf0]  ;;  %v4723_v46 = vor.u32 %v6283_v40, %v4722_v36  ;;  %v4507_v50 = vor.u32 %v6229_v39, %v4506_v38  ;;  %v4498_v51 = vld [vmem:[%s8479_s1 + $0x20] sm:$0xf] }
  0x3f   :  { %893 = vmatpush.bf16.msra.mxu0 %v4523_v24  ;;  %v4634_v45 = vld [vmem:[%s8479_s1 + $0x130] sm:$0xf]  ;;  %v6261_v47 = vld [vmem:[%s8479_s1 + $0x134] sm:$0xf0]  ;;  %v6227_v52 = vld [vmem:[%s8479_s1 + $0x24] sm:$0xf0]  ;;  %v4571_v54 = vor.u32 %v6245_v44, %v4570_v43 }
  0x40   :  { %906 = vmatpush.bf16.msra.mxu1 %v4587_v27  ;;  %v4714_v48 = vld [vmem:[%s8479_s1 + $0x1d0] sm:$0xf]  ;;  %v6281_v49 = vld [vmem:[%s8479_s1 + $0x1d4] sm:$0xf0]  ;;  %v4635_v55 = vor.u32 %v6261_v47, %v4634_v45  ;;  %v4562_v56 = vld [vmem:[%s8479_s1 + $0xa0] sm:$0xf]  ;;  %v4499_v62 = vor.u32 %v6227_v52, %v4498_v51 }
  0x41   :  { %919 = vmatpush.bf16.msra.mxu2 %v4651_v28  ;;  %v4715_v53 = vor.u32 %v6281_v49, %v4714_v48  ;;  %v4706_v57 = vld [vmem:[%s8479_s1 + $0x1c0] sm:$0xf]  ;;  %v6279_v58 = vld [vmem:[%s8479_s1 + $0x1c4] sm:$0xf0]  ;;  %v4490_v63 = vld [vmem:[%s8479_s1 + $0x10] sm:$0xf] }
  0x42   :  { %931 = vmatpush.bf16.msra.mxu3 %v4723_v46  ;;  %v6243_v59 = vld [vmem:[%s8479_s1 + $0xa4] sm:$0xf0]  ;;  %v4626_v60 = vld [vmem:[%s8479_s1 + $0x120] sm:$0xf]  ;;  %v6225_v0 = vld [vmem:[%s8479_s1 + $0x14] sm:$0xf0]  ;;  %v4707_v1 = vor.u32 %v6279_v58, %v4706_v57 }
  0x43   :  { %894 = vmatpush.bf16.msra.mxu0 %v4515_v37  ;;  %v6259_v61 = vld [vmem:[%s8479_s1 + $0x124] sm:$0xf0]  ;;  %v4563_v2 = vor.u32 %v6243_v59, %v4562_v56  ;;  %v4554_v4 = vld [vmem:[%s8479_s1 + $0x90] sm:$0xf]  ;;  %v6277_v6 = vld [vmem:[%s8479_s1 + $0x1b4] sm:$0xf0]  ;;  %v4491_v10 = vor.u32 %v6225_v0, %v4490_v63 }
  0x44   :  { %907 = vmatpush.bf16.msra.mxu1 %v4579_v41  ;;  %v4627_v3 = vor.u32 %v6259_v61, %v4626_v60  ;;  %v4698_v5 = vld [vmem:[%s8479_s1 + $0x1b0] sm:$0xf]  ;;  %v6241_v7 = vld [vmem:[%s8479_s1 + $0x94] sm:$0xf0]  ;;  %v4482_v11 = vld [vmem:[%s8479_s1] sm:$0xf] }
  0x45   :  { %920 = vmatpush.bf16.msra.mxu2 %v4643_v42  ;;  %v4618_v8 = vld [vmem:[%s8479_s1 + $0x110] sm:$0xf]  ;;  %v6257_v9 = vld [vmem:[%s8479_s1 + $0x114] sm:$0xf0]  ;;  %v6223_v12 = vld [vmem:[%s8479_s1 + $0x4] sm:$0xf0]  ;;  %v4699_v14 = vor.u32 %v6277_v6, %v4698_v5  ;;  %v4555_v15 = vor.u32 %v6241_v7, %v4554_v4 }
  0x46   :  { %932 = vmatpush.bf16.msra.mxu3 %v4715_v53  ;;  %v4546_v13 = vld [vmem:[%s8479_s1 + $0x80] sm:$0xf]  ;;  %v4619_v16 = vor.u32 %v6257_v9, %v4618_v8  ;;  %v6239_v17 = vld [vmem:[%s8479_s1 + $0x84] sm:$0xf0]  ;;  %v4794_v22 = vld [vmem:[%s8479_s1 + $0x270] sm:$0xf]  ;;  %v4483_v26 = vor.u32 %v6223_v12, %v4482_v11 }
  0x47   :  { %895 = vmatpush.bf16.msra.mxu0 %v4507_v50  ;;  %v4690_v18 = vld [vmem:[%s8479_s1 + $0x1a0] sm:$0xf]  ;;  %v6275_v19 = vld [vmem:[%s8479_s1 + $0x1a4] sm:$0xf0]  ;;  %v6301_v23 = vld [vmem:[%s8479_s1 + $0x274] sm:$0xf0]  ;;  %v4547_v30 = vor.u32 %v6239_v17, %v4546_v13 }
  0x48   :  { %908 = vmatpush.bf16.msra.mxu1 %v4571_v54  ;;  %v4610_v20 = vld [vmem:[%s8479_s1 + $0x100] sm:$0xf]  ;;  %v6255_v21 = vld [vmem:[%s8479_s1 + $0x104] sm:$0xf0]  ;;  %v4858_v24 = vld [vmem:[%s8479_s1 + $0x2f0] sm:$0xf]  ;;  %v4691_v29 = vor.u32 %v6275_v19, %v4690_v18  ;;  %v4795_v34 = vor.u32 %v6301_v23, %v4794_v22 }
  0x49   :  { %921 = vmatpush.bf16.msra.mxu2 %v4635_v55  ;;  %v6317_v25 = vld [vmem:[%s8479_s1 + $0x2f4] sm:$0xf0]  ;;  %v4922_v27 = vld [vmem:[%s8479_s1 + $0x370] sm:$0xf]  ;;  %v4611_v31 = vor.u32 %v6255_v21, %v4610_v20  ;;  %v4786_v36 = vld [vmem:[%s8479_s1 + $0x260] sm:$0xf] }
  0x4a   :  { %933 = vmatpush.bf16.msra.mxu3 %v4707_v1  ;;  %v6333_v28 = vld [vmem:[%s8479_s1 + $0x374] sm:$0xf0]  ;;  %v4682_v32 = vld [vmem:[%s8479_s1 + $0x190] sm:$0xf]  ;;  %v4859_v35 = vor.u32 %v6317_v25, %v4858_v24  ;;  %v6299_v37 = vld [vmem:[%s8479_s1 + $0x264] sm:$0xf0] }
  0x4b   :  { %896 = vmatpush.bf16.msra.mxu0 %v4499_v62  ;;  %v6273_v33 = vld [vmem:[%s8479_s1 + $0x194] sm:$0xf0]  ;;  %v4923_v38 = vor.u32 %v6333_v28, %v4922_v27  ;;  %v4850_v39 = vld [vmem:[%s8479_s1 + $0x2e0] sm:$0xf]  ;;  %v6315_v40 = vld [vmem:[%s8479_s1 + $0x2e4] sm:$0xf0]  ;;  %v4787_v50 = vor.u32 %v6299_v37, %v4786_v36 }
  0x4c   :  { %909 = vmatpush.bf16.msra.mxu1 %v4563_v2  ;;  %v201_v41 = vld [vmem:[%s8480_s20 + $0x10] sm:$0xff]  ;;  %v4914_v42 = vld [vmem:[%s8479_s1 + $0x360] sm:$0xf]  ;;  %v6331_v43 = vld [vmem:[%s8479_s1 + $0x364] sm:$0xf0]  ;;  %v4683_v44 = vor.u32 %v6273_v33, %v4682_v32  ;;  %v4851_v51 = vor.u32 %v6315_v40, %v4850_v39 }
  0x4d   :  { %922 = vmatpush.bf16.msra.mxu2 %v4627_v3  ;;  %v7397_v45 = vpack.c.bf16 %v201_v41, %v201_v41  ;;  %v4778_v46 = vld [vmem:[%s8479_s1 + $0x250] sm:$0xf]  ;;  %v4674_v47 = vld [vmem:[%s8479_s1 + $0x180] sm:$0xf]  ;;  %v6271_v48 = vld [vmem:[%s8479_s1 + $0x184] sm:$0xf0]  ;;  %v4915_v56 = vor.u32 %v6331_v43, %v4914_v42 }
  0x4e   :  { %934 = vmatpush.bf16.msra.mxu3 %v4699_v14  ;;  %v199_v49 = vld [vmem:[%s8480_s20] sm:$0xff]  ;;  %v6236_v52 = vld [vmem:[%s8479_s1 + $0x74] sm:$0xf]  ;;  %v4540_v53 = vld [vmem:[%s8479_s1 + $0x78] sm:$0xf0]  ;;  %v4675_v63 = vor.u32 %v6271_v48, %v4674_v47 }
  0x4f   :  { %897 = vmatpush.bf16.msra.mxu0 %v4491_v10  ;;  %v7417_v54 = vpack.c.bf16 %v199_v49, %v199_v49  ;;  %v200_v55 = vld [vmem:[%s8480_s20 + $0x8] sm:$0xff]  ;;  %v6297_v57 = vld [vmem:[%s8479_s1 + $0x254] sm:$0xf0]  ;;  %v4842_v58 = vld [vmem:[%s8479_s1 + $0x2d0] sm:$0xf]  ;;  %v4543_v1 = vor.u32 %v6236_v52, %v4540_v53 }
  0x50   :  { %910 = vmatpush.bf16.msra.mxu1 %v4555_v15  ;;  %v6313_v59 = vld [vmem:[%s8479_s1 + $0x2d4] sm:$0xf0]  ;;  %v7431_v60 = vpack.c.bf16 %v200_v55, %v200_v55  ;;  %v4906_v61 = vld [vmem:[%s8479_s1 + $0x350] sm:$0xf]  ;;  %v4770_v0 = vld [vmem:[%s8479_s1 + $0x240] sm:$0xf]  ;;  %v4779_v2 = vor.u32 %v6297_v57, %v4778_v46 }
  0x51   :  { %923 = vmatpush.bf16.msra.mxu2 %v4619_v16  ;;  %v6329_v62 = vld [vmem:[%s8479_s1 + $0x354] sm:$0xf0]  ;;  %v4843_v3 = vor.u32 %v6313_v59, %v4842_v58  ;;  %v6295_v4 = vld [vmem:[%s8479_s1 + $0x244] sm:$0xf0]  ;;  %v6234_v5 = vld [vmem:[%s8479_s1 + $0x64] sm:$0xf] }
  0x52   :  { %935 = vmatpush.bf16.msra.mxu3 %v4691_v29  ;;  %v4532_v6 = vld [vmem:[%s8479_s1 + $0x68] sm:$0xf0]  ;;  %v4907_v7 = vor.u32 %v6329_v62, %v4906_v61  ;;  %v4834_v8 = vld [vmem:[%s8479_s1 + $0x2c0] sm:$0xf]  ;;  %v6311_v9 = vld [vmem:[%s8479_s1 + $0x2c4] sm:$0xf0]  ;;  %v4771_v15 = vor.u32 %v6295_v4, %v4770_v0 }
  0x53   :  { %898 = vmatpush.bf16.msra.mxu0 %v4483_v26  ;;  %v202_v10 = vld [vmem:[%s8480_s20 + $0x18] sm:$0xff]  ;;  %v4898_v11 = vld [vmem:[%s8479_s1 + $0x340] sm:$0xf]  ;;  %v6327_v12 = vld [vmem:[%s8479_s1 + $0x344] sm:$0xf0]  ;;  %v4535_v14 = vor.u32 %v6234_v5, %v4532_v6  ;;  %v4835_v16 = vor.u32 %v6311_v9, %v4834_v8 }
  0x54   :  { %911 = vmatpush.bf16.msra.mxu1 %v4547_v30  ;;  %v7469_v13 = vpack.c.bf16 %v202_v10, %v202_v10  ;;  %v4762_v17 = vld [vmem:[%s8479_s1 + $0x230] sm:$0xf]  ;;  %v6232_v18 = vld [vmem:[%s8479_s1 + $0x54] sm:$0xf]  ;;  %v4524_v19 = vld [vmem:[%s8479_s1 + $0x58] sm:$0xf0]  ;;  %v4899_v20 = vor.u32 %v6327_v12, %v4898_v11 }
  0x55   :  { %924 = vmatpush.bf16.msra.mxu2 %v4611_v31  ;;  %v6293_v21 = vld [vmem:[%s8479_s1 + $0x234] sm:$0xf0]  ;;  %v4826_v22 = vld [vmem:[%s8479_s1 + $0x2b0] sm:$0xf]  ;;  %v4527_v26 = vor.u32 %v6232_v18, %v4524_v19  ;;  %v4754_v29 = vld [vmem:[%s8479_s1 + $0x220] sm:$0xf] }
  0x56   :  { %936 = vmatpush.bf16.msra.mxu3 %v4683_v44  ;;  %899 = vmatmul.bf16.vlgmr.msra.gmra.mxu0 %v7417_v54  ;;  %v6309_v23 = vld [vmem:[%s8479_s1 + $0x2b4] sm:$0xf0]  ;;  %v4890_v24 = vld [vmem:[%s8479_s1 + $0x330] sm:$0xf]  ;;  %v4763_v27 = vor.u32 %v6293_v21, %v4762_v17  ;;  %v6230_v30 = vld [vmem:[%s8479_s1 + $0x44] sm:$0xf] }
  0x57   :  { %943 = vmatpush.bf16.msrb.mxu0 %v4795_v34  ;;  %912 = vmatmul.bf16.vlgmr.msra.gmra.mxu1 %v7431_v60  ;;  %v6325_v25 = vld [vmem:[%s8479_s1 + $0x334] sm:$0xf0]  ;;  %v4827_v28 = vor.u32 %v6309_v23, %v4826_v22  ;;  %v4516_v31 = vld [vmem:[%s8479_s1 + $0x48] sm:$0xf0]  ;;  %v6291_v33 = vld [vmem:[%s8479_s1 + $0x224] sm:$0xf0] }
  0x58   :  { %956 = vmatpush.bf16.msrb.mxu1 %v4859_v35  ;;  %925 = vmatmul.bf16.vlgmr.msra.gmra.mxu2 %v7397_v45  ;;  %v4891_v32 = vor.u32 %v6325_v25, %v4890_v24  ;;  %v4818_v34 = vld [vmem:[%s8479_s1 + $0x2a0] sm:$0xf]  ;;  %v6307_v35 = vld [vmem:[%s8479_s1 + $0x2a4] sm:$0xf0]  ;;  %v4755_v39 = vor.u32 %v6291_v33, %v4754_v29  ;;  %v4746_v41 = vld [vmem:[%s8479_s1 + $0x210] sm:$0xf] }
  0x59   :  { %969 = vmatpush.bf16.msrb.mxu2 %v4923_v38  ;;  %v4882_v36 = vld [vmem:[%s8479_s1 + $0x320] sm:$0xf]  ;;  %v6323_v37 = vld [vmem:[%s8479_s1 + $0x324] sm:$0xf0]  ;;  %v4519_v38 = vor.u32 %v6230_v30, %v4516_v31  ;;  %v4819_v40 = vor.u32 %v6307_v35, %v4818_v34  ;;  %v6228_v42 = vld [vmem:[%s8479_s1 + $0x34] sm:$0xf] }
  0x5a   :  { %937 = vmatpush.bf16.msra.mxu3 %v4675_v63  ;;  %v4508_v43 = vld [vmem:[%s8479_s1 + $0x38] sm:$0xf0]  ;;  %v4883_v44 = vor.u32 %v6323_v37, %v4882_v36  ;;  %v6289_v46 = vld [vmem:[%s8479_s1 + $0x214] sm:$0xf0]  ;;  %v4810_v47 = vld [vmem:[%s8479_s1 + $0x290] sm:$0xf] }
  0x5b   :  { %944 = vmatpush.bf16.msrb.mxu0 %v4787_v50  ;;  %v6305_v48 = vld [vmem:[%s8479_s1 + $0x294] sm:$0xf0]  ;;  %v4874_v49 = vld [vmem:[%s8479_s1 + $0x310] sm:$0xf]  ;;  %v6287_v52 = vld [vmem:[%s8479_s1 + $0x204] sm:$0xf0]  ;;  %v4511_v53 = vor.u32 %v6228_v42, %v4508_v43  ;;  %v4747_v55 = vor.u32 %v6289_v46, %v4746_v41 }
  0x5c   :  { %957 = vmatpush.bf16.msrb.mxu1 %v4851_v51  ;;  %v6321_v50 = vld [vmem:[%s8479_s1 + $0x314] sm:$0xf0]  ;;  %v4738_v51 = vld [vmem:[%s8479_s1 + $0x200] sm:$0xf]  ;;  %v6226_v58 = vld [vmem:[%s8479_s1 + $0x24] sm:$0xf] }
  0x5d   :  { %970 = vmatpush.bf16.msrb.mxu2 %v4915_v56  ;;  %938 = vmatmul.bf16.vlgmr.msra.gmra.mxu3 %v7469_v13  ;;  %v4811_v56 = vor.u32 %v6305_v48, %v4810_v47  ;;  %v4802_v57 = vld [vmem:[%s8479_s1 + $0x280] sm:$0xf]  ;;  %v4500_v59 = vld [vmem:[%s8479_s1 + $0x28] sm:$0xf0]  ;;  %v4875_v61 = vor.u32 %v6321_v50, %v4874_v49  ;;  %v6303_v62 = vld [vmem:[%s8479_s1 + $0x284] sm:$0xf0]  ;;  %v4739_v8 = vor.u32 %v6287_v52, %v4738_v51 }
  0x5e   :  { %982 = vmatpush.bf16.msrb.mxu3 %v4543_v1  ;;  %v4866_v63 = vld [vmem:[%s8479_s1 + $0x300] sm:$0xf]  ;;  %v6319_v0 = vld [vmem:[%s8479_s1 + $0x304] sm:$0xf0]  ;;  %v6252_v1 = vld [vmem:[%s8479_s1 + $0xf4] sm:$0xf]  ;;  %v4503_v5 = vor.u32 %v6226_v58, %v4500_v59  ;;  %v4803_v9 = vor.u32 %v6303_v62, %v4802_v57 }
  0x5f   :  { %945 = vmatpush.bf16.msrb.mxu0 %v4779_v2  ;;  %v4604_v2 = vld [vmem:[%s8479_s1 + $0xf8] sm:$0xf0]  ;;  %v6284_v6 = vld [vmem:[%s8479_s1 + $0x1f4] sm:$0xf]  ;;  %v203_v10 = vld [vmem:[%s8480_s20 + $0x20] sm:$0xff]  ;;  %v4867_v12 = vor.u32 %v6319_v0, %v4866_v63 }
  0x60   :  { %958 = vmatpush.bf16.msrb.mxu1 %v4843_v3  ;;  %v6268_v3 = vld [vmem:[%s8479_s1 + $0x174] sm:$0xf]  ;;  %v4668_v4 = vld [vmem:[%s8479_s1 + $0x178] sm:$0xf0]  ;;  %v204_v11 = vld [vmem:[%s8480_s20 + $0x28] sm:$0xff]  ;;  %v7610_v23 = vpack.c.bf16 %v203_v10, %v203_v10 }
  0x61   :  { %971 = vmatpush.bf16.msrb.mxu2 %v4907_v7  ;;  %v4732_v7 = vld [vmem:[%s8479_s1 + $0x1f8] sm:$0xf0]  ;;  %v4671_v18 = vor.u32 %v6268_v3, %v4668_v4  ;;  %v6250_v19 = vld [vmem:[%s8479_s1 + $0xe4] sm:$0xf]  ;;  %v4660_v24 = vld [vmem:[%s8479_s1 + $0x168] sm:$0xf0]  ;;  %v7615_v25 = vpack.c.bf16 %v204_v11, %v204_v11 }
  0x62   :  { %983 = vmatpush.bf16.msrb.mxu3 %v4535_v14  ;;  %v4607_v14 = vor.u32 %v6252_v1, %v4604_v2  ;;  %v4492_v17 = vld [vmem:[%s8479_s1 + $0x18] sm:$0xf0]  ;;  %v6266_v21 = vld [vmem:[%s8479_s1 + $0x164] sm:$0xf]  ;;  %v4735_v22 = vor.u32 %v6284_v6, %v4732_v7  ;;  %v6248_v30 = vld [vmem:[%s8479_s1 + $0xd4] sm:$0xf] }
  0x63   :  { %946 = vmatpush.bf16.msrb.mxu0 %v4771_v15  ;;  %v205_v15 = vld [vmem:[%s8480_s20 + $0x30] sm:$0xff]  ;;  %v6222_v33 = vld [vmem:[%s8479_s1 + $0x4] sm:$0xf]  ;;  %v4484_v34 = vld [vmem:[%s8479_s1 + $0x8] sm:$0xf0]  ;;  %v4663_v35 = vor.u32 %v6266_v21, %v4660_v24 }
  0x64   :  { %959 = vmatpush.bf16.msrb.mxu1 %v4835_v16  ;;  %v6224_v16 = vld [vmem:[%s8479_s1 + $0x14] sm:$0xf]  ;;  %v4716_v42 = vld [vmem:[%s8479_s1 + $0x1d8] sm:$0xf0]  ;;  %v4487_v43 = vor.u32 %v6222_v33, %v4484_v34  ;;  %v6246_v46 = vld [vmem:[%s8479_s1 + $0xc4] sm:$0xf] }
  0x65   :  { %972 = vmatpush.bf16.msrb.mxu2 %v4899_v20  ;;  %v4596_v20 = vld [vmem:[%s8479_s1 + $0xe8] sm:$0xf0]  ;;  %v4495_v29 = vor.u32 %v6224_v16, %v4492_v17  ;;  %v6264_v36 = vld [vmem:[%s8479_s1 + $0x154] sm:$0xf]  ;;  %v6262_v50 = vld [vmem:[%s8479_s1 + $0x144] sm:$0xf] }
  0x66   :  { %984 = vmatpush.bf16.msrb.mxu3 %v4527_v26  ;;  %v6282_v26 = vld [vmem:[%s8479_s1 + $0x1e4] sm:$0xf]  ;;  %v4599_v31 = vor.u32 %v6250_v19, %v4596_v20  ;;  %v6300_v37 = vld [vmem:[%s8479_s1 + $0x274] sm:$0xf]  ;;  %v4580_v47 = vld [vmem:[%s8479_s1 + $0xc8] sm:$0xf0] }
  0x67   :  { %947 = vmatpush.bf16.msrb.mxu0 %v4763_v27  ;;  %v4724_v27 = vld [vmem:[%s8479_s1 + $0x1e8] sm:$0xf0]  ;;  %v6280_v41 = vld [vmem:[%s8479_s1 + $0x1d4] sm:$0xf]  ;;  %v6298_v51 = vld [vmem:[%s8479_s1 + $0x264] sm:$0xf]  ;;  %v4583_v58 = vor.u32 %v6246_v46, %v4580_v47 }
  0x68   :  { %960 = vmatpush.bf16.msrb.mxu1 %v4827_v28  ;;  %v7623_v28 = vpack.c.bf16 %v205_v15, %v205_v15  ;;  %v4788_v52 = vld [vmem:[%s8479_s1 + $0x268] sm:$0xf0]  ;;  %v6244_v59 = vld [vmem:[%s8479_s1 + $0xb4] sm:$0xf]  ;;  %v4780_v2 = vld [vmem:[%s8479_s1 + $0x258] sm:$0xf0] }
  0x69   :  { %973 = vmatpush.bf16.msrb.mxu2 %v4891_v32  ;;  %v4588_v32 = vld [vmem:[%s8479_s1 + $0xd8] sm:$0xf0]  ;;  %v4708_v57 = vld [vmem:[%s8479_s1 + $0x1c8] sm:$0xf0]  ;;  %v4791_v62 = vor.u32 %v6298_v51, %v4788_v52  ;;  %v6260_v0 = vld [vmem:[%s8479_s1 + $0x134] sm:$0xf] }
  0x6a   :  { %985 = vmatpush.bf16.msrb.mxu3 %v4519_v38  ;;  %v4796_v38 = vld [vmem:[%s8479_s1 + $0x278] sm:$0xf0]  ;;  %v6296_v1 = vld [vmem:[%s8479_s1 + $0x254] sm:$0xf]  ;;  %v4628_v16 = vld [vmem:[%s8479_s1 + $0x128] sm:$0xf0] }
  0x6b   :  { %948 = vmatpush.bf16.msrb.mxu0 %v4755_v39  ;;  %v4727_v39 = vor.u32 %v6282_v26, %v4724_v27  ;;  %v4799_v48 = vor.u32 %v6300_v37, %v4796_v38  ;;  %v4636_v4 = vld [vmem:[%s8479_s1 + $0x138] sm:$0xf0]  ;;  %v4783_v10 = vor.u32 %v6296_v1, %v4780_v2  ;;  %v6274_v17 = vld [vmem:[%s8479_s1 + $0x1a4] sm:$0xf]  ;;  %v6240_v20 = vld [vmem:[%s8479_s1 + $0x94] sm:$0xf] }
  0x6c   :  { %961 = vmatpush.bf16.msrb.mxu1 %v4819_v40  ;;  %v4652_v40 = vld [vmem:[%s8479_s1 + $0x158] sm:$0xf0]  ;;  %v4639_v11 = vor.u32 %v6260_v0, %v4636_v4  ;;  %v6256_v26 = vld [vmem:[%s8479_s1 + $0x114] sm:$0xf]  ;;  %v6254_v37 = vld [vmem:[%s8479_s1 + $0x104] sm:$0xf] }
  0x6d   :  { %974 = vmatpush.bf16.msrb.mxu2 %v4883_v44  ;;  %v4591_v44 = vor.u32 %v6248_v30, %v4588_v32  ;;  %v4655_v49 = vor.u32 %v6264_v36, %v4652_v40  ;;  %v4700_v6 = vld [vmem:[%s8479_s1 + $0x1b8] sm:$0xf0]  ;;  %v6292_v27 = vld [vmem:[%s8479_s1 + $0x234] sm:$0xf]  ;;  %v4548_v36 = vld [vmem:[%s8479_s1 + $0x88] sm:$0xf0] }
  0x6e   :  { %986 = vmatpush.bf16.msrb.mxu3 %v4511_v53  ;;  %v4719_v53 = vor.u32 %v6280_v41, %v4716_v42  ;;  %v4556_v21 = vld [vmem:[%s8479_s1 + $0x98] sm:$0xf0]  ;;  %v6272_v32 = vld [vmem:[%s8479_s1 + $0x194] sm:$0xf]  ;;  %v4612_v40 = vld [vmem:[%s8479_s1 + $0x108] sm:$0xf0] }
  0x6f   :  { %949 = vmatpush.bf16.msrb.mxu0 %v4747_v55  ;;  %v4644_v55 = vld [vmem:[%s8479_s1 + $0x148] sm:$0xf0]  ;;  %v4684_v33 = vld [vmem:[%s8479_s1 + $0x198] sm:$0xf0]  ;;  %v4559_v34 = vor.u32 %v6240_v20, %v4556_v21  ;;  %v6290_v41 = vld [vmem:[%s8479_s1 + $0x224] sm:$0xf] }
  0x70   :  { %962 = vmatpush.bf16.msrb.mxu1 %v4811_v56  ;;  %v6278_v56 = vld [vmem:[%s8479_s1 + $0x1c4] sm:$0xf]  ;;  %v4647_v63 = vor.u32 %v6262_v50, %v4644_v55  ;;  %v4756_v42 = vld [vmem:[%s8479_s1 + $0x228] sm:$0xf0]  ;;  %v4860_v46 = vld [vmem:[%s8479_s1 + $0x2f8] sm:$0xf0] }
  0x71   :  { %975 = vmatpush.bf16.msrb.mxu2 %v4875_v61  ;;  %v4572_v61 = vld [vmem:[%s8479_s1 + $0xb8] sm:$0xf0]  ;;  %v4711_v3 = vor.u32 %v6278_v56, %v4708_v57  ;;  %v6332_v47 = vld [vmem:[%s8479_s1 + $0x374] sm:$0xf]  ;;  %v4676_v50 = vld [vmem:[%s8479_s1 + $0x188] sm:$0xf0]  ;;  %v4759_v52 = vor.u32 %v6290_v41, %v4756_v42 }
  0x72   :  { %987 = vmatpush.bf16.msrb.mxu3 %v4503_v5  ;;  %v6276_v5 = vld [vmem:[%s8479_s1 + $0x1b4] sm:$0xf]  ;;  %v4575_v7 = vor.u32 %v6244_v59, %v4572_v61  ;;  %v4748_v57 = vld [vmem:[%s8479_s1 + $0x218] sm:$0xf0]  ;;  %v6314_v59 = vld [vmem:[%s8479_s1 + $0x2e4] sm:$0xf] }
  0x73   :  { %950 = vmatpush.bf16.msrb.mxu0 %v4739_v8  ;;  %v6242_v8 = vld [vmem:[%s8479_s1 + $0xa4] sm:$0xf]  ;;  %v4703_v15 = vor.u32 %v6276_v5, %v4700_v6  ;;  %v6288_v56 = vld [vmem:[%s8479_s1 + $0x214] sm:$0xf]  ;;  %v4852_v61 = vld [vmem:[%s8479_s1 + $0x2e8] sm:$0xf0] }
  0x74   :  { %963 = vmatpush.bf16.msrb.mxu1 %v4803_v9  ;;  %v4564_v9 = vld [vmem:[%s8479_s1 + $0xa8] sm:$0xf0]  ;;  %v4751_v1 = vor.u32 %v6288_v56, %v4748_v57  ;;  %v4855_v2 = vor.u32 %v6314_v59, %v4852_v61  ;;  %v6312_v6 = vld [vmem:[%s8479_s1 + $0x2d4] sm:$0xf]  ;;  %v325_v42 = vld [vmem:[%s8459_s2] sm:$0x3] }
  0x75   :  { %976 = vmatpush.bf16.msrb.mxu2 %v4867_v12  ;;  %v6258_v12 = vld [vmem:[%s8479_s1 + $0x124] sm:$0xf]  ;;  %v4567_v19 = vor.u32 %v6242_v8, %v4564_v9  ;;  %v4916_v0 = vld [vmem:[%s8479_s1 + $0x368] sm:$0xf0]  ;;  %v6328_v8 = vld [vmem:[%s8479_s1 + $0x354] sm:$0xf] }
  0x76   :  { %951 = vmatmul.bf16.vlgmr.msrb.gmra.mxu0 %v7610_v23  ;;  %988 = vmatpush.bf16.msrb.mxu3 %v4495_v29  ;;  %v4631_v24 = vor.u32 %v6258_v12, %v4628_v16  ;;  %v4764_v29 = vld [vmem:[%s8479_s1 + $0x238] sm:$0xf0]  ;;  %v4740_v4 = vld [vmem:[%s8479_s1 + $0x208] sm:$0xf0]  ;;  %v6308_v16 = vld [vmem:[%s8479_s1 + $0x2b4] sm:$0xf] }
  0x77   :  { %995 = vmatpush.bf16.msra.mxu0 %v4607_v14  ;;  %964 = vmatmul.bf16.vlgmr.msrb.gmra.mxu1 %v7615_v25  ;;  %v4772_v14 = vld [vmem:[%s8479_s1 + $0x248] sm:$0xf0]  ;;  %v4767_v38 = vor.u32 %v6292_v27, %v4764_v29  ;;  %v4908_v9 = vld [vmem:[%s8479_s1 + $0x358] sm:$0xf0] }
  0x78   :  { %1008 = vmatpush.bf16.msra.mxu1 %v4671_v18  ;;  %977 = vmatmul.bf16.vlgmr.msrb.gmra.mxu2 %v7623_v28  ;;  %v4692_v18 = vld [vmem:[%s8479_s1 + $0x1a8] sm:$0xf0]  ;;  %v4911_v12 = vor.u32 %v6328_v8, %v4908_v9 }
  0x79   :  { %1021 = vmatpush.bf16.msra.mxu2 %v4735_v22  ;;  %v4695_v30 = vor.u32 %v6274_v17, %v4692_v18  ;;  %v4828_v17 = vld [vmem:[%s8479_s1 + $0x2b8] sm:$0xf0]  ;;  %v6324_v18 = vld [vmem:[%s8479_s1 + $0x334] sm:$0xf] }
  0x7a   :  { %989 = vmatpush.bf16.msrb.mxu3 %v4487_v43  ;;  %v4687_v43 = vor.u32 %v6272_v32, %v4684_v33  ;;  %v4831_v20 = vor.u32 %v6308_v16, %v4828_v17  ;;  %v6320_v32 = vld [vmem:[%s8479_s1 + $0x314] sm:$0xf]  ;;  %v4876_v33 = vld [vmem:[%s8479_s1 + $0x318] sm:$0xf0] }
  0x7b   :  { %996 = vmatpush.bf16.msra.mxu0 %v4599_v31  ;;  %v4620_v31 = vld [vmem:[%s8479_s1 + $0x118] sm:$0xf0] }
  0x7c   :  { %1009 = vmatpush.bf16.msra.mxu1 %v4663_v35  ;;  %v6238_v35 = vld [vmem:[%s8479_s1 + $0x84] sm:$0xf] }
  0x7d   :  { %1022 = vmatpush.bf16.msra.mxu2 %v4727_v39  ;;  %990 = vmatmul.bf16.vlgmr.msrb.gmra.mxu3 %v7417_v54  ;;  %v6294_v54 = vld [vmem:[%s8479_s1 + $0x244] sm:$0xf]  ;;  %v4623_v39 = vor.u32 %v6256_v26, %v4620_v31  ;;  %v4551_v51 = vor.u32 %v6238_v35, %v4548_v36  ;;  %v4884_v26 = vld [vmem:[%s8479_s1 + $0x328] sm:$0xf0]  ;;  %v4812_v31 = vld [vmem:[%s8479_s1 + $0x298] sm:$0xf0]  ;;  %v4879_v35 = vor.u32 %v6320_v32, %v4876_v33 }
  0x7e   :  { %1034 = vmatpush.bf16.msra.mxu3 %v4799_v48  ;;  %v4775_v22 = vor.u32 %v6294_v54, %v4772_v14  ;;  %v4924_v48 = vld [vmem:[%s8479_s1 + $0x378] sm:$0xf0]  ;;  %v4836_v54 = vld [vmem:[%s8479_s1 + $0x2c8] sm:$0xf0]  ;;  %v6326_v14 = vld [vmem:[%s8479_s1 + $0x344] sm:$0xf] }
  0x7f   :  { %997 = vmatpush.bf16.msra.mxu0 %v4591_v44  ;;  %v6316_v44 = vld [vmem:[%s8479_s1 + $0x2f4] sm:$0xf]  ;;  %v6302_v36 = vld [vmem:[%s8479_s1 + $0x284] sm:$0xf] }
  0x80   :  { %1010 = vmatpush.bf16.msra.mxu1 %v4655_v49  ;;  %v6270_v49 = vld [vmem:[%s8479_s1 + $0x184] sm:$0xf]  ;;  %v4863_v55 = vor.u32 %v6316_v44, %v4860_v46 }
  0x81   :  { %1023 = vmatpush.bf16.msra.mxu2 %v4719_v53  ;;  %v4615_v53 = vor.u32 %v6254_v37, %v4612_v40  ;;  %v4804_v37 = vld [vmem:[%s8479_s1 + $0x288] sm:$0xf0] }
  0x82   :  { %1035 = vmatpush.bf16.msra.mxu3 %v4791_v62  ;;  %v4679_v62 = vor.u32 %v6270_v49, %v4676_v50  ;;  %v4807_v40 = vor.u32 %v6302_v36, %v4804_v37 }
  0x83   :  { %998 = vmatpush.bf16.msra.mxu0 %v4583_v58  ;;  %v4927_v58 = vor.u32 %v6332_v47, %v4924_v48 }
  0x84   :  { %1011 = vmatpush.bf16.msra.mxu1 %v4647_v63  ;;  %v6330_v63 = vld [vmem:[%s8479_s1 + $0x364] sm:$0xf] }
  0x85   :  { %1024 = vmatpush.bf16.msra.mxu2 %v4711_v3  ;;  %v6286_v3 = vld [vmem:[%s8479_s1 + $0x204] sm:$0xf]  ;;  %v4919_v5 = vor.u32 %v6330_v63, %v4916_v0 }
  0x86   :  { %1036 = vmatpush.bf16.msra.mxu3 %v4783_v10  ;;  %v4743_v10 = vor.u32 %v6286_v3, %v4740_v4 }
  0x87   :  { %999 = vmatpush.bf16.msra.mxu0 %v4575_v7  ;;  %v4844_v7 = vld [vmem:[%s8479_s1 + $0x2d8] sm:$0xf0] }
  0x88   :  { %1012 = vmatpush.bf16.msra.mxu1 %v4639_v11  ;;  %v4847_v11 = vor.u32 %v6312_v6, %v4844_v7 }
  0x89   :  { %1025 = vmatpush.bf16.msra.mxu2 %v4703_v15 }
  0x8a   :  { %1037 = vmatpush.bf16.msra.mxu3 %v4775_v22  ;;  %v6306_v22 = vld [vmem:[%s8479_s1 + $0x2a4] sm:$0xf] }
  0x8b   :  { %1000 = vmatpush.bf16.msra.mxu0 %v4567_v19  ;;  %v4892_v19 = vld [vmem:[%s8479_s1 + $0x338] sm:$0xf0] }
  0x8c   :  { %1013 = vmatpush.bf16.msra.mxu1 %v4631_v24  ;;  %v4895_v21 = vor.u32 %v6324_v18, %v4892_v19  ;;  %v6322_v24 = vld [vmem:[%s8479_s1 + $0x324] sm:$0xf] }
  0x8d   :  { %1026 = vmatpush.bf16.msra.mxu2 %v4695_v30  ;;  %v4887_v29 = vor.u32 %v6322_v24, %v4884_v26  ;;  %v6304_v30 = vld [vmem:[%s8479_s1 + $0x294] sm:$0xf] }
  0x8e   :  { %1038 = vmatpush.bf16.msra.mxu3 %v4767_v38  ;;  %v6318_v38 = vld [vmem:[%s8479_s1 + $0x304] sm:$0xf] }
  0x8f   :  { %1001 = vmatpush.bf16.msra.mxu0 %v4559_v34  ;;  %v4815_v34 = vor.u32 %v6304_v30, %v4812_v31 }
  0x90   :  { %1014 = vmatpush.bf16.msra.mxu1 %v4623_v39  ;;  %v4868_v39 = vld [vmem:[%s8479_s1 + $0x308] sm:$0xf0] }
  0x91   :  { %1027 = vmatpush.bf16.msra.mxu2 %v4687_v43  ;;  %v4871_v41 = vor.u32 %v6318_v38, %v4868_v39  ;;  %v327_v43 = vperm.slane %v325_v42, 0 }
  0x92   :  { %1039 = vmatpush.bf16.msra.mxu3 %v4759_v52 }
  0x93   :  { %1002 = vmatpush.bf16.msra.mxu0 %v4551_v51 }
  0x94   :  { %1015 = vmatpush.bf16.msra.mxu1 %v4615_v53 }
  0x95   :  { %1028 = vmatpush.bf16.msra.mxu2 %v4679_v62 }
  0x96   :  { %1003 = vmatmul.bf16.vlgmr.msra.gmra.mxu0 %v7431_v60  ;;  %1040 = vmatpush.bf16.msra.mxu3 %v4751_v1  ;;  %v6310_v60 = vld [vmem:[%s8479_s1 + $0x2c4] sm:$0xf] }
  0x97   :  { %1047 = vmatpush.bf16.msrb.mxu0 %v4863_v55  ;;  %1016 = vmatmul.bf16.vlgmr.msra.gmra.mxu1 %v7397_v45  ;;  %v4900_v45 = vld [vmem:[%s8479_s1 + $0x348] sm:$0xf0] }
  0x98   :  { %1060 = vmatpush.bf16.msrb.mxu1 %v4927_v58  ;;  %1029 = vmatmul.bf16.vlgmr.msra.gmra.mxu2 %v7469_v13  ;;  %v4839_v13 = vor.u32 %v6310_v60, %v4836_v54  ;;  %v4903_v15 = vor.u32 %v6326_v14, %v4900_v45  ;;  %v328_v60 = vperm.slane %v325_v42, 1 }
  0x9a   :  { %1041 = vmatpush.bf16.msra.mxu3 %v4743_v10 }
  0x9b   :  { %1048 = vmatpush.bf16.msrb.mxu0 %v4855_v2 }
  0x9c   :  { %1061 = vmatpush.bf16.msrb.mxu1 %v4919_v5 }
  0x9d   :  { %1042 = vmatmul.bf16.vlgmr.msra.gmra.mxu3 %v7610_v23  ;;  %v4820_v23 = vld [vmem:[%s8479_s1 + $0x2a8] sm:$0xf0] }
  0x9e   :  { %v4823_v27 = vor.u32 %v6306_v22, %v4820_v23 }
  0x9f   :  { %1049 = vmatpush.bf16.msrb.mxu0 %v4847_v11 }
  0xa0   :  { %1062 = vmatpush.bf16.msrb.mxu1 %v4911_v12 }
  0xa3   :  { %1050 = vmatpush.bf16.msrb.mxu0 %v4839_v13 }
  0xa4   :  { %1063 = vmatpush.bf16.msrb.mxu1 %v4903_v15 }
  0xa7   :  { %1051 = vmatpush.bf16.msrb.mxu0 %v4831_v20 }
  0xa8   :  { %1064 = vmatpush.bf16.msrb.mxu1 %v4895_v21 }
  0xab   :  { %1052 = vmatpush.bf16.msrb.mxu0 %v4823_v27 }
  0xac   :  { %1065 = vmatpush.bf16.msrb.mxu1 %v4887_v29 }
  0xaf   :  { %1053 = vmatpush.bf16.msrb.mxu0 %v4815_v34 }
  0xb0   :  { %1066 = vmatpush.bf16.msrb.mxu1 %v4879_v35 }
  0xb3   :  { %1054 = vmatpush.bf16.msrb.mxu0 %v4807_v40 }
  0xb4   :  { %1067 = vmatpush.bf16.msrb.mxu1 %v4871_v41 }
  0xb6   :  { %1055 = vmatmul.bf16.vlgmr.msrb.gmra.mxu0 %v7615_v25 }
  0xb7   :  { %1068 = vmatmul.bf16.vlgmr.msrb.gmra.mxu1 %v7623_v28 }
  0xd3   :  { %v900_v44 = vpop.f32.mrf.mxu0 }
  0xd4   :  { %v913_v46 = vpop.f32.mrf.mxu1  ;;  %v901_v47 = vadd.f32 %v900_v44, %v327_v43 }
  0xd6   :  { %v914_v48 = vadd.f32 %v913_v46, %v901_v47 }
  0xdb   :  { %v926_v49 = vpop.f32.mrf.mxu2  ;;  %v902_v51 = vpop.f32.mrf.mxu0 }
  0xdc   :  { %v927_v50 = vadd.f32 %v926_v49, %v914_v48  ;;  %v915_v52 = vpop.f32.mrf.mxu1 }
  0xdd   :  { %v5044_v52 = vld [vmem:[#allocation7 + $0xe0] sm:$0xf] }
  0xe0   :  { %v939_v53 = vpop.f32.mrf.mxu3 }
  0xe1   :  { %v940_v56 = vadd.f32 %v939_v53, %v927_v50  ;;  %v6364_v53 = vld [vmem:[#allocation7 + $0xec] sm:$0xf0] }
  0xe3   :  { %v928_v55 = vpop.f32.mrf.mxu2 }
  0xe4   :  { %v5172_v55 = vld [vmem:[#allocation7 + $0x1e0] sm:$0xf] }
  0xe8   :  { %v941_v57 = vpop.f32.mrf.mxu3 }
  0xe9   :  { %v6396_v57 = vld [vmem:[#allocation7 + $0x1ec] sm:$0xf0] }
  0xf3   :  { %v952_v25 = vpop.f32.mrf.mxu0 }
  0xf4   :  { %v965_v58 = vpop.f32.mrf.mxu1  ;;  %v953_v28 = vadd.f32 %v952_v25, %v940_v56  ;;  %v5045_v25 = vor.u32 %v6364_v53, %v5044_v52 }
  0xf6   :  { %v966_v59 = vadd.f32 %v965_v58, %v953_v28  ;;  %v5173_v58 = vor.u32 %v6396_v57, %v5172_v55  ;;  %v6362_v28 = vld [vmem:[#allocation7 + $0xe4] sm:$0xf]  ;;  %1596 = vmatpush.bf16.msrb.mxu2 %v5045_v25  ;;  %v4980_v55 = vld [vmem:[#allocation7 + $0x60] sm:$0xf] }
  0xf7   :  { %v5108_v57 = vld [vmem:[#allocation7 + $0x160] sm:$0xf] }
  0xf8   :  { %1609 = vmatpush.bf16.msrb.mxu3 %v5173_v58 }
  0xfb   :  { %v978_v61 = vpop.f32.mrf.mxu2  ;;  %v954_v63 = vpop.f32.mrf.mxu0 }
  0xfc   :  { %v979_v62 = vadd.f32 %v978_v61, %v966_v59  ;;  %v967_v0 = vpop.f32.mrf.mxu1  ;;  %v5046_v59 = vld [vmem:[#allocation7 + $0xf0] sm:$0xf0]  ;;  %v6394_v61 = vld [vmem:[#allocation7 + $0x1e4] sm:$0xf] }
  0xfd   :  { %v5049_v63 = vor.u32 %v6362_v28, %v5046_v59  ;;  %v5174_v0 = vld [vmem:[#allocation7 + $0x1f0] sm:$0xf0]  ;;  %v6346_v28 = vld [vmem:[#allocation7 + $0x64] sm:$0xf] }
  0xfe   :  { %v4928_v1 = vmul.f32 -1.442695, %v979_v62  ;;  %v4982_v59 = vld [vmem:[#allocation7 + $0x70] sm:$0xf0] }
  0xff   :  { %1622 = vmatpush.bf16.msra.mxu0 %v5049_v63 }
 0x100   :  { %6667 = vpow2.f32 %v4928_v1  ;;  %v991_v2 = vpop.f32.mrf.mxu3  ;;  %v5177_v1 = vor.u32 %v6394_v61, %v5174_v0 }
 0x101   :  { %v992_v17 = vadd.f32 %v991_v2, %v328_v60  ;;  %v5028_v2 = vld [vmem:[#allocation7 + $0xc0] sm:$0xf]  ;;  %v5158_v60 = vld [vmem:[#allocation7 + $0x1d0] sm:$0xf0] }
 0x102   :  { %1635 = vmatpush.bf16.msra.mxu1 %v5177_v1  ;;  %v4985_v1 = vor.u32 %v6346_v28, %v4982_v59  ;;  %v6363_v59 = vld [vmem:[#allocation7 + $0xec] sm:$0xf] }
 0x103   :  { %v980_v3 = vpop.f32.mrf.mxu2 }
 0x104   :  { %v6360_v3 = vld [vmem:[#allocation7 + $0xcc] sm:$0xf0] }
 0x106   :  { %v6668_v4 = vpop.eup %6667 }
 0x107   :  { %v1079_v5 = vadd.f32 1.0, %v6668_v4  ;;  %v5156_v4 = vld [vmem:[#allocation7 + $0x1c0] sm:$0xf] }
 0x108   :  { %v993_v6 = vpop.f32.mrf.mxu3 }
 0x109   :  { %6669 = vrcp.f32 %v1079_v5  ;;  %v1092_v15 = vand.u32 2147483648, %v1079_v5  ;;  %vm1086_vm1 = vweird.f32 %v1079_v5  ;;  %v1090_v16 = vand.u32 2147483647, %v1079_v5 }
 0x10a   :  { %v5029_v6 = vor.u32 %v6360_v3, %v5028_v2  ;;  %v6378_v2 = vld [vmem:[#allocation7 + $0x164] sm:$0xf]  ;;  %v5110_v3 = vld [vmem:[#allocation7 + $0x170] sm:$0xf0] }
 0x10b   :  { %v1093_v19 = vor.u32 1.1754944e-38, %v1092_v15  ;;  %vm1091_vm3 = vcmp.eq.f32.partialorder %v1090_v16, 8.507059e+37  ;;  %v6356_v15 = vld [vmem:[#allocation7 + $0xac] sm:$0xf0]  ;;  %v5140_v16 = vld [vmem:[#allocation7 + $0x1a0] sm:$0xf] }
 0x10c   :  { %1597 = vmatpush.bf16.msrb.mxu2 %v5029_v6  ;;  %v6344_v6 = vld [vmem:[#allocation7 + $0x4c] sm:$0xf0] }
 0x10f   :  { %v6670_v7 = vpop.eup %6669 }
 0x110   :  { %v1082_v8 = vmul.f32 %v6670_v7, %v1079_v5  ;;  %vm1087_vm0 = vweird.f32 %v6670_v7 }
 0x111   :  { %vm1088_vm2 = vmor %vm1086_vm1, %vm1087_vm0 }
 0x112   :  { %v1083_v10 = vsub.f32 1.0, %v1082_v8  ;;  %v6358_v8 = vld [vmem:[#allocation7 + $0xc4] sm:$0xf] }
 0x113   :  { %v1004_v9 = vpop.f32.mrf.mxu0 }
 0x114   :  { %v1017_v11 = vpop.f32.mrf.mxu1  ;;  %v1084_v12 = vmul.f32 %v6670_v7, %v1083_v10  ;;  %v1005_v22 = vadd.f32 %v1004_v9, %v992_v17  ;;  %v5030_v9 = vld [vmem:[#allocation7 + $0xd0] sm:$0xf0] }
 0x116   :  { %v1085_v45 = vadd.f32 %v6670_v7, %v1084_v12  ;;  %v1018_v26 = vadd.f32 %v1017_v11, %v1005_v22  ;;  %v5033_v11 = vor.u32 %v6358_v8, %v5030_v9  ;;  %v6390_v12 = vld [vmem:[#allocation7 + $0x1c4] sm:$0xf] }
 0x118   :  { %v1089_v18 = vsel %vm1088_vm2, %v6670_v7, %v1085_v45  ;;  %v6392_v7 = vld [vmem:[#allocation7 + $0x1cc] sm:$0xf0]  ;;  %1623 = vmatpush.bf16.msra.mxu0 %v5033_v11 }
 0x119   :  { %v1094_v21 = vsel %vm1091_vm3, %v1093_v19, %v1089_v18  ;;  %v5157_v10 = vor.u32 %v6392_v7, %v5156_v4  ;;  %v5113_v4 = vor.u32 %v6378_v2, %v5110_v3  ;;  %v5092_v7 = vld [vmem:[#allocation7 + $0x140] sm:$0xf]  ;;  %v6376_v11 = vld [vmem:[#allocation7 + $0x14c] sm:$0xf0]  ;;  %v6395_v2 = vld [vmem:[#allocation7 + $0x1ec] sm:$0xf] }
 0x11a   :  { %v7896_v24 = vmul.f32 %v1094_v21, %v979_v62  ;;  %v6354_v21 = vld [vmem:[#allocation7 + $0xa4] sm:$0xf]  ;;  %v5182_v3 = vld [vmem:[#allocation7 + $0x1f8] sm:$0xf0] }
 0x11b   :  { %v1006_v54 = vpop.f32.mrf.mxu0  ;;  %v1030_v14 = vpop.f32.mrf.mxu2  ;;  %1610 = vmatpush.bf16.msrb.mxu3 %v5157_v10 }
 0x11c   :  { %v1019_v13 = vpop.f32.mrf.mxu1  ;;  %v1113_v29 = vrot.slane %v7896_v24, 4  ;;  %v1031_v30 = vadd.f32 %v1030_v14, %v1018_v26  ;;  %v1127_v31 = vmul.f32 %v7896_v24, %v7896_v24  ;;  %v5161_v14 = vor.u32 %v6390_v12, %v5158_v60  ;;  %v5014_v26 = vld [vmem:[#allocation7 + $0xb0] sm:$0xf0] }
 0x11d   :  { %v5012_v13 = vld [vmem:[#allocation7 + $0xa0] sm:$0xf]  ;;  %v5093_v12 = vor.u32 %v6376_v11, %v5092_v7  ;;  %v4966_v60 = vld [vmem:[#allocation7 + $0x50] sm:$0xf0]  ;;  %v5185_v7 = vor.u32 %v6395_v2, %v5182_v3  ;;  %v6393_v11 = vld [vmem:[#allocation7 + $0x1d4] sm:$0xf0] }
 0x11e   :  { %v1114_v32 = vadd.f32 %v1113_v29, %v7896_v24  ;;  %v1129_v34 = vrot.slane %v1127_v31, 4  ;;  %v5013_v19 = vor.u32 %v6356_v15, %v5012_v13  ;;  %1636 = vmatpush.bf16.msra.mxu1 %v5161_v14  ;;  %v5094_v14 = vld [vmem:[#allocation7 + $0x150] sm:$0xf0]  ;;  %v6379_v2 = vld [vmem:[#allocation7 + $0x16c] sm:$0xf] }
 0x11f   :  { %v5118_v3 = vld [vmem:[#allocation7 + $0x178] sm:$0xf0] }
 0x120   :  { %v1043_v20 = vpop.f32.mrf.mxu3  ;;  %v1115_v38 = vrot.slane %v1114_v32, 2  ;;  %v1130_v40 = vadd.f32 %v1129_v34, %v1127_v31  ;;  %v5017_v31 = vor.u32 %v6354_v21, %v5014_v26  ;;  %1598 = vmatpush.bf16.msrb.mxu2 %v5013_v19  ;;  %v5076_v19 = vld [vmem:[#allocation7 + $0x120] sm:$0xf]  ;;  %v6338_v21 = vld [vmem:[#allocation7 + $0x24] sm:$0xf] }
 0x121   :  { %v1044_v33 = vadd.f32 %v1043_v20, %v1031_v30  ;;  %v6388_v20 = vld [vmem:[#allocation7 + $0x1ac] sm:$0xf0] }
 0x122   :  { %v1116_v42 = vadd.f32 %v1115_v38, %v1114_v32  ;;  %v1131_v43 = vrot.slane %v1130_v40, 2  ;;  %v5142_v32 = vld [vmem:[#allocation7 + $0x1b0] sm:$0xf0]  ;;  %1624 = vmatpush.bf16.msra.mxu0 %v5017_v31 }
 0x123   :  { %v1032_v23 = vpop.f32.mrf.mxu2 }
 0x124   :  { %v1117_v47 = vrot.slane %v1116_v42, 1  ;;  %v1132_v48 = vadd.f32 %v1131_v43, %v1130_v40  ;;  %v5141_v23 = vor.u32 %v6388_v20, %v5140_v16  ;;  %v4998_v43 = vld [vmem:[#allocation7 + $0x90] sm:$0xf0]  ;;  %v6372_v20 = vld [vmem:[#allocation7 + $0x12c] sm:$0xf0] }
 0x126   :  { %v1118_v50 = vadd.f32 %v1117_v47, %v1116_v42  ;;  %v1133_v56 = vrot.slane %v1132_v48, 1  ;;  %1611 = vmatpush.bf16.msrb.mxu3 %v5141_v23  ;;  %v6350_v42 = vld [vmem:[#allocation7 + $0x84] sm:$0xf] }
 0x127   :  { %v5001_v47 = vor.u32 %v6350_v42, %v4998_v43  ;;  %v4934_v42 = vld [vmem:[#allocation7 + $0x10] sm:$0xf0]  ;;  %v6366_v43 = vld [vmem:[#allocation7 + $0x104] sm:$0xf] }
 0x128   :  { %v1045_v27 = vpop.f32.mrf.mxu3  ;;  %v7908_v62 = vmul.f32 0.125, %v1118_v50  ;;  %v1134_v5 = vadd.f32 %v1133_v56, %v1132_v48  ;;  %v6382_v48 = vld [vmem:[#allocation7 + $0x184] sm:$0xf]  ;;  %v6348_v56 = vld [vmem:[#allocation7 + $0x6c] sm:$0xf0] }
 0x129   :  { %v6386_v27 = vld [vmem:[#allocation7 + $0x1a4] sm:$0xf]  ;;  %1625 = vmatpush.bf16.msra.mxu0 %v5001_v47  ;;  %v4981_v58 = vor.u32 %v6348_v56, %v4980_v55  ;;  %v6365_v55 = vld [vmem:[#allocation7 + $0xf4] sm:$0xf0]  ;;  %v5180_v56 = vld [vmem:[#allocation7 + $0x1e8] sm:$0xf] }
 0x12a   :  { %v1141_v17 = vmul.f32 0.125, %v1134_v5  ;;  %v1143_v18 = vmul.f32 %v7908_v62, %v7908_v62  ;;  %v5145_v34 = vor.u32 %v6386_v27, %v5142_v32  ;;  %v4964_v5 = vld [vmem:[#allocation7 + $0x40] sm:$0xf]  ;;  %v5077_v27 = vor.u32 %v6372_v20, %v5076_v19  ;;  %v5078_v32 = vld [vmem:[#allocation7 + $0x130] sm:$0xf0] }
 0x12b   :  { %v4965_v10 = vor.u32 %v6344_v6, %v4964_v5  ;;  %v6357_v19 = vld [vmem:[#allocation7 + $0xb4] sm:$0xf0]  ;;  %v5148_v20 = vld [vmem:[#allocation7 + $0x1a8] sm:$0xf] }
 0x12c   :  { %v1145_v38 = vsub.f32 %v1141_v17, %v1143_v18  ;;  %1637 = vmatpush.bf16.msra.mxu1 %v5145_v34  ;;  %v4948_v17 = vld [vmem:[#allocation7 + $0x20] sm:$0xf]  ;;  %v6340_v18 = vld [vmem:[#allocation7 + $0x2c] sm:$0xf0] }
 0x12d   :  { %1626 = vmatpush.bf16.msra.mxu0 %v4985_v1  ;;  %v4949_v26 = vor.u32 %v6340_v18, %v4948_v17  ;;  %v6336_v34 = vld [vmem:[#allocation7 + $0xc] sm:$0xf0]  ;;  %v5020_v18 = vld [vmem:[#allocation7 + $0xa8] sm:$0xf] }
 0x12e   :  { %v7917_v61 = vadd.f32 1e-05, %v1145_v38  ;;  %v5060_v38 = vld [vmem:[#allocation7 + $0x100] sm:$0xf] }
 0x130   :  { %vm1156_vm13 = vweird.f32 %v7917_v61 }
 0x133   :  { %v1056_v35 = vpop.f32.mrf.mxu0 }
 0x134   :  { %v1057_v36 = vadd.f32 %v1056_v35, %v1044_v33  ;;  %v1069_v37 = vpop.f32.mrf.mxu1  ;;  %v4996_v35 = vld [vmem:[#allocation7 + $0x80] sm:$0xf] }
 0x136   :  { %v7902_v39 = vadd.f32 %v1069_v37, %v1057_v36  ;;  %v6352_v36 = vld [vmem:[#allocation7 + $0x8c] sm:$0xf0]  ;;  %v5124_v37 = vld [vmem:[#allocation7 + $0x180] sm:$0xf] }
 0x137   :  { %v4997_v40 = vor.u32 %v6352_v36, %v4996_v35 }
 0x138   :  { %v4929_v41 = vmul.f32 -1.442695, %v7902_v39 }
 0x139   :  { %1599 = vmatpush.bf16.msrb.mxu2 %v4997_v40  ;;  %v6368_v40 = vld [vmem:[#allocation7 + $0x10c] sm:$0xf0] }
 0x13a   :  { %6671 = vpow2.f32 %v4929_v41  ;;  %v6384_v41 = vld [vmem:[#allocation7 + $0x18c] sm:$0xf0] }
 0x13b   :  { %v1058_v44 = vpop.f32.mrf.mxu0 }
 0x13c   :  { %v1071_v46 = vpop.f32.mrf.mxu1 }
 0x13d   :  { %v5125_v46 = vor.u32 %v6384_v41, %v5124_v37  ;;  %1600 = vmatpush.bf16.msrb.mxu2 %v4981_v58  ;;  %v6334_v41 = vld [vmem:[#allocation7 + $0x4] sm:$0xf] }
 0x13f   :  { %1612 = vmatpush.bf16.msrb.mxu3 %v5125_v46 }
 0x140   :  { %v6672_v49 = vpop.eup %6671 }
 0x141   :  { %v7905_v51 = vadd.f32 1.0, %v6672_v49  ;;  %v5126_v49 = vld [vmem:[#allocation7 + $0x190] sm:$0xf0]  ;;  %1601 = vmatpush.bf16.msrb.mxu2 %v4965_v10 }
 0x142   :  { %v5129_v52 = vor.u32 %v6382_v48, %v5126_v49  ;;  %v5061_v48 = vor.u32 %v6368_v40, %v5060_v38  ;;  %v5062_v49 = vld [vmem:[#allocation7 + $0x110] sm:$0xf0]  ;;  %v5132_v38 = vld [vmem:[#allocation7 + $0x188] sm:$0xf]  ;;  %v6385_v40 = vld [vmem:[#allocation7 + $0x194] sm:$0xf0] }
 0x143   :  { %6673 = vrcp.f32 %v7905_v51  ;;  %v1105_v29 = vand.u32 2147483647, %v7905_v51  ;;  %v1107_v30 = vand.u32 2147483648, %v7905_v51  ;;  %vm1101_vm5 = vweird.f32 %v7905_v51 }
 0x144   :  { %1638 = vmatpush.bf16.msra.mxu1 %v5129_v52  ;;  %6675 = vrsqrt.f32 %v7917_v61  ;;  %v4937_v52 = vor.u32 %v6334_v41, %v4934_v42  ;;  %v6351_v41 = vld [vmem:[#allocation7 + $0x8c] sm:$0xf]  ;;  %v5006_v42 = vld [vmem:[#allocation7 + $0x98] sm:$0xf0] }
 0x145   :  { %vm1106_vm7 = vcmp.eq.f32.partialorder %v1105_v29, 8.507059e+37  ;;  %v1108_v50 = vor.u32 1.1754944e-38, %v1107_v30  ;;  %v4950_v29 = vld [vmem:[#allocation7 + $0x30] sm:$0xf0]  ;;  %v6370_v30 = vld [vmem:[#allocation7 + $0x124] sm:$0xf]  ;;  %1602 = vmatpush.bf16.msrb.mxu2 %v4949_v26 }
 0x146   :  { %v4953_v31 = vor.u32 %v6338_v21, %v4950_v29  ;;  %v5081_v37 = vor.u32 %v6370_v30, %v5078_v32  ;;  %v5022_v26 = vld [vmem:[#allocation7 + $0xb8] sm:$0xf0]  ;;  %v6387_v29 = vld [vmem:[#allocation7 + $0x1ac] sm:$0xf] }
 0x147   :  { %v5150_v30 = vld [vmem:[#allocation7 + $0x1b8] sm:$0xf0] }
 0x148   :  { %1639 = vmatpush.bf16.msra.mxu1 %v5113_v4  ;;  %v5036_v4 = vld [vmem:[#allocation7 + $0xc8] sm:$0xf] }
 0x149   :  { %v6674_v54 = vpop.eup %6673 }
 0x14a   :  { %v1097_v45 = vmul.f32 %v6674_v54, %v7905_v51  ;;  %vm1102_vm4 = vweird.f32 %v6674_v54  ;;  %v6380_v51 = vld [vmem:[#allocation7 + $0x16c] sm:$0xf0] }
 0x14b   :  { %vm1103_vm6 = vmor %vm1101_vm5, %vm1102_vm4  ;;  %v5109_v0 = vor.u32 %v6380_v51, %v5108_v57  ;;  %v6397_v57 = vld [vmem:[#allocation7 + $0x1f4] sm:$0xf0] }
 0x14c   :  { %v1098_v22 = vsub.f32 1.0, %v1097_v45  ;;  %v5181_v28 = vor.u32 %v6397_v57, %v5180_v56  ;;  %v4988_v56 = vld [vmem:[#allocation7 + $0x68] sm:$0xf]  ;;  %v6349_v57 = vld [vmem:[#allocation7 + $0x74] sm:$0xf0] }
 0x14d   :  { %1613 = vmatpush.bf16.msrb.mxu3 %v5109_v0  ;;  %v5054_v0 = vld [vmem:[#allocation7 + $0xf8] sm:$0xf0] }
 0x14e   :  { %v1099_v33 = vmul.f32 %v6674_v54, %v1098_v22  ;;  %v5057_v1 = vor.u32 %v6363_v59, %v5054_v0 }
 0x150   :  { %v1100_v44 = vadd.f32 %v6674_v54, %v1099_v33  ;;  %v4932_v33 = vld [vmem:[#allocation7] sm:$0xf] }
 0x151   :  { %1614 = vmatpush.bf16.msrb.mxu3 %v5093_v12  ;;  %v4933_v47 = vor.u32 %v6336_v34, %v4932_v33  ;;  %v5038_v12 = vld [vmem:[#allocation7 + $0xd8] sm:$0xf0]  ;;  %v5004_v34 = vld [vmem:[#allocation7 + $0x88] sm:$0xf] }
 0x152   :  { %v1104_v53 = vsel %vm1103_vm6, %v6674_v54, %v1100_v44  ;;  %v6374_v54 = vld [vmem:[#allocation7 + $0x144] sm:$0xf] }
 0x153   :  { %v1109_v25 = vsel %vm1106_vm7, %v1108_v50, %v1104_v53  ;;  %v5097_v16 = vor.u32 %v6374_v54, %v5094_v14  ;;  %v5052_v50 = vld [vmem:[#allocation7 + $0xe8] sm:$0xf]  ;;  %v5065_v53 = vor.u32 %v6366_v43, %v5062_v49  ;;  %1603 = vmatpush.bf16.msrb.mxu2 %v4933_v47  ;;  %v6383_v43 = vld [vmem:[#allocation7 + $0x18c] sm:$0xf]  ;;  %v5133_v47 = vor.u32 %v6385_v40, %v5132_v38  ;;  %v6337_v40 = vld [vmem:[#allocation7 + $0x14] sm:$0xf0] }
 0x154   :  { %v7920_v63 = vmul.f32 %v1109_v25, %v7902_v39  ;;  %v6342_v39 = vld [vmem:[#allocation7 + $0x44] sm:$0xf]  ;;  %v5053_v51 = vor.u32 %v6365_v55, %v5052_v50  ;;  %v5009_v49 = vor.u32 %v6351_v41, %v5006_v42  ;;  %v4940_v38 = vld [vmem:[#allocation7 + $0x8] sm:$0xf] }
 0x155   :  { %v4969_v15 = vor.u32 %v6342_v39, %v4966_v60  ;;  %1640 = vmatpush.bf16.msra.mxu1 %v5097_v16  ;;  %1615 = vmatpush.bf16.msrb.mxu3 %v5077_v27  ;;  %v6359_v39 = vld [vmem:[#allocation7 + $0xcc] sm:$0xf]  ;;  %v5021_v27 = vor.u32 %v6357_v19, %v5020_v18  ;;  %v5068_v41 = vld [vmem:[#allocation7 + $0x108] sm:$0xf] }
 0x156   :  { %v1119_v8 = vrot.slane %v7920_v63, 4  ;;  %v1128_v9 = vmul.f32 %v7920_v63, %v7920_v63  ;;  %v5041_v16 = vor.u32 %v6359_v39, %v5038_v12  ;;  %v6377_v12 = vld [vmem:[#allocation7 + $0x154] sm:$0xf0] }
 0x157   :  { %1627 = vmatpush.bf16.msra.mxu0 %v4969_v15  ;;  %1648 = vmatpush.bf16.msra.mxu2 %v5053_v51  ;;  %v7931_v15 = vpop.eup %6675  ;;  %v6381_v51 = vld [vmem:[#allocation7 + $0x174] sm:$0xf0] }
 0x158   :  { %v1120_v45 = vadd.f32 %v1119_v8, %v7920_v63  ;;  %v1135_v13 = vrot.slane %v1128_v9, 4  ;;  %v6361_v8 = vld [vmem:[#allocation7 + $0xd4] sm:$0xf0]  ;;  %vm1157_vm12 = vweird.f32 %v7931_v15 }
 0x159   :  { %1641 = vmatpush.bf16.msra.mxu1 %v5081_v37  ;;  %1616 = vmatpush.bf16.msrb.mxu3 %v5061_v48  ;;  %v5037_v10 = vor.u32 %v6361_v8, %v5036_v4  ;;  %v5153_v37 = vor.u32 %v6387_v29, %v5150_v30  ;;  %v6345_v8 = vld [vmem:[#allocation7 + $0x54] sm:$0xf0]  ;;  %vm1158_vm14 = vmor %vm1156_vm13, %vm1157_vm12 }
 0x15a   :  { %v1121_v22 = vrot.slane %v1120_v45, 2  ;;  %v1136_v23 = vadd.f32 %v1135_v13, %v1128_v9  ;;  %v5164_v9 = vld [vmem:[#allocation7 + $0x1c8] sm:$0xf]  ;;  %v5166_v13 = vld [vmem:[#allocation7 + $0x1d8] sm:$0xf0] }
 0x15b   :  { %1628 = vmatpush.bf16.msra.mxu0 %v4953_v31  ;;  %v5165_v14 = vor.u32 %v6393_v11, %v5164_v9  ;;  %1649 = vmatpush.bf16.msra.mxu2 %v5037_v10  ;;  %v1151_v31 = vmul.f32 %v7931_v15, %v7917_v61  ;;  %v5100_v9 = vld [vmem:[#allocation7 + $0x148] sm:$0xf] }
 0x15c   :  { %v1122_v35 = vadd.f32 %v1121_v22, %v1120_v45  ;;  %v1137_v36 = vrot.slane %v1136_v23, 2  ;;  %v6391_v45 = vld [vmem:[#allocation7 + $0x1cc] sm:$0xf]  ;;  %v6389_v22 = vld [vmem:[#allocation7 + $0x1b4] sm:$0xf0] }
 0x15d   :  { %1642 = vmatpush.bf16.msra.mxu1 %v5065_v53  ;;  %1661 = vmatpush.bf16.msra.mxu3 %v5181_v28  ;;  %v5169_v17 = vor.u32 %v6391_v45, %v5166_v13  ;;  %v5149_v33 = vor.u32 %v6389_v22, %v5148_v20  ;;  %v1152_v48 = vmul.f32 %v7931_v15, %v1151_v31  ;;  %v6347_v28 = vld [vmem:[#allocation7 + $0x6c] sm:$0xf]  ;;  %v5102_v13 = vld [vmem:[#allocation7 + $0x158] sm:$0xf0]  ;;  %v4956_v20 = vld [vmem:[#allocation7 + $0x28] sm:$0xf] }
 0x15e   :  { %v1123_v44 = vrot.slane %v1122_v35, 1  ;;  %v1138_v46 = vadd.f32 %v1137_v36, %v1136_v23  ;;  %v6355_v23 = vld [vmem:[#allocation7 + $0xac] sm:$0xf] }
 0x15f   :  { %1629 = vmatpush.bf16.msra.mxu0 %v4937_v52  ;;  %v5025_v36 = vor.u32 %v6355_v23, %v5022_v26  ;;  %1650 = vmatpush.bf16.msra.mxu2 %v5021_v27  ;;  %v1153_v53 = vmul.f32 0.5, %v1152_v48  ;;  %v6375_v45 = vld [vmem:[#allocation7 + $0x14c] sm:$0xf]  ;;  %v5084_v23 = vld [vmem:[#allocation7 + $0x128] sm:$0xf]  ;;  %v4941_v48 = vor.u32 %v6337_v40, %v4940_v38 }
 0x160   :  { %v1124_v25 = vadd.f32 %v1123_v44, %v1122_v35  ;;  %v1139_v58 = vrot.slane %v1138_v46, 1  ;;  %v6353_v35 = vld [vmem:[#allocation7 + $0x94] sm:$0xf0]  ;;  %v5134_v44 = vld [vmem:[#allocation7 + $0x198] sm:$0xf0]  ;;  %v5105_v19 = vor.u32 %v6375_v45, %v5102_v13 }
 0x161   :  { %1687 = vmatpush.bf16.msrb.mxu1 %v5185_v7  ;;  %1662 = vmatpush.bf16.msra.mxu3 %v5165_v14  ;;  %v5137_v50 = vor.u32 %v6383_v43, %v5134_v44  ;;  %v4972_v7 = vld [vmem:[#allocation7 + $0x48] sm:$0xf]  ;;  %v1154_v11 = vsub.f32 1.5, %v1153_v53  ;;  %v4974_v14 = vld [vmem:[#allocation7 + $0x58] sm:$0xf0] }
 0x162   :  { %v7927_v5 = vmul.f32 0.125, %v1124_v25  ;;  %v1140_v6 = vadd.f32 %v1139_v58, %v1138_v46  ;;  %v5005_v46 = vor.u32 %v6353_v35, %v5004_v34  ;;  %v5116_v25 = vld [vmem:[#allocation7 + $0x168] sm:$0xf]  ;;  %v4989_v58 = vor.u32 %v6349_v57, %v4988_v56  ;;  %v6373_v26 = vld [vmem:[#allocation7 + $0x134] sm:$0xf0] }
 0x163   :  { %1674 = vmatpush.bf16.msrb.mxu0 %v5057_v1  ;;  %v5117_v0 = vor.u32 %v6381_v51, %v5116_v25  ;;  %v4990_v1 = vld [vmem:[#allocation7 + $0x78] sm:$0xf0]  ;;  %v4973_v39 = vor.u32 %v6345_v8, %v4972_v7  ;;  %v6339_v27 = vld [vmem:[#allocation7 + $0x2c] sm:$0xf]  ;;  %v1155_v29 = vmul.f32 %v7931_v15, %v1154_v11  ;;  %v5085_v31 = vor.u32 %v6373_v26, %v5084_v23  ;;  %v6369_v43 = vld [vmem:[#allocation7 + $0x114] sm:$0xf0] }
 0x164   :  { %v1142_v60 = vmul.f32 0.125, %v1140_v6  ;;  %v1144_v54 = vmul.f32 %v7927_v5, %v7927_v5  ;;  %1651 = vmatpush.bf16.msra.mxu2 %v5005_v46  ;;  %v4993_v4 = vor.u32 %v6347_v28, %v4990_v1  ;;  %v5121_v6 = vor.u32 %v6379_v2, %v5118_v3  ;;  %v5086_v34 = vld [vmem:[#allocation7 + $0x138] sm:$0xf0]  ;;  %v6335_v44 = vld [vmem:[#allocation7 + $0xc] sm:$0xf] }
 0x165   :  { %1688 = vmatpush.bf16.msrb.mxu1 %v5169_v17  ;;  %1663 = vmatpush.bf16.msra.mxu3 %v5149_v33  ;;  %v6371_v33 = vld [vmem:[#allocation7 + $0x12c] sm:$0xf]  ;;  %v1147_v35 = vld [vmem:[#allocation2] sm:$0x3]  ;;  %v1159_v53 = vsel %vm1158_vm14, %v7931_v15, %v1155_v29  ;;  %v1177_v28 = vld [vmem:[#allocation5] sm:$0x3] }
 0x166   :  { %v1146_v21 = vsub.f32 %v1142_v60, %v1144_v54  ;;  %v6343_v60 = vld [vmem:[#allocation7 + $0x4c] sm:$0xf]  ;;  %v5101_v54 = vor.u32 %v6377_v12, %v5100_v9  ;;  %v4942_v46 = vld [vmem:[#allocation7 + $0x18] sm:$0xf0] }
 0x167   :  { %1675 = vmatpush.bf16.msrb.mxu0 %v5041_v16  ;;  %v4977_v18 = vor.u32 %v6343_v60, %v4974_v14 }
 0x168   :  { %v7935_v32 = vadd.f32 1e-05, %v1146_v21  ;;  %1652 = vmatpush.bf16.msra.mxu2 %v4989_v58  ;;  %v6341_v21 = vld [vmem:[#allocation7 + $0x34] sm:$0xf0] }
 0x169   :  { %1689 = vmatpush.bf16.msrb.mxu1 %v5153_v37  ;;  %1664 = vmatpush.bf16.msra.mxu3 %v5133_v47  ;;  %v4957_v22 = vor.u32 %v6341_v21, %v4956_v20  ;;  %v5089_v37 = vor.u32 %v6371_v33, %v5086_v34 }
 0x16a   :  { %6677 = vrsqrt.f32 %v7935_v32  ;;  %vm1166_vm9 = vweird.f32 %v7935_v32 }
 0x16b   :  { %1676 = vmatpush.bf16.msrb.mxu0 %v5025_v36 }
 0x16c   :  { %1653 = vmatpush.bf16.msra.mxu2 %v4973_v39 }
 0x16d   :  { %1690 = vmatpush.bf16.msrb.mxu1 %v5137_v50  ;;  %1665 = vmatpush.bf16.msra.mxu3 %v5117_v0  ;;  %v5070_v50 = vld [vmem:[#allocation7 + $0x118] sm:$0xf0] }
 0x16f   :  { %1677 = vmatpush.bf16.msrb.mxu0 %v5009_v49  ;;  %v6367_v49 = vld [vmem:[#allocation7 + $0x10c] sm:$0xf] }
 0x170   :  { %v7939_v52 = vpop.eup %6677  ;;  %1654 = vmatpush.bf16.msra.mxu2 %v4957_v22  ;;  %v5073_v56 = vor.u32 %v6367_v49, %v5070_v50 }
 0x171   :  { %v1161_v55 = vmul.f32 %v7939_v52, %v7935_v32  ;;  %vm1167_vm8 = vweird.f32 %v7939_v52  ;;  %1691 = vmatpush.bf16.msrb.mxu1 %v5121_v6  ;;  %1666 = vmatpush.bf16.msra.mxu3 %v5101_v54  ;;  %v4958_v32 = vld [vmem:[#allocation7 + $0x38] sm:$0xf0] }
 0x172   :  { %vm7948_vm10 = vmor %vm1166_vm9, %vm1167_vm8  ;;  %v4961_v36 = vor.u32 %v6339_v27, %v4958_v32 }
 0x173   :  { %v1162_v59 = vmul.f32 %v7939_v52, %v1161_v55  ;;  %1678 = vmatpush.bf16.msrb.mxu0 %v4993_v4  ;;  %v5069_v55 = vor.u32 %v6369_v43, %v5068_v41 }
 0x174   :  { %1655 = vmatpush.bf16.msra.mxu2 %v4941_v48 }
 0x175   :  { %v1163_v10 = vmul.f32 0.5, %v1162_v59  ;;  %1692 = vmatpush.bf16.msrb.mxu1 %v5105_v19  ;;  %1667 = vmatpush.bf16.msra.mxu3 %v5085_v31 }
 0x177   :  { %v1164_v16 = vsub.f32 1.5, %v1163_v10  ;;  %1679 = vmatpush.bf16.msrb.mxu0 %v4977_v18 }
 0x179   :  { %v1165_v30 = vmul.f32 %v7939_v52, %v1164_v16  ;;  %1693 = vmatpush.bf16.msrb.mxu1 %v5089_v37  ;;  %1668 = vmatpush.bf16.msra.mxu3 %v5069_v55  ;;  %v5304_v55 = vld [vmem:[#allocation10 + $0xe0] sm:$0xf] }
 0x17b   :  { %v1169_v42 = vsel %vm7948_vm10, %v7939_v52, %v1165_v30  ;;  %1680 = vmatpush.bf16.msrb.mxu0 %v4961_v36  ;;  %v4945_v52 = vor.u32 %v6335_v44, %v4942_v46 }
 0x17c   :  { %v1172_v47 = vrot.slane %v1169_v42, 7 }
 0x17d   :  { %1694 = vmatpush.bf16.msrb.mxu1 %v5073_v56 }
 0x17e   :  { %v1174_v61 = vsel %vm1173_vm11, %v1159_v53, %v1172_v47 }
 0x17f   :  { %v1176_v57 = vmul.f32 %v1174_v61, %v1147_v35  ;;  %1681 = vmatpush.bf16.msrb.mxu0 %v4945_v52  ;;  %v6428_v61 = vld [vmem:[#allocation10 + $0xec] sm:$0xf0]  ;;  %v5432_v52 = vld [vmem:[#allocation10 + $0x1e0] sm:$0xf] }
 0x181   :  { %v1179_v25 = vperm.slane %v1176_v57, 0  ;;  %v1180_v58 = vperm.slane %v1176_v57, 1  ;;  %v5305_v57 = vor.u32 %v6428_v61, %v5304_v55 }
 0x183   :  { %v1184_v51 = vmul.f32 %v1180_v58, %v7927_v5  ;;  %v1183_v15 = vmul.f32 %v1179_v25, %v7908_v62  ;;  %v1191_v2 = vmul.f32 %v1179_v25, %v7896_v24  ;;  %v1192_v4 = vmul.f32 %v1180_v58, %v7920_v63  ;;  %v1266_v24 = vld [vmem:[%s8463_s6] sm:$0xf]  ;;  %v6460_v25 = vld [vmem:[#allocation10 + $0x1ec] sm:$0xf0]  ;;  %v5560_v58 = vld [vmem:[#allocation10 + $0x2e0] sm:$0xf] }
 0x184   :  { %v1269_v62 = vperm.slane %v1266_v24, 1  ;;  %v1268_v39 = vperm.slane %v1266_v24, 0  ;;  %v1271_v22 = vperm.slane %v1266_v24, 3  ;;  %v1270_v31 = vperm.slane %v1266_v24, 2 }
 0x185   :  { %v1187_v59 = vrot.slane %v1184_v51, 7  ;;  %v6492_v51 = vld [vmem:[#allocation10 + $0x2ec] sm:$0xf0] }
 0x187   :  { %v1188_v0 = vsel %vm1173_vm11, %v1183_v15, %v1187_v59 }
 0x188   :  { %v1190_v1 = vsub.f32 %v1177_v28, %v1188_v0 }
 0x18a   :  { %v1194_v3 = vperm.slane %v1190_v1, 0  ;;  %v1195_v6 = vperm.slane %v1190_v1, 1  ;;  %v5433_v1 = vor.u32 %v6460_v25, %v5432_v52 }
 0x18c   :  { %v1198_v7 = vadd.f32 %v1194_v3, %v1191_v2  ;;  %v1199_v8 = vadd.f32 %v1195_v6, %v1192_v4  ;;  %v5561_v2 = vor.u32 %v6492_v51, %v5560_v58  ;;  %v5688_v3 = vld [vmem:[#allocation10 + $0x3e0] sm:$0xf]  ;;  %v6524_v4 = vld [vmem:[#allocation10 + $0x3ec] sm:$0xf0] }
 0x18e   :  { %v1200_v9 = vpack.c.bf16 %v1198_v7, %v1198_v7  ;;  %v1201_v10 = vpack.c.bf16 %v1199_v8, %v1199_v8 }
 0x190   :  { %1604 = vmatmul.bf16.vlgmr.msrb.gmra.mxu2 %v1200_v9  ;;  %1617 = vmatmul.bf16.vlgmr.msrb.gmra.mxu3 %v1201_v10 }
 0x191   :  { %1630 = vmatmul.bf16.vlgmr.msra.gmra.mxu0 %v1200_v9  ;;  %1643 = vmatmul.bf16.vlgmr.msra.gmra.mxu1 %v1201_v10 }
 0x192   :  { %2732 = vmatpush.bf16.msrb.mxu2 %v5305_v57  ;;  %2745 = vmatpush.bf16.msrb.mxu3 %v5433_v1  ;;  %v6516_v57 = vld [vmem:[#allocation10 + $0x3ac] sm:$0xf0] }
 0x193   :  { %2758 = vmatpush.bf16.msra.mxu0 %v5561_v2 }
 0x1a0   :  { %1656 = vmatmul.bf16.vlgmr.msra.gmra.mxu2 %v1200_v9  ;;  %1669 = vmatmul.bf16.vlgmr.msra.gmra.mxu3 %v1201_v10 }
 0x1a1   :  { %1682 = vmatmul.bf16.vlgmr.msrb.gmra.mxu0 %v1200_v9  ;;  %1695 = vmatmul.bf16.vlgmr.msrb.gmra.mxu1 %v1201_v10  ;;  %v5689_v9 = vor.u32 %v6524_v4, %v5688_v3 }
 0x1a3   :  { %2771 = vmatpush.bf16.msra.mxu1 %v5689_v9  ;;  %v6448_v9 = vld [vmem:[#allocation10 + $0x18c] sm:$0xf0] }
 0x20e   :  { %v1631_v5 = vpop.f32.mrf.mxu0  ;;  %v1644_v63 = vpop.f32.mrf.mxu1 }
 0x20f   :  { %v1632_v11 = vadd.f32 %v1631_v5, %v1269_v62  ;;  %v5288_v62 = vld [vmem:[#allocation10 + $0xc0] sm:$0xf]  ;;  %v6424_v5 = vld [vmem:[#allocation10 + $0xcc] sm:$0xf0] }
 0x211   :  { %v7971_v12 = vadd.f32 %v1644_v63, %v1632_v11 }
 0x213   :  { %v5187_v60 = vmul.f32 -1.442695, %v7971_v12  ;;  %v1605_v54 = vpop.f32.mrf.mxu2  ;;  %v1618_v14 = vpop.f32.mrf.mxu3 }
 0x214   :  { %v1606_v45 = vadd.f32 %v1605_v54, %v1268_v39  ;;  %v5289_v39 = vor.u32 %v6424_v5, %v5288_v62  ;;  %v6456_v54 = vld [vmem:[#allocation10 + $0x1cc] sm:$0xf0] }
 0x215   :  { %6679 = vpow2.f32 %v5187_v60  ;;  %v5416_v60 = vld [vmem:[#allocation10 + $0x1c0] sm:$0xf] }
 0x216   :  { %v7974_v13 = vadd.f32 %v1618_v14, %v1606_v45  ;;  %v1633_v16 = vpop.f32.mrf.mxu0  ;;  %v1646_v17 = vpop.f32.mrf.mxu1  ;;  %v5544_v14 = vld [vmem:[#allocation10 + $0x2c0] sm:$0xf]  ;;  %2733 = vmatpush.bf16.msrb.mxu2 %v5289_v39 }
 0x217   :  { %v5512_v39 = vld [vmem:[#allocation10 + $0x280] sm:$0xf] }
 0x218   :  { %v5186_v18 = vmul.f32 -1.442695, %v7974_v13 }
 0x21a   :  { %6681 = vpow2.f32 %v5186_v18  ;;  %v6488_v18 = vld [vmem:[#allocation10 + $0x2cc] sm:$0xf0] }
 0x21b   :  { %v6680_v19 = vpop.eup %6679  ;;  %v1607_v20 = vpop.f32.mrf.mxu2 }
 0x21c   :  { %v1620_v21 = vpop.f32.mrf.mxu3  ;;  %v1713_v23 = vadd.f32 1.0, %v6680_v19  ;;  %v5672_v19 = vld [vmem:[#allocation10 + $0x3c0] sm:$0xf] }
 0x21e   :  { %6683 = vrcp.f32 %v1713_v23  ;;  %v1683_v26 = vpop.f32.mrf.mxu0  ;;  %v1696_v27 = vpop.f32.mrf.mxu1  ;;  %v1740_v46 = vand.u32 2147483647, %v1713_v23  ;;  %v1742_v47 = vand.u32 2147483648, %v1713_v23  ;;  %vm1736_vm0 = vweird.f32 %v1713_v23 }
 0x21f   :  { %v1684_v29 = vadd.f32 %v1683_v26, %v1271_v22  ;;  %v5545_v26 = vor.u32 %v6488_v18, %v5544_v14  ;;  %v5640_v18 = vld [vmem:[#allocation10 + $0x380] sm:$0xf] }
 0x220   :  { %v6682_v30 = vpop.eup %6681  ;;  %v1743_v7 = vor.u32 1.1754944e-38, %v1742_v47  ;;  %vm1741_vm2 = vcmp.eq.f32.partialorder %v1740_v46, 8.507059e+37 }
 0x221   :  { %v7977_v32 = vadd.f32 1.0, %v6682_v30  ;;  %v7979_v33 = vadd.f32 %v1696_v27, %v1684_v29  ;;  %v6520_v27 = vld [vmem:[#allocation10 + $0x3cc] sm:$0xf0]  ;;  %2759 = vmatpush.bf16.msra.mxu0 %v5545_v26 }
 0x222   :  { %v6412_v26 = vld [vmem:[#allocation10 + $0x6c] sm:$0xf0] }
 0x223   :  { %6685 = vrcp.f32 %v7977_v32  ;;  %v1657_v34 = vpop.f32.mrf.mxu2  ;;  %v5189_v37 = vmul.f32 -1.442695, %v7979_v33  ;;  %v1725_v48 = vand.u32 2147483647, %v7977_v32  ;;  %v1727_v15 = vand.u32 2147483648, %v7977_v32 }
 0x224   :  { %v1670_v35 = vpop.f32.mrf.mxu3  ;;  %v6684_v36 = vpop.eup %6683  ;;  %v1658_v38 = vadd.f32 %v1657_v34, %v1270_v31  ;;  %vm1721_vm3 = vweird.f32 %v7977_v32 }
 0x225   :  { %v1732_v40 = vmul.f32 %v6684_v36, %v1713_v23  ;;  %6687 = vpow2.f32 %v5189_v37  ;;  %vm1737_vm15 = vweird.f32 %v6684_v36  ;;  %vm8002_vm5 = vcmp.eq.f32.partialorder %v1725_v48, 8.507059e+37  ;;  %v6420_v37 = vld [vmem:[#allocation10 + $0xac] sm:$0xf0] }
 0x226   :  { %v7983_v41 = vadd.f32 %v1670_v35, %v1658_v38  ;;  %v1685_v42 = vpop.f32.mrf.mxu0  ;;  %v1698_v43 = vpop.f32.mrf.mxu1  ;;  %vm1738_vm1 = vmor %vm1736_vm0, %vm1737_vm15  ;;  %v1728_v17 = vor.u32 1.1754944e-38, %v1727_v15  ;;  %v5417_v23 = vor.u32 %v6456_v54, %v5416_v60  ;;  %v5673_v35 = vor.u32 %v6520_v27, %v5672_v19  ;;  %v5400_v38 = vld [vmem:[#allocation10 + $0x1a0] sm:$0xf]  ;;  %v6480_v60 = vld [vmem:[#allocation10 + $0x28c] sm:$0xf0] }
 0x227   :  { %v1733_v44 = vsub.f32 1.0, %v1732_v40  ;;  %v5256_v15 = vld [vmem:[#allocation10 + $0x80] sm:$0xf]  ;;  %v6512_v19 = vld [vmem:[#allocation10 + $0x38c] sm:$0xf0] }
 0x228   :  { %v5188_v49 = vmul.f32 -1.442695, %v7983_v41  ;;  %2746 = vmatpush.bf16.msrb.mxu3 %v5417_v23  ;;  %2772 = vmatpush.bf16.msra.mxu1 %v5673_v35  ;;  %v5240_v23 = vld [vmem:[#allocation10 + $0x60] sm:$0xf] }
 0x229   :  { %v7987_v50 = vpop.eup %6685  ;;  %v1734_v53 = vmul.f32 %v6684_v36, %v1733_v44  ;;  %v5528_v44 = vld [vmem:[#allocation10 + $0x2a0] sm:$0xf] }
 0x22a   :  { %v1717_v56 = vmul.f32 %v7987_v50, %v7977_v32  ;;  %6689 = vpow2.f32 %v5188_v49  ;;  %vm1722_vm4 = vweird.f32 %v7987_v50  ;;  %v6452_v32 = vld [vmem:[#allocation10 + $0x1ac] sm:$0xf0]  ;;  %v5368_v35 = vld [vmem:[#allocation10 + $0x160] sm:$0xf] }
 0x22b   :  { %v1735_v28 = vadd.f32 %v6684_v36, %v1734_v53  ;;  %v1659_v59 = vpop.f32.mrf.mxu2  ;;  %v6688_v6 = vpop.eup %6687  ;;  %vm1723_vm6 = vmor %vm1721_vm3, %vm1722_vm4  ;;  %v6484_v49 = vld [vmem:[#allocation10 + $0x2ac] sm:$0xf0]  ;;  %v5401_v52 = vor.u32 %v6452_v32, %v5400_v38 }
 0x22c   :  { %v1672_v0 = vpop.f32.mrf.mxu3  ;;  %v1718_v8 = vsub.f32 1.0, %v1717_v56  ;;  %v7995_v24 = vadd.f32 1.0, %v6688_v6  ;;  %v5656_v56 = vld [vmem:[#allocation10 + $0x3a0] sm:$0xf]  ;;  %v6416_v59 = vld [vmem:[#allocation10 + $0x8c] sm:$0xf0] }
 0x22d   :  { %v1739_v10 = vsel %vm1738_vm1, %v6684_v36, %v1735_v28  ;;  %v5272_v36 = vld [vmem:[#allocation10 + $0xa0] sm:$0xf]  ;;  %2747 = vmatpush.bf16.msrb.mxu3 %v5401_v52  ;;  %v6476_v32 = vld [vmem:[#allocation10 + $0x26c] sm:$0xf0] }
 0x22e   :  { %v1744_v63 = vsel %vm1741_vm2, %v1743_v7, %v1739_v10  ;;  %v1719_v11 = vmul.f32 %v7987_v50, %v1718_v8  ;;  %6691 = vrcp.f32 %v7995_v24  ;;  %v1770_v22 = vand.u32 2147483647, %v7995_v24  ;;  %v5384_v8 = vld [vmem:[#allocation10 + $0x180] sm:$0xf] }
 0x22f   :  { %v8000_v45 = vmul.f32 %v1744_v63, %v7971_v12  ;;  %v1772_v30 = vand.u32 2147483648, %v7995_v24  ;;  %vm1766_vm7 = vweird.f32 %v7995_v24  ;;  %v5273_v61 = vor.u32 %v6420_v37, %v5272_v36  ;;  %v6444_v36 = vld [vmem:[#allocation10 + $0x16c] sm:$0xf0] }
 0x230   :  { %v6690_v20 = vpop.eup %6689  ;;  %v1720_v21 = vadd.f32 %v7987_v50, %v1719_v11  ;;  %vm8037_vm8 = vcmp.eq.f32.partialorder %v1770_v22, 8.507059e+37  ;;  %v5529_v7 = vor.u32 %v6484_v49, %v5528_v44  ;;  %v5657_v63 = vor.u32 %v6516_v57, %v5656_v56  ;;  %v5224_v57 = vld [vmem:[#allocation10 + $0x40] sm:$0xf] }
 0x231   :  { %v1786_v12 = vrot.slane %v8000_v45, 4  ;;  %v1809_v29 = vmul.f32 %v8000_v45, %v8000_v45  ;;  %v8017_v31 = vadd.f32 1.0, %v6690_v20  ;;  %v1773_v28 = vor.u32 1.1754944e-38, %v1772_v30  ;;  %2734 = vmatpush.bf16.msrb.mxu2 %v5273_v61 }
 0x232   :  { %v1724_v34 = vsel %vm1723_vm6, %v7987_v50, %v1720_v21  ;;  %v5257_v11 = vor.u32 %v6416_v59, %v5256_v15  ;;  %2760 = vmatpush.bf16.msra.mxu0 %v5529_v7  ;;  %2773 = vmatpush.bf16.msra.mxu1 %v5657_v63  ;;  %v5385_v22 = vor.u32 %v6448_v9, %v5384_v8  ;;  %v5352_v59 = vld [vmem:[#allocation10 + $0x140] sm:$0xf] }
 0x233   :  { %v1787_v40 = vadd.f32 %v1786_v12, %v8000_v45  ;;  %v1818_v42 = vrot.slane %v1809_v29, 4  ;;  %v1729_v43 = vsel %vm8002_vm5, %v1728_v17, %v1724_v34  ;;  %6693 = vrcp.f32 %v8017_v31  ;;  %v6400_v34 = vld [vmem:[#allocation10 + $0xc] sm:$0xf0] }
 0x234   :  { %v8025_v46 = vmul.f32 %v1729_v43, %v7974_v13  ;;  %v1755_v47 = vand.u32 2147483647, %v8017_v31  ;;  %v1757_v48 = vand.u32 2147483648, %v8017_v31  ;;  %v8030_v50 = vpop.eup %6691  ;;  %vm1751_vm10 = vweird.f32 %v8017_v31  ;;  %2748 = vmatpush.bf16.msrb.mxu3 %v5385_v22  ;;  %v5496_v43 = vld [vmem:[#allocation10 + $0x260] sm:$0xf] }
 0x235   :  { %v1788_v53 = vrot.slane %v1787_v40, 2  ;;  %v1819_v55 = vadd.f32 %v1818_v42, %v1809_v29  ;;  %v1762_v58 = vmul.f32 %v8030_v50, %v7995_v24  ;;  %vm1767_vm9 = vweird.f32 %v8030_v50  ;;  %2735 = vmatpush.bf16.msrb.mxu2 %v5257_v11 }
 0x236   :  { %v1780_v25 = vrot.slane %v8025_v46, 4  ;;  %v1808_v13 = vmul.f32 %v8025_v46, %v8025_v46  ;;  %v8042_v2 = vor.u32 1.1754944e-38, %v1757_v48  ;;  %vm8053_vm13 = vcmp.eq.f32.partialorder %v1755_v47, 8.507059e+37  ;;  %vm1768_vm14 = vmor %vm1766_vm7, %vm1767_vm9 }
 0x237   :  { %v1789_v0 = vadd.f32 %v1788_v53, %v1787_v40  ;;  %v1820_v1 = vrot.slane %v1819_v55, 2  ;;  %v1763_v6 = vsub.f32 1.0, %v1762_v58  ;;  %v5513_v40 = vor.u32 %v6480_v60, %v5512_v39  ;;  %v5624_v53 = vld [vmem:[#allocation10 + $0x360] sm:$0xf]  ;;  %v6504_v60 = vld [vmem:[#allocation10 + $0x34c] sm:$0xf0] }
 0x238   :  { %v1781_v3 = vadd.f32 %v1780_v25, %v8025_v46  ;;  %v1812_v4 = vrot.slane %v1808_v13, 4  ;;  %v5641_v42 = vor.u32 %v6512_v19, %v5640_v18  ;;  %v5241_v56 = vor.u32 %v6412_v26, %v5240_v23  ;;  %v6408_v25 = vld [vmem:[#allocation10 + $0x4c] sm:$0xf0]  ;;  %v5336_v19 = vld [vmem:[#allocation10 + $0x120] sm:$0xf] }
 0x239   :  { %v8045_v10 = vpop.eup %6693  ;;  %v1790_v62 = vrot.slane %v1789_v0, 1  ;;  %v1821_v5 = vadd.f32 %v1820_v1, %v1819_v55  ;;  %v1764_v16 = vmul.f32 %v8030_v50, %v1763_v6  ;;  %v6508_v55 = vld [vmem:[#allocation10 + $0x36c] sm:$0xf0]  ;;  %2761 = vmatpush.bf16.msra.mxu0 %v5513_v40  ;;  %v5225_v11 = vor.u32 %v6408_v25, %v5224_v57  ;;  %v5464_v23 = vld [vmem:[#allocation10 + $0x220] sm:$0xf] }
 0x23a   :  { %v1782_v54 = vrot.slane %v1781_v3, 2  ;;  %v1813_v14 = vadd.f32 %v1812_v4, %v1808_v13  ;;  %v1747_v17 = vmul.f32 %v8045_v10, %v8017_v31  ;;  %vm1752_vm12 = vweird.f32 %v8045_v10  ;;  %2774 = vmatpush.bf16.msra.mxu1 %v5641_v42  ;;  %2736 = vmatpush.bf16.msrb.mxu2 %v5241_v56  ;;  %v6468_v26 = vld [vmem:[#allocation10 + $0x22c] sm:$0xf0] }
 0x23b   :  { %v1791_v20 = vadd.f32 %v1790_v62, %v1789_v0  ;;  %v1822_v21 = vrot.slane %v1821_v5, 1  ;;  %v1765_v29 = vadd.f32 %v8030_v50, %v1764_v16  ;;  %v6440_v0 = vld [vmem:[#allocation10 + $0x14c] sm:$0xf0]  ;;  %v5497_v4 = vor.u32 %v6476_v32, %v5496_v43  ;;  %vm8082_vm15 = vmor %vm1751_vm10, %vm1752_vm12  ;;  %v5192_v43 = vld [vmem:[#allocation10] sm:$0xf] }
 0x23c   :  { %v1783_v27 = vadd.f32 %v1782_v54, %v1781_v3  ;;  %v1814_v12 = vrot.slane %v1813_v14, 2  ;;  %v1748_v30 = vsub.f32 1.0, %v1747_v17  ;;  %v5369_v3 = vor.u32 %v6444_v36, %v5368_v35  ;;  %v6472_v62 = vld [vmem:[#allocation10 + $0x24c] sm:$0xf0]  ;;  %v5208_v54 = vld [vmem:[#allocation10 + $0x20] sm:$0xf] }
 0x23d   :  { %v8057_v37 = vmul.f32 0.125, %v1791_v20  ;;  %v1823_v38 = vadd.f32 %v1822_v21, %v1821_v5  ;;  %v1769_v48 = vsel %vm1768_vm14, %v8030_v50, %v1765_v29  ;;  %v5625_v51 = vor.u32 %v6508_v55, %v5624_v53  ;;  %v5608_v5 = vld [vmem:[#allocation10 + $0x340] sm:$0xf]  ;;  %2762 = vmatpush.bf16.msra.mxu0 %v5497_v4  ;;  %v6436_v20 = vld [vmem:[#allocation10 + $0x12c] sm:$0xf0] }
 0x23e   :  { %v1784_v44 = vrot.slane %v1783_v27, 1  ;;  %v1815_v47 = vadd.f32 %v1814_v12, %v1813_v14  ;;  %v1749_v49 = vmul.f32 %v8045_v10, %v1748_v30  ;;  %v1774_v24 = vsel %vm8037_vm8, %v1773_v28, %v1769_v48  ;;  %v5480_v28 = vld [vmem:[#allocation10 + $0x240] sm:$0xf]  ;;  %2749 = vmatpush.bf16.msrb.mxu3 %v5369_v3  ;;  %v6404_v14 = vld [vmem:[#allocation10 + $0x2c] sm:$0xf0]  ;;  %2737 = vmatpush.bf16.msrb.mxu2 %v5225_v11 }
 0x23f   :  { %v1837_v61 = vmul.f32 0.125, %v1823_v38  ;;  %v1841_v52 = vmul.f32 %v8057_v37, %v8057_v37  ;;  %v8070_v50 = vmul.f32 %v1774_v24, %v7979_v33  ;;  %v5353_v39 = vor.u32 %v6440_v0, %v5352_v59  ;;  %2775 = vmatpush.bf16.msra.mxu1 %v5625_v51  ;;  %v5592_v35 = vld [vmem:[#allocation10 + $0x320] sm:$0xf]  ;;  %v6500_v36 = vld [vmem:[#allocation10 + $0x32c] sm:$0xf0] }
 0x240   :  { %v1785_v13 = vadd.f32 %v1784_v44, %v1783_v27  ;;  %v1816_v58 = vrot.slane %v1815_v47, 1  ;;  %v1750_v15 = vadd.f32 %v8045_v10, %v1749_v49  ;;  %v5481_v22 = vor.u32 %v6472_v62, %v5480_v28  ;;  %v6432_v48 = vld [vmem:[#allocation10 + $0x10c] sm:$0xf0]  ;;  %v5448_v49 = vld [vmem:[#allocation10 + $0x200] sm:$0xf] }
 0x241   :  { %v1845_v1 = vsub.f32 %v1837_v61, %v1841_v52  ;;  %v1798_v8 = vrot.slane %v8070_v50, 4  ;;  %v1811_v9 = vmul.f32 %v8070_v50, %v8070_v50  ;;  %v5609_v38 = vor.u32 %v6504_v60, %v5608_v5  ;;  %v6464_v52 = vld [vmem:[#allocation10 + $0x20c] sm:$0xf0]  ;;  %v5576_v24 = vld [vmem:[#allocation10 + $0x300] sm:$0xf] }
 0x242   :  { %v8073_v6 = vmul.f32 0.125, %v1785_v13  ;;  %v1817_v7 = vadd.f32 %v1816_v58, %v1815_v47  ;;  %v1754_v63 = vsel %vm8082_vm15, %v8045_v10, %v1750_v15  ;;  %2750 = vmatpush.bf16.msrb.mxu3 %v5353_v39  ;;  %2763 = vmatpush.bf16.msra.mxu0 %v5481_v22  ;;  %v5209_v40 = vor.u32 %v6404_v14, %v5208_v54  ;;  %v6496_v25 = vld [vmem:[#allocation10 + $0x30c] sm:$0xf0]  ;;  %v6426_v13 = vld [vmem:[#allocation10 + $0xe4] sm:$0xf] }
 0x243   :  { %v1799_v17 = vadd.f32 %v1798_v8, %v8070_v50  ;;  %v1830_v18 = vrot.slane %v1811_v9, 4  ;;  %v8092_v21 = vadd.f32 1e-05, %v1845_v1  ;;  %v1759_v10 = vsel %vm8053_vm13, %v8042_v2, %v1754_v63  ;;  %v5320_v2 = vld [vmem:[#allocation10 + $0x100] sm:$0xf]  ;;  %2776 = vmatpush.bf16.msra.mxu1 %v5609_v38 }
 0x244   :  { %v1836_v16 = vmul.f32 0.125, %v1817_v7  ;;  %v1840_v31 = vmul.f32 %v8073_v6, %v8073_v6  ;;  %v8098_v30 = vmul.f32 %v1759_v10, %v7983_v41  ;;  %v5337_v42 = vor.u32 %v6436_v20, %v5336_v19  ;;  %2738 = vmatpush.bf16.msrb.mxu2 %v5209_v40  ;;  %v5306_v1 = vld [vmem:[#allocation10 + $0xf0] sm:$0xf0]  ;;  %v6458_v3 = vld [vmem:[#allocation10 + $0x1e4] sm:$0xf] }
 0x245   :  { %v1800_v12 = vrot.slane %v1799_v17, 2  ;;  %v1831_v29 = vadd.f32 %v1830_v18, %v1811_v9  ;;  %v5465_v55 = vor.u32 %v6468_v26, %v5464_v23  ;;  %v5593_v61 = vor.u32 %v6500_v36, %v5592_v35  ;;  %v5434_v28 = vld [vmem:[#allocation10 + $0x1f0] sm:$0xf0]  ;;  %v6490_v7 = vld [vmem:[#allocation10 + $0x2e4] sm:$0xf] }
 0x246   :  { %v1844_v27 = vsub.f32 %v1836_v16, %v1840_v31  ;;  %v1792_v47 = vrot.slane %v8098_v30, 4  ;;  %v1810_v41 = vmul.f32 %v8098_v30, %v8098_v30  ;;  %6695 = vrsqrt.f32 %v8092_v21  ;;  %2751 = vmatpush.bf16.msrb.mxu3 %v5337_v42  ;;  %v5562_v5 = vld [vmem:[#allocation10 + $0x2f0] sm:$0xf0]  ;;  %v6522_v63 = vld [vmem:[#allocation10 + $0x3e4] sm:$0xf] }
 0x247   :  { %v1801_v32 = vadd.f32 %v1800_v12, %v1799_v17  ;;  %v1832_v44 = vrot.slane %v1831_v29, 2  ;;  %2764 = vmatpush.bf16.msra.mxu0 %v5465_v55  ;;  %v5193_v59 = vor.u32 %v6400_v34, %v5192_v43  ;;  %v5321_v0 = vor.u32 %v6432_v48, %v5320_v2  ;;  %2777 = vmatpush.bf16.msra.mxu1 %v5593_v61  ;;  %v5690_v54 = vld [vmem:[#allocation10 + $0x3f0] sm:$0xf0]  ;;  %v6422_v14 = vld [vmem:[#allocation10 + $0xc4] sm:$0xf] }
 0x248   :  { %v8101_v53 = vadd.f32 1e-05, %v1844_v27  ;;  %v1793_v58 = vadd.f32 %v1792_v47, %v8098_v30  ;;  %v1824_v15 = vrot.slane %v1810_v41, 4  ;;  %v5449_v33 = vor.u32 %v6464_v52, %v5448_v49  ;;  %v5290_v18 = vld [vmem:[#allocation10 + $0xd0] sm:$0xf0] }
 0x249   :  { %v1802_v56 = vrot.slane %v1801_v32, 1  ;;  %v1833_v57 = vadd.f32 %v1832_v44, %v1831_v29  ;;  %2739 = vmatpush.bf16.msrb.mxu2 %v5193_v59  ;;  %v5577_v62 = vor.u32 %v6496_v25, %v5576_v24  ;;  %v5309_v60 = vor.u32 %v6426_v13, %v5306_v1  ;;  %v6454_v19 = vld [vmem:[#allocation10 + $0x1c4] sm:$0xf]  ;;  %v5418_v26 = vld [vmem:[#allocation10 + $0x1d0] sm:$0xf0] }
 0x24a   :  { %v1794_v8 = vrot.slane %v1793_v58, 2  ;;  %v1825_v9 = vadd.f32 %v1824_v15, %v1810_v41  ;;  %2752 = vmatpush.bf16.msrb.mxu3 %v5321_v0  ;;  %v5437_v17 = vor.u32 %v6458_v3, %v5434_v28  ;;  %6697 = vrsqrt.f32 %v8101_v53  ;;  %v6486_v27 = vld [vmem:[#allocation10 + $0x2c4] sm:$0xf]  ;;  %v5546_v35 = vld [vmem:[#allocation10 + $0x2d0] sm:$0xf0] }
 0x24b   :  { %v1803_v4 = vadd.f32 %v1802_v56, %v1801_v32  ;;  %v1834_v51 = vrot.slane %v1833_v57, 1  ;;  %2765 = vmatpush.bf16.msra.mxu0 %v5449_v33  ;;  %v5565_v23 = vor.u32 %v6490_v7, %v5562_v5  ;;  %2778 = vmatpush.bf16.msra.mxu1 %v5577_v62  ;;  %v6518_v36 = vld [vmem:[#allocation10 + $0x3c4] sm:$0xf]  ;;  %v5693_v40 = vor.u32 %v6522_v63, %v5690_v54  ;;  %v5674_v42 = vld [vmem:[#allocation10 + $0x3d0] sm:$0xf0] }
 0x24c   :  { %v1795_v16 = vadd.f32 %v1794_v8, %v1793_v58  ;;  %v1826_v31 = vrot.slane %v1825_v9, 2  ;;  %v8109_v20 = vpop.eup %6695  ;;  %v6418_v43 = vld [vmem:[#allocation10 + $0xa4] sm:$0xf]  ;;  %v5274_v34 = vld [vmem:[#allocation10 + $0xb0] sm:$0xf0]  ;;  %v5293_v44 = vor.u32 %v6422_v14, %v5290_v18  ;;  %v5421_v55 = vor.u32 %v6454_v19, %v5418_v26 }
 0x24d   :  { %v8107_v11 = vmul.f32 0.125, %v1803_v4  ;;  %v1835_v39 = vadd.f32 %v1834_v51, %v1833_v57  ;;  %2784 = vmatpush.bf16.msra.mxu2 %v5309_v60  ;;  %v6450_v47 = vld [vmem:[#allocation10 + $0x1a4] sm:$0xf]  ;;  %v5402_v48 = vld [vmem:[#allocation10 + $0x1b0] sm:$0xf0]  ;;  %v1864_v49 = vmul.f32 %v8109_v20, %v8092_v21  ;;  %v5549_v61 = vor.u32 %v6486_v27, %v5546_v35 }
 0x24e   :  { %v1796_v12 = vrot.slane %v1795_v16, 1  ;;  %v1827_v29 = vadd.f32 %v1826_v31, %v1825_v9  ;;  %2797 = vmatpush.bf16.msra.mxu3 %v5437_v17  ;;  %v6482_v52 = vld [vmem:[#allocation10 + $0x2a4] sm:$0xf]  ;;  %v5530_v24 = vld [vmem:[#allocation10 + $0x2b0] sm:$0xf0]  ;;  %v5677_v25 = vor.u32 %v6518_v36, %v5674_v42  ;;  %v5277_v59 = vor.u32 %v6418_v43, %v5274_v34 }
 0x24f   :  { %v1839_v10 = vmul.f32 0.125, %v1835_v39  ;;  %v1843_v22 = vmul.f32 %v8107_v11, %v8107_v11  ;;  %2810 = vmatpush.bf16.msrb.mxu0 %v5565_v23  ;;  %2823 = vmatpush.bf16.msrb.mxu1 %v5693_v40  ;;  %v6514_v13 = vld [vmem:[#allocation10 + $0x3a4] sm:$0xf]  ;;  %v5658_v58 = vld [vmem:[#allocation10 + $0x3b0] sm:$0xf0]  ;;  %v1865_v8 = vmul.f32 %v8109_v20, %v1864_v49  ;;  %v5405_v9 = vor.u32 %v6450_v47, %v5402_v48 }
 0x250   :  { %v1797_v2 = vadd.f32 %v1796_v12, %v1795_v16  ;;  %v1828_v32 = vrot.slane %v1827_v29, 1  ;;  %v8120_v15 = vpop.eup %6697  ;;  %v6414_v0 = vld [vmem:[#allocation10 + $0x84] sm:$0xf]  ;;  %v5258_v1 = vld [vmem:[#allocation10 + $0x90] sm:$0xf0]  ;;  %v5533_v33 = vor.u32 %v6482_v52, %v5530_v24  ;;  %v5661_v62 = vor.u32 %v6514_v13, %v5658_v58 }
 0x251   :  { %v1847_v38 = vsub.f32 %v1839_v10, %v1843_v22  ;;  %2785 = vmatpush.bf16.msra.mxu2 %v5293_v44  ;;  %v6446_v3 = vld [vmem:[#allocation10 + $0x184] sm:$0xf]  ;;  %v5386_v28 = vld [vmem:[#allocation10 + $0x190] sm:$0xf0]  ;;  %v1854_v63 = vmul.f32 %v8120_v15, %v8101_v53  ;;  %v5261_v60 = vor.u32 %v6414_v0, %v5258_v1  ;;  %v1866_v12 = vmul.f32 0.5, %v1865_v8 }
 0x252   :  { %v8118_v56 = vmul.f32 0.125, %v1797_v2  ;;  %v1829_v57 = vadd.f32 %v1828_v32, %v1827_v29  ;;  %2798 = vmatpush.bf16.msra.mxu3 %v5421_v55  ;;  %v6478_v7 = vld [vmem:[#allocation10 + $0x284] sm:$0xf]  ;;  %v5514_v5 = vld [vmem:[#allocation10 + $0x290] sm:$0xf0]  ;;  %v5389_v31 = vor.u32 %v6446_v3, %v5386_v28  ;;  %vm1869_vm0 = vweird.f32 %v8092_v21 }
 0x253   :  { %v8116_v41 = vadd.f32 1e-05, %v1847_v38  ;;  %2811 = vmatpush.bf16.msrb.mxu0 %v5549_v61  ;;  %2824 = vmatpush.bf16.msrb.mxu1 %v5677_v25  ;;  %v6510_v54 = vld [vmem:[#allocation10 + $0x384] sm:$0xf]  ;;  %v5642_v14 = vld [vmem:[#allocation10 + $0x390] sm:$0xf0]  ;;  %v5517_v17 = vor.u32 %v6478_v7, %v5514_v5  ;;  %v1855_v35 = vmul.f32 %v8120_v15, %v1854_v63  ;;  %vm1870_vm1 = vweird.f32 %v8109_v20 }
 0x254   :  { %v1838_v4 = vmul.f32 0.125, %v1829_v57  ;;  %v1842_v51 = vmul.f32 %v8118_v56, %v8118_v56  ;;  %v6410_v16 = vld [vmem:[#allocation10 + $0x64] sm:$0xf]  ;;  %v5242_v18 = vld [vmem:[#allocation10 + $0x70] sm:$0xf0]  ;;  %v5645_v29 = vor.u32 %v6510_v54, %v5642_v14  ;;  %v1867_v61 = vsub.f32 1.5, %v1866_v12  ;;  %vm8154_vm5 = vmor %vm1869_vm0, %vm1870_vm1 }
 0x255   :  { %6699 = vrsqrt.f32 %v8116_v41  ;;  %2786 = vmatpush.bf16.msra.mxu2 %v5277_v59  ;;  %v6442_v19 = vld [vmem:[#allocation10 + $0x164] sm:$0xf]  ;;  %v5370_v10 = vld [vmem:[#allocation10 + $0x170] sm:$0xf0]  ;;  %v5245_v38 = vor.u32 %v6410_v16, %v5242_v18  ;;  %v1856_v24 = vmul.f32 0.5, %v1855_v35  ;;  %vm1860_vm3 = vweird.f32 %v8120_v15 }
 0x256   :  { %v1846_v39 = vsub.f32 %v1838_v4, %v1842_v51  ;;  %2799 = vmatpush.bf16.msra.mxu3 %v5405_v9  ;;  %v6474_v23 = vld [vmem:[#allocation10 + $0x264] sm:$0xf]  ;;  %v5498_v26 = vld [vmem:[#allocation10 + $0x270] sm:$0xf0]  ;;  %v5373_v43 = vor.u32 %v6442_v19, %v5370_v10  ;;  %v1868_v19 = vmul.f32 %v8109_v20, %v1867_v61  ;;  %vm1889_vm4 = vweird.f32 %v8116_v41  ;;  %v5680_v21 = vld [vmem:[#allocation10 + $0x3c8] sm:$0xf] }
 0x257   :  { %2812 = vmatpush.bf16.msrb.mxu0 %v5533_v33  ;;  %2825 = vmatpush.bf16.msrb.mxu1 %v5661_v62  ;;  %v6506_v40 = vld [vmem:[#allocation10 + $0x364] sm:$0xf]  ;;  %v5626_v42 = vld [vmem:[#allocation10 + $0x370] sm:$0xf0]  ;;  %v5501_v34 = vor.u32 %v6474_v23, %v5498_v26  ;;  %v1857_v5 = vsub.f32 1.5, %v1856_v24  ;;  %vm1859_vm7 = vweird.f32 %v8101_v53  ;;  %vm1901_vm13 = vcmask 1042434  }
 0x258   :  { %v8128_v22 = vadd.f32 1e-05, %v1846_v39  ;;  %v6406_v2 = vld [vmem:[#allocation10 + $0x44] sm:$0xf]  ;;  %v5226_v32 = vld [vmem:[#allocation10 + $0x50] sm:$0xf0]  ;;  %v5629_v52 = vor.u32 %v6506_v40, %v5626_v42  ;;  %vm8167_vm9 = vmor %vm1859_vm7, %vm1860_vm3 }
 0x259   :  { %2787 = vmatpush.bf16.msra.mxu2 %v5261_v60  ;;  %v6438_v44 = vld [vmem:[#allocation10 + $0x144] sm:$0xf]  ;;  %v5354_v48 = vld [vmem:[#allocation10 + $0x150] sm:$0xf0]  ;;  %v5229_v25 = vor.u32 %v6406_v2, %v5226_v32  ;;  %vm1903_vm14 = vcmask 1041408  }
 0x25a   :  { %6701 = vrsqrt.f32 %v8128_v22  ;;  %2800 = vmatpush.bf16.msra.mxu3 %v5389_v31  ;;  %v6470_v49 = vld [vmem:[#allocation10 + $0x244] sm:$0xf]  ;;  %v5482_v55 = vld [vmem:[#allocation10 + $0x250] sm:$0xf0]  ;;  %v5357_v59 = vor.u32 %v6438_v44, %v5354_v48  ;;  %vm1879_vm10 = vweird.f32 %v8128_v22 }
 0x25b   :  { %v8130_v27 = vpop.eup %6699  ;;  %2813 = vmatpush.bf16.msrb.mxu0 %v5517_v17  ;;  %2826 = vmatpush.bf16.msrb.mxu1 %v5645_v29  ;;  %v6502_v13 = vld [vmem:[#allocation10 + $0x344] sm:$0xf]  ;;  %v5610_v58 = vld [vmem:[#allocation10 + $0x350] sm:$0xf0]  ;;  %v5485_v0 = vor.u32 %v6470_v49, %v5482_v55 }
 0x25c   :  { %v1884_v36 = vmul.f32 %v8130_v27, %v8116_v41  ;;  %v6402_v1 = vld [vmem:[#allocation10 + $0x24] sm:$0xf]  ;;  %v5210_v3 = vld [vmem:[#allocation10 + $0x30] sm:$0xf0]  ;;  %v5613_v62 = vor.u32 %v6502_v13, %v5610_v58  ;;  %vm1890_vm2 = vweird.f32 %v8130_v27  ;;  %v1872_v41 = vsel %vm8154_vm5, %v8109_v20, %v1868_v19 }
 0x25d   :  { %2788 = vmatpush.bf16.msra.mxu2 %v5245_v38  ;;  %v6434_v4 = vld [vmem:[#allocation10 + $0x124] sm:$0xf]  ;;  %v5338_v28 = vld [vmem:[#allocation10 + $0x130] sm:$0xf0]  ;;  %v5213_v63 = vor.u32 %v6402_v1, %v5210_v3  ;;  %vm1891_vm8 = vmor %vm1889_vm4, %vm1890_vm2  ;;  %v1897_v49 = vrot.slane %v1872_v41, 7 }
 0x25e   :  { %v1885_v47 = vmul.f32 %v8130_v27, %v1884_v36  ;;  %2801 = vmatpush.bf16.msra.mxu3 %v5373_v43  ;;  %v6466_v7 = vld [vmem:[#allocation10 + $0x224] sm:$0xf]  ;;  %v5466_v8 = vld [vmem:[#allocation10 + $0x230] sm:$0xf0]  ;;  %v5341_v14 = vor.u32 %v6434_v4, %v5338_v28  ;;  %v1858_v36 = vmul.f32 %v8120_v15, %v1857_v5  ;;  %v6489_v41 = vld [vmem:[#allocation10 + $0x2d4] sm:$0xf0] }
 0x25f   :  { %2814 = vmatpush.bf16.msrb.mxu0 %v5501_v34  ;;  %2827 = vmatpush.bf16.msrb.mxu1 %v5629_v52  ;;  %v6498_v39 = vld [vmem:[#allocation10 + $0x324] sm:$0xf]  ;;  %v5594_v60 = vld [vmem:[#allocation10 + $0x330] sm:$0xf0]  ;;  %v5469_v16 = vor.u32 %v6466_v7, %v5466_v8  ;;  %v1907_v7 = vld [vmem:[#allocation8] sm:$0xf] }
 0x260   :  { %v1886_v57 = vmul.f32 0.5, %v1885_v47  ;;  %v8137_v51 = vpop.eup %6701  ;;  %v6398_v31 = vld [vmem:[#allocation10 + $0x4] sm:$0xf]  ;;  %v5194_v17 = vld [vmem:[#allocation10 + $0x10] sm:$0xf0]  ;;  %v5597_v35 = vor.u32 %v6498_v39, %v5594_v60  ;;  %v1862_v53 = vsel %vm8167_vm9, %v8120_v15, %v1858_v36 }
 0x261   :  { %v1874_v33 = vmul.f32 %v8137_v51, %v8128_v22  ;;  %2789 = vmatpush.bf16.msra.mxu2 %v5229_v25  ;;  %v6430_v18 = vld [vmem:[#allocation10 + $0x104] sm:$0xf]  ;;  %v5322_v10 = vld [vmem:[#allocation10 + $0x110] sm:$0xf0]  ;;  %v5197_v38 = vor.u32 %v6398_v31, %v5194_v17  ;;  %vm1880_vm6 = vweird.f32 %v8137_v51  ;;  %v1848_v22 = vld [vmem:[%s8464_s7] sm:$0xf]  ;;  %v1900_v61 = vsel %vm1173_vm11, %v1862_v53, %v1897_v49 }
 0x262   :  { %v1887_v9 = vsub.f32 1.5, %v1886_v57  ;;  %2802 = vmatpush.bf16.msra.mxu3 %v5357_v59  ;;  %v6462_v23 = vld [vmem:[#allocation10 + $0x204] sm:$0xf]  ;;  %v5450_v26 = vld [vmem:[#allocation10 + $0x210] sm:$0xf0]  ;;  %v5325_v2 = vor.u32 %v6430_v18, %v5322_v10  ;;  %vm1881_vm12 = vmor %vm1879_vm10, %vm1880_vm6 }
 0x263   :  { %v1875_v54 = vmul.f32 %v8137_v51, %v1874_v33  ;;  %2815 = vmatpush.bf16.msrb.mxu0 %v5485_v0  ;;  %2828 = vmatpush.bf16.msrb.mxu1 %v5613_v62  ;;  %v6494_v40 = vld [vmem:[#allocation10 + $0x304] sm:$0xf]  ;;  %v5578_v42 = vld [vmem:[#allocation10 + $0x310] sm:$0xf0]  ;;  %v5453_v32 = vor.u32 %v6462_v23, %v5450_v26  ;;  %v5440_v39 = vld [vmem:[#allocation10 + $0x1e8] sm:$0xf] }
 0x264   :  { %v1888_v12 = vmul.f32 %v8130_v27, %v1887_v9  ;;  %v5581_v48 = vor.u32 %v6494_v40, %v5578_v42  ;;  %v6461_v31 = vld [vmem:[#allocation10 + $0x1f4] sm:$0xf0]  ;;  %v5568_v17 = vld [vmem:[#allocation10 + $0x2e8] sm:$0xf] }
 0x265   :  { %v1876_v29 = vmul.f32 0.5, %v1875_v54  ;;  %2790 = vmatpush.bf16.msra.mxu2 %v5213_v63  ;;  %v5312_v63 = vld [vmem:[#allocation10 + $0xe8] sm:$0xf]  ;;  %v6425_v40 = vld [vmem:[#allocation10 + $0xd4] sm:$0xf0] }
 0x266   :  { %2803 = vmatpush.bf16.msra.mxu3 %v5341_v14  ;;  %v1892_v44 = vsel %vm1891_vm8, %v8130_v27, %v1888_v12  ;;  %v5696_v26 = vld [vmem:[#allocation10 + $0x3e8] sm:$0xf] }
 0x267   :  { %v1877_v34 = vsub.f32 1.5, %v1876_v29  ;;  %2816 = vmatpush.bf16.msrb.mxu0 %v5469_v16  ;;  %2829 = vmatpush.bf16.msrb.mxu1 %v5597_v35  ;;  %v1899_v55 = vrot.slane %v1892_v44, 5  ;;  %v6521_v44 = vld [vmem:[#allocation10 + $0x3d4] sm:$0xf0]  ;;  %v5280_v53 = vld [vmem:[#allocation10 + $0xa8] sm:$0xf] }
 0x269   :  { %v1878_v47 = vmul.f32 %v8137_v51, %v1877_v34  ;;  %2791 = vmatpush.bf16.msra.mxu2 %v5197_v38  ;;  %v5296_v38 = vld [vmem:[#allocation10 + $0xc8] sm:$0xf] }
 0x26a   :  { %2804 = vmatpush.bf16.msra.mxu3 %v5325_v2  ;;  %v5424_v34 = vld [vmem:[#allocation10 + $0x1c8] sm:$0xf]  ;;  %v6457_v2 = vld [vmem:[#allocation10 + $0x1d4] sm:$0xf0] }
 0x26b   :  { %v1882_v20 = vsel %vm1881_vm12, %v8137_v51, %v1878_v47  ;;  %2817 = vmatpush.bf16.msrb.mxu0 %v5453_v32  ;;  %2830 = vmatpush.bf16.msrb.mxu1 %v5581_v48  ;;  %v5552_v32 = vld [vmem:[#allocation10 + $0x2c8] sm:$0xf]  ;;  %v5297_v47 = vor.u32 %v6425_v40, %v5296_v38  ;;  %v5425_v48 = vor.u32 %v6457_v2, %v5424_v34  ;;  %v6405_v40 = vld [vmem:[#allocation10 + $0x34] sm:$0xf0] }
 0x26c   :  { %v1898_v27 = vrot.slane %v1882_v20, 6  ;;  %v6421_v20 = vld [vmem:[#allocation10 + $0xb4] sm:$0xf0]  ;;  %v5553_v49 = vor.u32 %v6489_v41, %v5552_v32  ;;  %v5216_v38 = vld [vmem:[#allocation10 + $0x28] sm:$0xf] }
 0x26d   :  { %v5344_v34 = vld [vmem:[#allocation10 + $0x128] sm:$0xf]  ;;  %v6437_v2 = vld [vmem:[#allocation10 + $0x134] sm:$0xf0] }
 0x26e   :  { %v1902_v52 = vsel %vm1901_vm13, %v1898_v27, %v1899_v55  ;;  %v5681_v55 = vor.u32 %v6521_v44, %v5680_v21  ;;  %v5408_v27 = vld [vmem:[#allocation10 + $0x1a8] sm:$0xf]  ;;  %v6469_v41 = vld [vmem:[#allocation10 + $0x234] sm:$0xf0] }
 0x26f   :  { %v1904_v15 = vsel %vm1903_vm14, %v1900_v61, %v1902_v52  ;;  %v5536_v61 = vld [vmem:[#allocation10 + $0x2a8] sm:$0xf]  ;;  %v6485_v52 = vld [vmem:[#allocation10 + $0x2b4] sm:$0xf0] }
 0x270   :  { %v1906_v24 = vmul.f32 %v1904_v15, %v1848_v22  ;;  %v6453_v22 = vld [vmem:[#allocation10 + $0x1b4] sm:$0xf0]  ;;  %v5664_v15 = vld [vmem:[#allocation10 + $0x3a8] sm:$0xf] }
 0x271   :  { %v5472_v32 = vld [vmem:[#allocation10 + $0x228] sm:$0xf]  ;;  %v6501_v44 = vld [vmem:[#allocation10 + $0x334] sm:$0xf0] }
 0x272   :  { %v1911_v57 = vperm.slane %v1906_v24, 2  ;;  %v1909_v25 = vperm.slane %v1906_v24, 0  ;;  %v1910_v13 = vperm.slane %v1906_v24, 1  ;;  %v1912_v58 = vperm.slane %v1906_v24, 3  ;;  %v6517_v24 = vld [vmem:[#allocation10 + $0x3b4] sm:$0xf0] }
 0x273   :  { %v5600_v21 = vld [vmem:[#allocation10 + $0x328] sm:$0xf] }
 0x274   :  { %v1919_v59 = vmul.f32 %v1911_v57, %v8118_v56  ;;  %v1918_v0 = vmul.f32 %v1910_v13, %v8057_v37  ;;  %v1920_v1 = vmul.f32 %v1912_v58, %v8107_v11  ;;  %v1917_v4 = vmul.f32 %v1909_v25, %v8073_v6  ;;  %v6429_v6 = vld [vmem:[#allocation10 + $0xf4] sm:$0xf0] }
 0x275   :  { %v1933_v5 = vmul.f32 %v1909_v25, %v8025_v46  ;;  %v1934_v56 = vmul.f32 %v1910_v13, %v8000_v45  ;;  %v1935_v37 = vmul.f32 %v1911_v57, %v8098_v30  ;;  %v1936_v11 = vmul.f32 %v1912_v58, %v8070_v50  ;;  %v6493_v46 = vld [vmem:[#allocation10 + $0x2f4] sm:$0xf0]  ;;  %v5264_v13 = vld [vmem:[#allocation10 + $0x88] sm:$0xf] }
 0x276   :  { %v1926_v3 = vrot.slane %v1919_v59, 6  ;;  %v1925_v51 = vrot.slane %v1918_v0, 7  ;;  %v1927_v28 = vrot.slane %v1920_v1, 5  ;;  %v6525_v45 = vld [vmem:[#allocation10 + $0x3f4] sm:$0xf0]  ;;  %v5313_v12 = vor.u32 %v6429_v6, %v5312_v63 }
 0x277   :  { %v5441_v30 = vor.u32 %v6461_v31, %v5440_v39  ;;  %v5569_v42 = vor.u32 %v6493_v46, %v5568_v17  ;;  %v5697_v43 = vor.u32 %v6525_v45, %v5696_v26  ;;  %v5281_v57 = vor.u32 %v6421_v20, %v5280_v53  ;;  %v6417_v58 = vld [vmem:[#allocation10 + $0x94] sm:$0xf0]  ;;  %v5392_v1 = vld [vmem:[#allocation10 + $0x188] sm:$0xf] }
 0x278   :  { %v1928_v8 = vsel %vm1173_vm11, %v1917_v4, %v1925_v51  ;;  %v1929_v9 = vsel %vm1901_vm13, %v1926_v3, %v1927_v28  ;;  %v5409_v25 = vor.u32 %v6453_v22, %v5408_v27  ;;  %v5537_v59 = vor.u32 %v6485_v52, %v5536_v61  ;;  %v6449_v3 = vld [vmem:[#allocation10 + $0x194] sm:$0xf0]  ;;  %v5520_v4 = vld [vmem:[#allocation10 + $0x288] sm:$0xf] }
 0x279   :  { %v1930_v33 = vsel %vm1903_vm14, %v1928_v8, %v1929_v9  ;;  %v5665_v0 = vor.u32 %v6517_v24, %v5664_v15  ;;  %v6481_v51 = vld [vmem:[#allocation10 + $0x294] sm:$0xf0]  ;;  %v5648_v28 = vld [vmem:[#allocation10 + $0x388] sm:$0xf]  ;;  %v5265_v8 = vor.u32 %v6417_v58, %v5264_v13  ;;  %v5393_v9 = vor.u32 %v6449_v3, %v5392_v1  ;;  %v6459_v13 = vld [vmem:[#allocation10 + $0x1ec] sm:$0xf] }
 0x27a   :  { %v1932_v62 = vsub.f32 %v1907_v7, %v1930_v33  ;;  %v6513_v7 = vld [vmem:[#allocation10 + $0x394] sm:$0xf0]  ;;  %v5248_v33 = vld [vmem:[#allocation10 + $0x68] sm:$0xf]  ;;  %v5345_v53 = vor.u32 %v6437_v2, %v5344_v34  ;;  %v5473_v27 = vor.u32 %v6469_v41, %v5472_v32  ;;  %v5601_v22 = vor.u32 %v6501_v44, %v5600_v21  ;;  %v5442_v58 = vld [vmem:[#allocation10 + $0x1f8] sm:$0xf0] }
 0x27b   :  { %v5504_v63 = vld [vmem:[#allocation10 + $0x268] sm:$0xf]  ;;  %v6477_v6 = vld [vmem:[#allocation10 + $0x274] sm:$0xf0]  ;;  %v5570_v3 = vld [vmem:[#allocation10 + $0x2f8] sm:$0xf0] }
 0x27c   :  { %v1938_v60 = vperm.slane %v1932_v62, 0  ;;  %v1939_v54 = vperm.slane %v1932_v62, 1  ;;  %v1940_v14 = vperm.slane %v1932_v62, 2  ;;  %v1941_v16 = vperm.slane %v1932_v62, 3  ;;  %v6413_v62 = vld [vmem:[#allocation10 + $0x74] sm:$0xf0] }
 0x27d   :  { %v5632_v39 = vld [vmem:[#allocation10 + $0x368] sm:$0xf]  ;;  %v6409_v31 = vld [vmem:[#allocation10 + $0x54] sm:$0xf0]  ;;  %v5505_v17 = vor.u32 %v6477_v6, %v5504_v63  ;;  %v6487_v63 = vld [vmem:[#allocation10 + $0x2cc] sm:$0xf] }
 0x27e   :  { %v1946_v18 = vadd.f32 %v1938_v60, %v1933_v5  ;;  %v1947_v19 = vadd.f32 %v1939_v54, %v1934_v56  ;;  %v1948_v10 = vadd.f32 %v1940_v14, %v1935_v37  ;;  %v1949_v23 = vadd.f32 %v1941_v16, %v1936_v11  ;;  %v5376_v37 = vld [vmem:[#allocation10 + $0x168] sm:$0xf]  ;;  %v6445_v11 = vld [vmem:[#allocation10 + $0x174] sm:$0xf0]  ;;  %v5554_v6 = vld [vmem:[#allocation10 + $0x2d8] sm:$0xf0] }
 0x27f   :  { %v5521_v5 = vor.u32 %v6481_v51, %v5520_v4  ;;  %v5649_v56 = vor.u32 %v6513_v7, %v5648_v28  ;;  %v6509_v60 = vld [vmem:[#allocation10 + $0x374] sm:$0xf0]  ;;  %v5249_v54 = vor.u32 %v6413_v62, %v5248_v33  ;;  %v5377_v14 = vor.u32 %v6445_v11, %v5376_v37  ;;  %v5232_v16 = vld [vmem:[#allocation10 + $0x48] sm:$0xf]  ;;  %v6523_v4 = vld [vmem:[#allocation10 + $0x3ec] sm:$0xf] }
 0x280   :  { %v8195_v29 = vpack.c.bf16 %v1946_v18, %v1946_v18  ;;  %v8197_v50 = vpack.c.bf16 %v1947_v19, %v1947_v19  ;;  %v8199_v35 = vpack.c.bf16 %v1948_v10, %v1948_v10  ;;  %v8201_v36 = vpack.c.bf16 %v1949_v23, %v1949_v23  ;;  %v5360_v19 = vld [vmem:[#allocation10 + $0x148] sm:$0xf]  ;;  %v6441_v10 = vld [vmem:[#allocation10 + $0x154] sm:$0xf0]  ;;  %v5698_v51 = vld [vmem:[#allocation10 + $0x3f8] sm:$0xf0] }
 0x281   :  { %v5633_v18 = vor.u32 %v6509_v60, %v5632_v39  ;;  %v5488_v23 = vld [vmem:[#allocation10 + $0x248] sm:$0xf]  ;;  %v6473_v46 = vld [vmem:[#allocation10 + $0x254] sm:$0xf0]  ;;  %v6423_v33 = vld [vmem:[#allocation10 + $0xcc] sm:$0xf] }
 0x282   :  { %2740 = vmatmul.bf16.vlgmr.msrb.gmra.mxu2 %v8195_v29  ;;  %2753 = vmatmul.bf16.vlgmr.msrb.gmra.mxu3 %v8197_v50  ;;  %v5616_v26 = vld [vmem:[#allocation10 + $0x348] sm:$0xf]  ;;  %v6505_v45 = vld [vmem:[#allocation10 + $0x354] sm:$0xf0]  ;;  %v5298_v62 = vld [vmem:[#allocation10 + $0xd8] sm:$0xf0] }
 0x283   :  { %2766 = vmatmul.bf16.vlgmr.msra.gmra.mxu0 %v8199_v35  ;;  %2779 = vmatmul.bf16.vlgmr.msra.gmra.mxu1 %v8201_v36  ;;  %v6401_v20 = vld [vmem:[#allocation10 + $0x14] sm:$0xf0]  ;;  %v5456_v61 = vld [vmem:[#allocation10 + $0x208] sm:$0xf]  ;;  %v6455_v37 = vld [vmem:[#allocation10 + $0x1cc] sm:$0xf] }
 0x284   :  { %2836 = vmatpush.bf16.msrb.mxu2 %v5313_v12  ;;  %2849 = vmatpush.bf16.msrb.mxu3 %v5441_v30  ;;  %v5233_v12 = vor.u32 %v6409_v31, %v5232_v16  ;;  %v5361_v30 = vor.u32 %v6441_v10, %v5360_v19  ;;  %v6465_v52 = vld [vmem:[#allocation10 + $0x214] sm:$0xf0]  ;;  %v5584_v15 = vld [vmem:[#allocation10 + $0x308] sm:$0xf]  ;;  %v5426_v11 = vld [vmem:[#allocation10 + $0x1d8] sm:$0xf0] }
 0x285   :  { %2862 = vmatpush.bf16.msra.mxu0 %v5569_v42  ;;  %2875 = vmatpush.bf16.msra.mxu1 %v5697_v43  ;;  %v5489_v42 = vor.u32 %v6473_v46, %v5488_v23  ;;  %v5617_v43 = vor.u32 %v6505_v45, %v5616_v26  ;;  %v6497_v24 = vld [vmem:[#allocation10 + $0x314] sm:$0xf0]  ;;  %v5457_v28 = vor.u32 %v6465_v52, %v5456_v61  ;;  %v6519_v39 = vld [vmem:[#allocation10 + $0x3cc] sm:$0xf]  ;;  %v5682_v60 = vld [vmem:[#allocation10 + $0x3d8] sm:$0xf0] }
 0x286   :  { %v5585_v7 = vor.u32 %v6497_v24, %v5584_v15  ;;  %v6419_v16 = vld [vmem:[#allocation10 + $0xac] sm:$0xf]  ;;  %v5282_v31 = vld [vmem:[#allocation10 + $0xb8] sm:$0xf0] }
 0x287   :  { %v6451_v19 = vld [vmem:[#allocation10 + $0x1ac] sm:$0xf]  ;;  %v5410_v10 = vld [vmem:[#allocation10 + $0x1b8] sm:$0xf0] }
 0x288   :  { %2837 = vmatpush.bf16.msrb.mxu2 %v5297_v47  ;;  %2850 = vmatpush.bf16.msrb.mxu3 %v5425_v48  ;;  %v5200_v47 = vld [vmem:[#allocation10 + $0x8] sm:$0xf]  ;;  %v5217_v48 = vor.u32 %v6405_v40, %v5216_v38  ;;  %v6483_v23 = vld [vmem:[#allocation10 + $0x2ac] sm:$0xf]  ;;  %v5538_v46 = vld [vmem:[#allocation10 + $0x2b8] sm:$0xf0] }
 0x289   :  { %2863 = vmatpush.bf16.msra.mxu0 %v5553_v49  ;;  %2876 = vmatpush.bf16.msra.mxu1 %v5681_v55  ;;  %v5328_v49 = vld [vmem:[#allocation10 + $0x108] sm:$0xf]  ;;  %v6433_v55 = vld [vmem:[#allocation10 + $0x114] sm:$0xf0]  ;;  %v6515_v26 = vld [vmem:[#allocation10 + $0x3ac] sm:$0xf] }
 0x28a   :  { %v5329_v1 = vor.u32 %v6433_v55, %v5328_v49  ;;  %v5666_v45 = vld [vmem:[#allocation10 + $0x3b8] sm:$0xf0]  ;;  %v6415_v38 = vld [vmem:[#allocation10 + $0x8c] sm:$0xf] }
 0x28b   :  { %v5266_v40 = vld [vmem:[#allocation10 + $0x98] sm:$0xf0]  ;;  %v6447_v34 = vld [vmem:[#allocation10 + $0x18c] sm:$0xf] }
 0x28c   :  { %2838 = vmatpush.bf16.msrb.mxu2 %v5281_v57  ;;  %2851 = vmatpush.bf16.msrb.mxu3 %v5409_v25  ;;  %v6427_v57 = vld [vmem:[#allocation10 + $0xec] sm:$0xf]  ;;  %v5314_v25 = vld [vmem:[#allocation10 + $0xf8] sm:$0xf0] }
 0x28d   :  { %2864 = vmatpush.bf16.msra.mxu0 %v5537_v59  ;;  %2877 = vmatpush.bf16.msra.mxu1 %v5665_v0  ;;  %v6491_v59 = vld [vmem:[#allocation10 + $0x2ec] sm:$0xf]  ;;  %v5201_v0 = vor.u32 %v6401_v20, %v5200_v47  ;;  %v5394_v2 = vld [vmem:[#allocation10 + $0x198] sm:$0xf0]  ;;  %v5269_v47 = vor.u32 %v6415_v38, %v5266_v40 }
 0x28e   :  { %v6479_v32 = vld [vmem:[#allocation10 + $0x28c] sm:$0xf]  ;;  %v5522_v41 = vld [vmem:[#allocation10 + $0x298] sm:$0xf0] }
 0x28f   :  { %v6511_v21 = vld [vmem:[#allocation10 + $0x38c] sm:$0xf]  ;;  %v5650_v44 = vld [vmem:[#allocation10 + $0x398] sm:$0xf0]  ;;  %v5525_v49 = vor.u32 %v6479_v32, %v5522_v41 }
 0x290   :  { %2839 = vmatpush.bf16.msrb.mxu2 %v5265_v8  ;;  %2852 = vmatpush.bf16.msrb.mxu3 %v5393_v9  ;;  %v5317_v8 = vor.u32 %v6427_v57, %v5314_v25  ;;  %v5445_v9 = vor.u32 %v6459_v13, %v5442_v58  ;;  %v5250_v20 = vld [vmem:[#allocation10 + $0x78] sm:$0xf0]  ;;  %v5653_v55 = vor.u32 %v6511_v21, %v5650_v44  ;;  %v6475_v61 = vld [vmem:[#allocation10 + $0x26c] sm:$0xf] }
 0x291   :  { %2865 = vmatpush.bf16.msra.mxu0 %v5521_v5  ;;  %2878 = vmatpush.bf16.msra.mxu1 %v5649_v56  ;;  %v5573_v5 = vor.u32 %v6491_v59, %v5570_v3  ;;  %v5701_v56 = vor.u32 %v6523_v4, %v5698_v51  ;;  %v5506_v52 = vld [vmem:[#allocation10 + $0x278] sm:$0xf0]  ;;  %v6507_v15 = vld [vmem:[#allocation10 + $0x36c] sm:$0xf] }
 0x292   :  { %2792 = vmatmul.bf16.vlgmr.msra.gmra.mxu2 %v8195_v29  ;;  %2805 = vmatmul.bf16.vlgmr.msra.gmra.mxu3 %v8197_v50  ;;  %v5634_v24 = vld [vmem:[#allocation10 + $0x378] sm:$0xf0]  ;;  %v6407_v13 = vld [vmem:[#allocation10 + $0x4c] sm:$0xf]  ;;  %v5509_v59 = vor.u32 %v6475_v61, %v5506_v52 }
 0x293   :  { %2818 = vmatmul.bf16.vlgmr.msrb.gmra.mxu0 %v8199_v35  ;;  %2831 = vmatmul.bf16.vlgmr.msrb.gmra.mxu1 %v8201_v36  ;;  %v5234_v58 = vld [vmem:[#allocation10 + $0x58] sm:$0xf0]  ;;  %v6471_v4 = vld [vmem:[#allocation10 + $0x24c] sm:$0xf] }
 0x294   :  { %2840 = vmatpush.bf16.msrb.mxu2 %v5249_v54  ;;  %2853 = vmatpush.bf16.msrb.mxu3 %v5377_v14  ;;  %v5301_v54 = vor.u32 %v6423_v33, %v5298_v62  ;;  %v5429_v14 = vor.u32 %v6455_v37, %v5426_v11  ;;  %v5362_v3 = vld [vmem:[#allocation10 + $0x158] sm:$0xf0]  ;;  %v6403_v33 = vld [vmem:[#allocation10 + $0x2c] sm:$0xf] }
 0x295   :  { %2866 = vmatpush.bf16.msra.mxu0 %v5505_v17  ;;  %2879 = vmatpush.bf16.msra.mxu1 %v5633_v18  ;;  %v5557_v17 = vor.u32 %v6487_v63, %v5554_v6  ;;  %v5685_v18 = vor.u32 %v6519_v39, %v5682_v60  ;;  %v5490_v51 = vld [vmem:[#allocation10 + $0x258] sm:$0xf0]  ;;  %v6435_v37 = vld [vmem:[#allocation10 + $0x12c] sm:$0xf] }
 0x296   :  { %v5218_v62 = vld [vmem:[#allocation10 + $0x38] sm:$0xf0]  ;;  %v6467_v63 = vld [vmem:[#allocation10 + $0x22c] sm:$0xf] }
 0x297   :  { %v5346_v11 = vld [vmem:[#allocation10 + $0x138] sm:$0xf0]  ;;  %v6499_v39 = vld [vmem:[#allocation10 + $0x32c] sm:$0xf] }
 0x298   :  { %2841 = vmatpush.bf16.msrb.mxu2 %v5233_v12  ;;  %2854 = vmatpush.bf16.msrb.mxu3 %v5361_v30  ;;  %v5285_v12 = vor.u32 %v6419_v16, %v5282_v31  ;;  %v5413_v30 = vor.u32 %v6451_v19, %v5410_v10  ;;  %v5474_v6 = vld [vmem:[#allocation10 + $0x238] sm:$0xf0]  ;;  %v6399_v16 = vld [vmem:[#allocation10 + $0xc] sm:$0xf] }
 0x299   :  { %2867 = vmatpush.bf16.msra.mxu0 %v5489_v42  ;;  %2880 = vmatpush.bf16.msra.mxu1 %v5617_v43  ;;  %v5541_v42 = vor.u32 %v6483_v23, %v5538_v46  ;;  %v5669_v43 = vor.u32 %v6515_v26, %v5666_v45  ;;  %v5602_v60 = vld [vmem:[#allocation10 + $0x338] sm:$0xf0]  ;;  %v6431_v19 = vld [vmem:[#allocation10 + $0x10c] sm:$0xf] }
 0x29a   :  { %v5202_v31 = vld [vmem:[#allocation10 + $0x18] sm:$0xf0]  ;;  %v6463_v23 = vld [vmem:[#allocation10 + $0x20c] sm:$0xf] }
 0x29b   :  { %v5330_v10 = vld [vmem:[#allocation10 + $0x118] sm:$0xf0]  ;;  %v6495_v26 = vld [vmem:[#allocation10 + $0x30c] sm:$0xf] }
 0x29c   :  { %2842 = vmatpush.bf16.msrb.mxu2 %v5217_v48  ;;  %2855 = vmatpush.bf16.msrb.mxu3 %v5345_v53  ;;  %v5397_v48 = vor.u32 %v6447_v34, %v5394_v2  ;;  %v6411_v53 = vld [vmem:[#allocation10 + $0x6c] sm:$0xf]  ;;  %v5458_v46 = vld [vmem:[#allocation10 + $0x218] sm:$0xf0] }
 0x29d   :  { %2868 = vmatpush.bf16.msra.mxu0 %v5473_v27  ;;  %2881 = vmatpush.bf16.msra.mxu1 %v5601_v22  ;;  %v6443_v27 = vld [vmem:[#allocation10 + $0x16c] sm:$0xf]  ;;  %v5378_v22 = vld [vmem:[#allocation10 + $0x178] sm:$0xf0]  ;;  %v5253_v57 = vor.u32 %v6411_v53, %v5250_v20  ;;  %v5461_v38 = vor.u32 %v6463_v23, %v5458_v46 }
 0x29e   :  { %v5381_v25 = vor.u32 %v6443_v27, %v5378_v22  ;;  %v5586_v45 = vld [vmem:[#allocation10 + $0x318] sm:$0xf0] }
 0x29f   :  { %v5589_v40 = vor.u32 %v6495_v26, %v5586_v45 }
 0x2a0   :  { %2843 = vmatpush.bf16.msrb.mxu2 %v5201_v0  ;;  %2856 = vmatpush.bf16.msrb.mxu3 %v5329_v1  ;;  %v5637_v0 = vor.u32 %v6507_v15, %v5634_v24  ;;  %v6439_v1 = vld [vmem:[#allocation10 + $0x14c] sm:$0xf] }
 0x2a1   :  { %2869 = vmatpush.bf16.msra.mxu0 %v5457_v28  ;;  %2882 = vmatpush.bf16.msra.mxu1 %v5585_v7  ;;  %v6503_v28 = vld [vmem:[#allocation10 + $0x34c] sm:$0xf]  ;;  %v5618_v7 = vld [vmem:[#allocation10 + $0x358] sm:$0xf0] }
 0x2a3   :  { %2844 = vmatmul.bf16.vlgmr.msrb.gmra.mxu2 %v8195_v29  ;;  %2857 = vmatmul.bf16.vlgmr.msrb.gmra.mxu3 %v8197_v50 }
 0x2a4   :  { %2888 = vmatpush.bf16.msra.mxu2 %v5317_v8  ;;  %2901 = vmatpush.bf16.msra.mxu3 %v5445_v9  ;;  %v5237_v8 = vor.u32 %v6407_v13, %v5234_v58  ;;  %v5365_v9 = vor.u32 %v6439_v1, %v5362_v3 }
 0x2a5   :  { %2914 = vmatpush.bf16.msrb.mxu0 %v5573_v5  ;;  %2927 = vmatpush.bf16.msrb.mxu1 %v5701_v56  ;;  %v5493_v5 = vor.u32 %v6471_v4, %v5490_v51  ;;  %v5621_v56 = vor.u32 %v6503_v28, %v5618_v7 }
 0x2a6   :  { %2870 = vmatmul.bf16.vlgmr.msra.gmra.mxu0 %v8199_v35  ;;  %2883 = vmatmul.bf16.vlgmr.msra.gmra.mxu1 %v8201_v36 }
 0x2a8   :  { %2889 = vmatpush.bf16.msra.mxu2 %v5301_v54  ;;  %2902 = vmatpush.bf16.msra.mxu3 %v5429_v14  ;;  %v5221_v54 = vor.u32 %v6403_v33, %v5218_v62  ;;  %v5349_v14 = vor.u32 %v6435_v37, %v5346_v11 }
 0x2a9   :  { %2915 = vmatpush.bf16.msrb.mxu0 %v5557_v17  ;;  %2928 = vmatpush.bf16.msrb.mxu1 %v5685_v18  ;;  %v5477_v17 = vor.u32 %v6467_v63, %v5474_v6  ;;  %v5605_v18 = vor.u32 %v6499_v39, %v5602_v60 }
 0x2ac   :  { %2890 = vmatpush.bf16.msra.mxu2 %v5285_v12  ;;  %2903 = vmatpush.bf16.msra.mxu3 %v5413_v30  ;;  %v5205_v12 = vor.u32 %v6399_v16, %v5202_v31  ;;  %v5333_v30 = vor.u32 %v6431_v19, %v5330_v10 }
 0x2ad   :  { %2916 = vmatpush.bf16.msrb.mxu0 %v5541_v42  ;;  %2929 = vmatpush.bf16.msrb.mxu1 %v5669_v43  ;;  %v8222_v42 = vld [vmem:[%s8467_s10] sm:$0xf] }
 0x2ae   :  { %v2084_v2 = vperm.slane %v8222_v42, 0  ;;  %v2086_v51 = vperm.slane %v8222_v42, 2 }
 0x2b0   :  { %2891 = vmatpush.bf16.msra.mxu2 %v5269_v47  ;;  %2904 = vmatpush.bf16.msra.mxu3 %v5397_v48 }
 0x2b1   :  { %2917 = vmatpush.bf16.msrb.mxu0 %v5525_v49  ;;  %2930 = vmatpush.bf16.msrb.mxu1 %v5653_v55  ;;  %v2085_v55 = vperm.slane %v8222_v42, 1 }
 0x2b4   :  { %2892 = vmatpush.bf16.msra.mxu2 %v5253_v57  ;;  %2905 = vmatpush.bf16.msra.mxu3 %v5381_v25 }
 0x2b5   :  { %2918 = vmatpush.bf16.msrb.mxu0 %v5509_v59  ;;  %2931 = vmatpush.bf16.msrb.mxu1 %v5637_v0 }
 0x2b8   :  { %2893 = vmatpush.bf16.msra.mxu2 %v5237_v8  ;;  %2906 = vmatpush.bf16.msra.mxu3 %v5365_v9 }
 0x2b9   :  { %2919 = vmatpush.bf16.msrb.mxu0 %v5493_v5  ;;  %2932 = vmatpush.bf16.msrb.mxu1 %v5621_v56 }
 0x2bc   :  { %2894 = vmatpush.bf16.msra.mxu2 %v5221_v54  ;;  %2907 = vmatpush.bf16.msra.mxu3 %v5349_v14 }
 0x2bd   :  { %2920 = vmatpush.bf16.msrb.mxu0 %v5477_v17  ;;  %2933 = vmatpush.bf16.msrb.mxu1 %v5605_v18 }
 0x2c0   :  { %2895 = vmatpush.bf16.msra.mxu2 %v5205_v12  ;;  %2908 = vmatpush.bf16.msra.mxu3 %v5333_v30 }
 0x2c1   :  { %2921 = vmatpush.bf16.msrb.mxu0 %v5461_v38  ;;  %2934 = vmatpush.bf16.msrb.mxu1 %v5589_v40 }
 0x2c3   :  { %2896 = vmatmul.bf16.vlgmr.msra.gmra.mxu2 %v8195_v29  ;;  %2909 = vmatmul.bf16.vlgmr.msra.gmra.mxu3 %v8197_v50 }
 0x2c4   :  { %2922 = vmatmul.bf16.vlgmr.msrb.gmra.mxu0 %v8199_v35  ;;  %2935 = vmatmul.bf16.vlgmr.msrb.gmra.mxu1 %v8201_v36 }
 0x300   :  { %v2767_v43 = vpop.f32.mrf.mxu0  ;;  %v2780_v34 = vpop.f32.mrf.mxu1 }
 0x305   :  { %v2741_v32 = vpop.f32.mrf.mxu2  ;;  %v2754_v41 = vpop.f32.mrf.mxu3 }
 0x306   :  { %v2742_v21 = vadd.f32 %v2741_v32, %v2084_v2 }
 0x308   :  { %v2755_v44 = vadd.f32 %v2754_v41, %v2742_v21  ;;  %v2769_v29 = vpop.f32.mrf.mxu0  ;;  %v2782_v47 = vpop.f32.mrf.mxu1 }
 0x30a   :  { %v2768_v50 = vadd.f32 %v2767_v43, %v2755_v44 }
 0x30c   :  { %v8225_v48 = vadd.f32 %v2780_v34, %v2768_v50 }
 0x30d   :  { %v2743_v35 = vpop.f32.mrf.mxu2  ;;  %v2756_v36 = vpop.f32.mrf.mxu3 }
 0x30e   :  { %v5702_v53 = vmul.f32 -1.442695, %v8225_v48 }
 0x310   :  { %v2819_v20 = vpop.f32.mrf.mxu0  ;;  %v2832_v49 = vpop.f32.mrf.mxu1  ;;  %6703 = vpow2.f32 %v5702_v53  ;;  %v2087_v53 = vperm.slane %v8222_v42, 3 }
 0x315   :  { %v2793_v27 = vpop.f32.mrf.mxu2  ;;  %v2806_v22 = vpop.f32.mrf.mxu3 }
 0x316   :  { %v2794_v61 = vadd.f32 %v2793_v27, %v2085_v55  ;;  %v6704_v52 = vpop.eup %6703 }
 0x317   :  { %v2952_v13 = vadd.f32 1.0, %v6704_v52 }
 0x318   :  { %v2807_v15 = vadd.f32 %v2806_v22, %v2794_v61  ;;  %v2821_v24 = vpop.f32.mrf.mxu0  ;;  %v2834_v57 = vpop.f32.mrf.mxu1 }
 0x319   :  { %6705 = vrcp.f32 %v2952_v13  ;;  %vm2961_vm1 = vweird.f32 %v2952_v13  ;;  %v2967_v26 = vand.u32 2147483648, %v2952_v13  ;;  %v2965_v12 = vand.u32 2147483647, %v2952_v13 }
 0x31a   :  { %v2820_v25 = vadd.f32 %v2819_v20, %v2807_v15 }
 0x31b   :  { %v2968_v2 = vor.u32 1.1754944e-38, %v2967_v26  ;;  %vm2966_vm6 = vcmp.eq.f32.partialorder %v2965_v12, 8.507059e+37 }
 0x31c   :  { %v2833_v58 = vadd.f32 %v2832_v49, %v2820_v25 }
 0x31d   :  { %v2795_v59 = vpop.f32.mrf.mxu2  ;;  %v2808_v0 = vpop.f32.mrf.mxu3 }
 0x31e   :  { %v5703_v1 = vmul.f32 -1.442695, %v2833_v58 }
 0x31f   :  { %v6706_v28 = vpop.eup %6705 }
 0x320   :  { %6707 = vpow2.f32 %v5703_v1  ;;  %v2957_v62 = vmul.f32 %v6706_v28, %v2952_v13  ;;  %vm2962_vm15 = vweird.f32 %v6706_v28 }
 0x321   :  { %vm8233_vm2 = vmor %vm2961_vm1, %vm2962_vm15 }
 0x322   :  { %v2958_v63 = vsub.f32 1.0, %v2957_v62 }
 0x323   :  { %v2871_v3 = vpop.f32.mrf.mxu0  ;;  %v2884_v4 = vpop.f32.mrf.mxu1 }
 0x324   :  { %v2959_v16 = vmul.f32 %v6706_v28, %v2958_v63 }
 0x326   :  { %v6708_v7 = vpop.eup %6707  ;;  %v2845_v9 = vpop.f32.mrf.mxu2  ;;  %v2960_v10 = vadd.f32 %v6706_v28, %v2959_v16  ;;  %v6076_v16 = vld [vmem:[#allocation13 + $0x2e0] sm:$0xf] }
 0x327   :  { %v2953_v8 = vadd.f32 1.0, %v6708_v7  ;;  %v2858_v33 = vpop.f32.mrf.mxu3  ;;  %v2846_v5 = vadd.f32 %v2845_v9, %v2086_v51 }
 0x328   :  { %v2964_v40 = vsel %vm8233_vm2, %v6706_v28, %v2960_v10 }
 0x329   :  { %6709 = vrcp.f32 %v2953_v8  ;;  %v2859_v56 = vadd.f32 %v2858_v33, %v2846_v5  ;;  %v2982_v19 = vand.u32 2147483648, %v2953_v8  ;;  %v2980_v46 = vand.u32 2147483647, %v2953_v8 }
 0x32a   :  { %vm2976_vm3 = vweird.f32 %v2953_v8  ;;  %v2969_v44 = vsel %vm2966_vm6, %v2968_v2, %v2964_v40  ;;  %v5932_v2 = vld [vmem:[#allocation13 + $0x1c0] sm:$0xf] }
 0x32b   :  { %v2873_v37 = vpop.f32.mrf.mxu0  ;;  %v2886_v11 = vpop.f32.mrf.mxu1  ;;  %v2872_v6 = vadd.f32 %v2871_v3, %v2859_v56  ;;  %v2983_v38 = vor.u32 1.1754944e-38, %v2982_v19  ;;  %vm2981_vm5 = vcmp.eq.f32.partialorder %v2980_v46, 8.507059e+37  ;;  %v8242_v29 = vmul.f32 %v2969_v44, %v8225_v48  ;;  %v5820_v56 = vld [vmem:[#allocation13 + $0xe0] sm:$0xf]  ;;  %v6652_v46 = vld [vmem:[#allocation13 + $0x3ec] sm:$0xf0] }
 0x32c   :  { %v6556_v37 = vld [vmem:[#allocation13 + $0xec] sm:$0xf0]  ;;  %v5948_v11 = vld [vmem:[#allocation13 + $0x1e0] sm:$0xf] }
 0x32d   :  { %v8230_v39 = vadd.f32 %v2884_v4, %v2872_v6  ;;  %v3048_v49 = vmul.f32 %v8242_v29, %v8242_v29  ;;  %v3020_v52 = vrot.slane %v8242_v29, 4 }
 0x32e   :  { %v2847_v54 = vpop.f32.mrf.mxu2 }
 0x32f   :  { %v6710_v60 = vpop.eup %6709  ;;  %v2860_v14 = vpop.f32.mrf.mxu3  ;;  %v5704_v17 = vmul.f32 -1.442695, %v8230_v39  ;;  %v3052_v57 = vrot.slane %v3048_v49, 4  ;;  %v3021_v4 = vadd.f32 %v3020_v52, %v8242_v29  ;;  %v5821_v54 = vor.u32 %v6556_v37, %v5820_v56  ;;  %v6544_v56 = vld [vmem:[#allocation13 + $0x8c] sm:$0xf0] }
 0x330   :  { %v2972_v31 = vmul.f32 %v6710_v60, %v2953_v8  ;;  %vm2977_vm0 = vweird.f32 %v6710_v60  ;;  %v6588_v14 = vld [vmem:[#allocation13 + $0x1ec] sm:$0xf0] }
 0x331   :  { %6711 = vpow2.f32 %v5704_v17  ;;  %vm2978_vm4 = vmor %vm2976_vm3, %vm2977_vm0  ;;  %v3053_v7 = vadd.f32 %v3052_v57, %v3048_v49  ;;  %v5949_v19 = vor.u32 %v6588_v14, %v5948_v11  ;;  %v3022_v26 = vrot.slane %v3021_v4, 2  ;;  %3970 = vmatpush.bf16.msrb.mxu2 %v5821_v54  ;;  %v6648_v49 = vld [vmem:[#allocation13 + $0x3cc] sm:$0xf0] }
 0x332   :  { %v2973_v18 = vsub.f32 1.0, %v2972_v31  ;;  %v6620_v31 = vld [vmem:[#allocation13 + $0x2ec] sm:$0xf0] }
 0x333   :  { %v6077_v10 = vor.u32 %v6620_v31, %v6076_v16  ;;  %v3054_v45 = vrot.slane %v3053_v7, 2  ;;  %3983 = vmatpush.bf16.msrb.mxu3 %v5949_v19  ;;  %v3023_v52 = vadd.f32 %v3022_v26, %v3021_v4  ;;  %v6644_v4 = vld [vmem:[#allocation13 + $0x3ac] sm:$0xf0] }
 0x334   :  { %v2974_v23 = vmul.f32 %v6710_v60, %v2973_v18  ;;  %v6576_v31 = vld [vmem:[#allocation13 + $0x18c] sm:$0xf0] }
 0x335   :  { %3996 = vmatpush.bf16.msra.mxu0 %v6077_v10 }
 0x336   :  { %v2975_v30 = vadd.f32 %v6710_v60, %v2974_v23  ;;  %v6204_v23 = vld [vmem:[#allocation13 + $0x3e0] sm:$0xf] }
 0x337   :  { %v6712_v34 = vpop.eup %6711  ;;  %v6205_v12 = vor.u32 %v6652_v46, %v6204_v23  ;;  %v6608_v23 = vld [vmem:[#allocation13 + $0x28c] sm:$0xf0]  ;;  %v6156_v46 = vld [vmem:[#allocation13 + $0x380] sm:$0xf] }
 0x338   :  { %v2979_v43 = vsel %vm2978_vm4, %v6710_v60, %v2975_v30  ;;  %v2954_v21 = vadd.f32 1.0, %v6712_v34 }
 0x339   :  { %v2984_v32 = vsel %vm2981_vm5, %v2983_v38, %v2979_v43  ;;  %v6552_v43 = vld [vmem:[#allocation13 + $0xcc] sm:$0xf0]  ;;  %4009 = vmatpush.bf16.msra.mxu1 %v6205_v12 }
 0x33a   :  { %v8239_v41 = vmul.f32 %v2984_v32, %v2833_v58  ;;  %6713 = vrcp.f32 %v2954_v21  ;;  %v2995_v13 = vand.u32 2147483647, %v2954_v21  ;;  %v2997_v58 = vand.u32 2147483648, %v2954_v21  ;;  %v6584_v32 = vld [vmem:[#allocation13 + $0x1cc] sm:$0xf0] }
 0x33b   :  { %vm2991_vm8 = vweird.f32 %v2954_v21 }
 0x33c   :  { %v3049_v47 = vmul.f32 %v8239_v41, %v8239_v41  ;;  %v3026_v50 = vrot.slane %v8239_v41, 4  ;;  %vm2996_vm10 = vcmp.eq.f32.partialorder %v2995_v13, 8.507059e+37  ;;  %v2998_v9 = vor.u32 1.1754944e-38, %v2997_v58  ;;  %v6580_v13 = vld [vmem:[#allocation13 + $0x1ac] sm:$0xf0] }
 0x33d   :  { %v6044_v58 = vld [vmem:[#allocation13 + $0x2a0] sm:$0xf] }
 0x33e   :  { %v3058_v55 = vrot.slane %v3049_v47, 4  ;;  %v3027_v27 = vadd.f32 %v3026_v50, %v8239_v41 }
 0x340   :  { %v6714_v20 = vpop.eup %6713  ;;  %v3059_v25 = vadd.f32 %v3058_v55, %v3049_v47  ;;  %v3028_v59 = vrot.slane %v3027_v27, 2 }
 0x341   :  { %v2923_v35 = vpop.f32.mrf.mxu0  ;;  %v2936_v36 = vpop.f32.mrf.mxu1  ;;  %v2987_v22 = vmul.f32 %v6714_v20, %v2954_v21  ;;  %vm2992_vm7 = vweird.f32 %v6714_v20  ;;  %v6060_v21 = vld [vmem:[#allocation13 + $0x2c0] sm:$0xf] }
 0x342   :  { %v3060_v8 = vrot.slane %v3059_v25, 2  ;;  %vm2993_vm9 = vmor %vm2991_vm8, %vm2992_vm7  ;;  %v3029_v33 = vadd.f32 %v3028_v59, %v3027_v27 }
 0x343   :  { %v2988_v15 = vsub.f32 1.0, %v2987_v22 }
 0x344   :  { %v3030_v30 = vrot.slane %v3029_v33, 1  ;;  %v3061_v44 = vadd.f32 %v3060_v8, %v3059_v25  ;;  %v5916_v25 = vld [vmem:[#allocation13 + $0x1a0] sm:$0xf] }
 0x345   :  { %v2989_v42 = vmul.f32 %v6714_v20, %v2988_v15  ;;  %v3055_v15 = vadd.f32 %v3054_v45, %v3053_v7 }
 0x346   :  { %v2897_v61 = vpop.f32.mrf.mxu2  ;;  %v2910_v48 = vpop.f32.mrf.mxu3 }
 0x347   :  { %v2898_v24 = vadd.f32 %v2897_v61, %v2087_v53  ;;  %v2990_v51 = vadd.f32 %v6714_v20, %v2989_v42  ;;  %v6188_v53 = vld [vmem:[#allocation13 + $0x3c0] sm:$0xf]  ;;  %v3062_v42 = vrot.slane %v3061_v44, 1  ;;  %v3056_v37 = vrot.slane %v3055_v15, 1 }
 0x348   :  { %v6189_v22 = vor.u32 %v6648_v49, %v6188_v53  ;;  %v5788_v61 = vld [vmem:[#allocation13 + $0xa0] sm:$0xf] }
 0x349   :  { %v2911_v0 = vadd.f32 %v2910_v48, %v2898_v24  ;;  %v2925_v1 = vpop.f32.mrf.mxu0  ;;  %v2938_v3 = vpop.f32.mrf.mxu1  ;;  %v2994_v62 = vsel %vm2993_vm9, %v6714_v20, %v2990_v51  ;;  %v6548_v48 = vld [vmem:[#allocation13 + $0xac] sm:$0xf0]  ;;  %v3031_v24 = vadd.f32 %v3030_v30, %v3029_v33 }
 0x34a   :  { %v2999_v63 = vsel %vm2996_vm10, %v2998_v9, %v2994_v62  ;;  %v5789_v57 = vor.u32 %v6548_v48, %v5788_v61  ;;  %4010 = vmatpush.bf16.msra.mxu1 %v6189_v22  ;;  %v5917_v3 = vor.u32 %v6580_v13, %v5916_v25  ;;  %v6612_v51 = vld [vmem:[#allocation13 + $0x2ac] sm:$0xf0]  ;;  %v6172_v9 = vld [vmem:[#allocation13 + $0x3a0] sm:$0xf] }
 0x34b   :  { %v2924_v28 = vadd.f32 %v2923_v35, %v2911_v0  ;;  %v8256_v17 = vmul.f32 %v2999_v63, %v8230_v39  ;;  %v5804_v39 = vld [vmem:[#allocation13 + $0xc0] sm:$0xf]  ;;  %v5933_v35 = vor.u32 %v6584_v32, %v5932_v2  ;;  %v6045_v8 = vor.u32 %v6612_v51, %v6044_v58  ;;  %v6640_v30 = vld [vmem:[#allocation13 + $0x38c] sm:$0xf0] }
 0x34c   :  { %v5805_v34 = vor.u32 %v6552_v43, %v5804_v39  ;;  %v5772_v62 = vld [vmem:[#allocation13 + $0x80] sm:$0xf]  ;;  %v8265_v11 = vmul.f32 0.125, %v3031_v24  ;;  %v6173_v16 = vor.u32 %v6644_v4, %v6172_v9  ;;  %v6540_v39 = vld [vmem:[#allocation13 + $0x6c] sm:$0xf0]  ;;  %v3057_v32 = vadd.f32 %v3056_v37, %v3055_v15 }
 0x34d   :  { %v8253_v5 = vadd.f32 %v2936_v36, %v2924_v28  ;;  %v3032_v38 = vrot.slane %v8256_v17, 4  ;;  %v3050_v40 = vmul.f32 %v8256_v17, %v8256_v17  ;;  %v6616_v36 = vld [vmem:[#allocation13 + $0x2cc] sm:$0xf0]  ;;  %3984 = vmatpush.bf16.msrb.mxu3 %v5933_v35  ;;  %v5900_v63 = vld [vmem:[#allocation13 + $0x180] sm:$0xf]  ;;  %v5773_v19 = vor.u32 %v6544_v56, %v5772_v62 }
 0x34e   :  { %v2899_v6 = vpop.f32.mrf.mxu2  ;;  %v2912_v60 = vpop.f32.mrf.mxu3  ;;  %3971 = vmatpush.bf16.msrb.mxu2 %v5805_v34  ;;  %v6061_v20 = vor.u32 %v6616_v36, %v6060_v21  ;;  %v5901_v10 = vor.u32 %v6576_v31, %v5900_v63  ;;  %4011 = vmatpush.bf16.msra.mxu1 %v6173_v16  ;;  %v5884_v43 = vld [vmem:[#allocation13 + $0x160] sm:$0xf]  ;;  %v6572_v34 = vld [vmem:[#allocation13 + $0x16c] sm:$0xf0] }
 0x34f   :  { %v5705_v18 = vmul.f32 -1.442695, %v8253_v5  ;;  %v3033_v47 = vadd.f32 %v3032_v38, %v8256_v17  ;;  %v3064_v50 = vrot.slane %v3050_v40, 4  ;;  %v3024_v6 = vrot.slane %v3023_v52, 1  ;;  %v5756_v38 = vld [vmem:[#allocation13 + $0x60] sm:$0xf] }
 0x350   :  { %3997 = vmatpush.bf16.msra.mxu0 %v6061_v20  ;;  %v3063_v60 = vadd.f32 %v3062_v42, %v3061_v44  ;;  %v3081_v44 = vmul.f32 %v8265_v11, %v8265_v11  ;;  %v6604_v35 = vld [vmem:[#allocation13 + $0x26c] sm:$0xf0]  ;;  %v5885_v49 = vor.u32 %v6572_v34, %v5884_v43  ;;  %v5868_v24 = vld [vmem:[#allocation13 + $0x140] sm:$0xf] }
 0x351   :  { %6715 = vpow2.f32 %v5705_v18  ;;  %v3034_v55 = vrot.slane %v3033_v47, 2  ;;  %v3065_v27 = vadd.f32 %v3064_v50, %v3050_v40  ;;  %3985 = vmatpush.bf16.msrb.mxu3 %v5917_v3  ;;  %v6028_v18 = vld [vmem:[#allocation13 + $0x280] sm:$0xf]  ;;  %v6157_v40 = vor.u32 %v6640_v30, %v6156_v46  ;;  %v6636_v22 = vld [vmem:[#allocation13 + $0x36c] sm:$0xf0] }
 0x352   :  { %3972 = vmatpush.bf16.msrb.mxu2 %v5789_v57  ;;  %v6029_v12 = vor.u32 %v6608_v23, %v6028_v18  ;;  %v3025_v2 = vadd.f32 %v3024_v6, %v3023_v52  ;;  %v3077_v21 = vmul.f32 0.125, %v3063_v60  ;;  %v6012_v50 = vld [vmem:[#allocation13 + $0x260] sm:$0xf]  ;;  %v6536_v15 = vld [vmem:[#allocation13 + $0x4c] sm:$0xf0] }
 0x353   :  { %v3035_v0 = vadd.f32 %v3034_v55, %v3033_v47  ;;  %v3066_v1 = vrot.slane %v3065_v27, 2  ;;  %v5757_v47 = vor.u32 %v6540_v39, %v5756_v38  ;;  %v6013_v55 = vor.u32 %v6604_v35, %v6012_v50  ;;  %4012 = vmatpush.bf16.msra.mxu1 %v6157_v40  ;;  %v5740_v52 = vld [vmem:[#allocation13 + $0x40] sm:$0xf]  ;;  %v6568_v25 = vld [vmem:[#allocation13 + $0x14c] sm:$0xf0] }
 0x354   :  { %3998 = vmatpush.bf16.msra.mxu0 %v6045_v8  ;;  %v5741_v57 = vor.u32 %v6536_v15, %v5740_v52  ;;  %v5996_v13 = vld [vmem:[#allocation13 + $0x240] sm:$0xf]  ;;  %v8278_v58 = vmul.f32 0.125, %v3025_v2  ;;  %v6600_v3 = vld [vmem:[#allocation13 + $0x24c] sm:$0xf0]  ;;  %v3085_v51 = vsub.f32 %v3077_v21, %v3081_v44 }
 0x355   :  { %v3036_v7 = vrot.slane %v3035_v0, 1  ;;  %v3067_v33 = vadd.f32 %v3066_v1, %v3065_v27  ;;  %3986 = vmatpush.bf16.msrb.mxu3 %v5901_v10  ;;  %v6140_v27 = vld [vmem:[#allocation13 + $0x360] sm:$0xf]  ;;  %v5869_v1 = vor.u32 %v6568_v25, %v5868_v24  ;;  %v5997_v4 = vor.u32 %v6600_v3, %v5996_v13  ;;  %v6532_v63 = vld [vmem:[#allocation13 + $0x2c] sm:$0xf0] }
 0x356   :  { %3973 = vmatpush.bf16.msrb.mxu2 %v5773_v19  ;;  %v6141_v48 = vor.u32 %v6636_v22, %v6140_v27  ;;  %v5724_v37 = vld [vmem:[#allocation13 + $0x20] sm:$0xf]  ;;  %v6596_v16 = vld [vmem:[#allocation13 + $0x22c] sm:$0xf0]  ;;  %v8288_v46 = vadd.f32 1e-05, %v3085_v51  ;;  %v3080_v44 = vmul.f32 %v8278_v58, %v8278_v58 }
 0x357   :  { %v6716_v59 = vpop.eup %6715  ;;  %v3037_v54 = vadd.f32 %v3036_v7, %v3035_v0  ;;  %v3068_v14 = vrot.slane %v3067_v33, 1  ;;  %v6124_v7 = vld [vmem:[#allocation13 + $0x340] sm:$0xf]  ;;  %v5725_v60 = vor.u32 %v6532_v63, %v5724_v37  ;;  %v6628_v23 = vld [vmem:[#allocation13 + $0x32c] sm:$0xf0] }
 0x358   :  { %v8263_v28 = vadd.f32 1.0, %v6716_v59  ;;  %3999 = vmatpush.bf16.msra.mxu0 %v6029_v12  ;;  %v8280_v59 = vmul.f32 0.125, %v3057_v32  ;;  %4013 = vmatpush.bf16.msra.mxu1 %v6141_v48  ;;  %v5852_v6 = vld [vmem:[#allocation13 + $0x120] sm:$0xf]  ;;  %v6560_v2 = vld [vmem:[#allocation13 + $0x10c] sm:$0xf0]  ;;  %vm3109_vm3 = vweird.f32 %v8288_v46 }
 0x359   :  { %v8268_v26 = vmul.f32 0.125, %v3037_v54  ;;  %v3069_v45 = vadd.f32 %v3068_v14, %v3067_v33  ;;  %3987 = vmatpush.bf16.msrb.mxu3 %v5885_v49  ;;  %v6632_v33 = vld [vmem:[#allocation13 + $0x34c] sm:$0xf0]  ;;  %v5980_v14 = vld [vmem:[#allocation13 + $0x220] sm:$0xf] }
 0x35a   :  { %6717 = vrcp.f32 %v8263_v28  ;;  %3974 = vmatpush.bf16.msrb.mxu2 %v5757_v47  ;;  %v3010_v0 = vand.u32 2147483647, %v8263_v28  ;;  %v3012_v9 = vand.u32 2147483648, %v8263_v28  ;;  %v6125_v56 = vor.u32 %v6632_v33, %v6124_v7  ;;  %v6564_v54 = vld [vmem:[#allocation13 + $0x12c] sm:$0xf0] }
 0x35b   :  { %v3078_v53 = vmul.f32 0.125, %v3069_v45  ;;  %v3082_v20 = vmul.f32 %v8268_v26, %v8268_v26  ;;  %vm3006_vm15 = vweird.f32 %v8263_v28  ;;  %v5853_v18 = vor.u32 %v6564_v54, %v5852_v6  ;;  %v6108_v10 = vld [vmem:[#allocation13 + $0x320] sm:$0xf]  ;;  %v6592_v21 = vld [vmem:[#allocation13 + $0x20c] sm:$0xf0] }
 0x35c   :  { %4000 = vmatpush.bf16.msra.mxu0 %v6013_v55  ;;  %v5981_v19 = vor.u32 %v6596_v16, %v5980_v14  ;;  %vm3011_vm1 = vcmp.eq.f32.partialorder %v3010_v0, 8.507059e+37  ;;  %v3013_v12 = vor.u32 1.1754944e-38, %v3012_v9  ;;  %4014 = vmatpush.bf16.msra.mxu1 %v6125_v56  ;;  %v6109_v38 = vor.u32 %v6628_v23, %v6108_v10  ;;  %v5708_v40 = vld [vmem:[#allocation13] sm:$0xf]  ;;  %v5822_v55 = vld [vmem:[#allocation13 + $0xf0] sm:$0xf0] }
 0x35d   :  { %v3086_v8 = vsub.f32 %v3078_v53, %v3082_v20  ;;  %3988 = vmatpush.bf16.msrb.mxu3 %v5869_v1  ;;  %v5836_v39 = vld [vmem:[#allocation13 + $0x100] sm:$0xf]  ;;  %v6624_v53 = vld [vmem:[#allocation13 + $0x30c] sm:$0xf0]  ;;  %v6554_v20 = vld [vmem:[#allocation13 + $0xe4] sm:$0xf]  ;;  %v3084_v0 = vsub.f32 %v8280_v59, %v3080_v44  ;;  %6719 = vrsqrt.f32 %v8288_v46 }
 0x35e   :  { %3975 = vmatpush.bf16.msrb.mxu2 %v5741_v57  ;;  %v5964_v32 = vld [vmem:[#allocation13 + $0x200] sm:$0xf]  ;;  %v5837_v50 = vor.u32 %v6560_v2, %v5836_v39  ;;  %v6586_v27 = vld [vmem:[#allocation13 + $0x1e4] sm:$0xf]  ;;  %v5950_v22 = vld [vmem:[#allocation13 + $0x1f0] sm:$0xf0]  ;;  %v5825_v52 = vor.u32 %v6554_v20, %v5822_v55 }
 0x35f   :  { %v8290_v45 = vadd.f32 1e-05, %v3086_v8  ;;  %v5965_v35 = vor.u32 %v6592_v21, %v5964_v32  ;;  %v5953_v15 = vor.u32 %v6586_v27, %v5950_v22  ;;  %v6078_v24 = vld [vmem:[#allocation13 + $0x2f0] sm:$0xf0]  ;;  %v6650_v25 = vld [vmem:[#allocation13 + $0x3e4] sm:$0xf] }
 0x360   :  { %v8272_v36 = vpop.eup %6717  ;;  %4001 = vmatpush.bf16.msra.mxu0 %v5997_v4  ;;  %4015 = vmatpush.bf16.msra.mxu1 %v6109_v38  ;;  %v6206_v13 = vld [vmem:[#allocation13 + $0x3f0] sm:$0xf0]  ;;  %v6582_v9 = vld [vmem:[#allocation13 + $0x1c4] sm:$0xf]  ;;  %v8307_v14 = vadd.f32 1e-05, %v3084_v0 }
 0x361   :  { %v3002_v61 = vmul.f32 %v8272_v36, %v8263_v28  ;;  %vm3007_vm12 = vweird.f32 %v8272_v36  ;;  %v6528_v28 = vld [vmem:[#allocation13 + $0xc] sm:$0xf0]  ;;  %3989 = vmatpush.bf16.msrb.mxu3 %v5853_v18  ;;  %v6209_v51 = vor.u32 %v6650_v25, %v6206_v13  ;;  %v5806_v8 = vld [vmem:[#allocation13 + $0xd0] sm:$0xf0]  ;;  %v6614_v33 = vld [vmem:[#allocation13 + $0x2c4] sm:$0xf]  ;;  %6721 = vrsqrt.f32 %v8290_v45 }
 0x362   :  { %vm3008_vm0 = vmor %vm3006_vm15, %vm3007_vm12  ;;  %3976 = vmatpush.bf16.msrb.mxu2 %v5725_v60  ;;  %v5709_v34 = vor.u32 %v6528_v28, %v5708_v40  ;;  %v5934_v7 = vld [vmem:[#allocation13 + $0x1d0] sm:$0xf0]  ;;  %v6646_v63 = vld [vmem:[#allocation13 + $0x3c4] sm:$0xf]  ;;  %6723 = vrsqrt.f32 %v8307_v14  ;;  %vm3119_vm6 = vweird.f32 %v8290_v45  ;;  %vm3099_vm15 = vweird.f32 %v8307_v14 }
 0x363   :  { %v3003_v42 = vsub.f32 1.0, %v3002_v61  ;;  %v5937_v37 = vor.u32 %v6582_v9, %v5934_v7  ;;  %v6062_v59 = vld [vmem:[#allocation13 + $0x2d0] sm:$0xf0]  ;;  %v6546_v54 = vld [vmem:[#allocation13 + $0xa4] sm:$0xf] }
 0x364   :  { %4002 = vmatpush.bf16.msra.mxu0 %v5981_v19  ;;  %v6065_v6 = vor.u32 %v6614_v33, %v6062_v59  ;;  %v6190_v60 = vld [vmem:[#allocation13 + $0x3d0] sm:$0xf0]  ;;  %v6578_v10 = vld [vmem:[#allocation13 + $0x1a4] sm:$0xf] }
 0x365   :  { %v3004_v62 = vmul.f32 %v8272_v36, %v3003_v42  ;;  %3990 = vmatpush.bf16.msrb.mxu3 %v5837_v50  ;;  %v6550_v42 = vld [vmem:[#allocation13 + $0xc4] sm:$0xf]  ;;  %v6193_v18 = vor.u32 %v6646_v63, %v6190_v60  ;;  %v5790_v19 = vld [vmem:[#allocation13 + $0xb0] sm:$0xf0] }
 0x366   :  { %3977 = vmatpush.bf16.msrb.mxu2 %v5709_v34  ;;  %v5809_v4 = vor.u32 %v6550_v42, %v5806_v8  ;;  %v5793_v23 = vor.u32 %v6546_v54, %v5790_v19  ;;  %v6046_v38 = vld [vmem:[#allocation13 + $0x2b0] sm:$0xf0]  ;;  %v6642_v34 = vld [vmem:[#allocation13 + $0x3a4] sm:$0xf] }
 0x367   :  { %v3005_v31 = vadd.f32 %v8272_v36, %v3004_v62  ;;  %v6174_v2 = vld [vmem:[#allocation13 + $0x3b0] sm:$0xf0]  ;;  %v6542_v21 = vld [vmem:[#allocation13 + $0x84] sm:$0xf] }
 0x368   :  { %4003 = vmatpush.bf16.msra.mxu0 %v5965_v35  ;;  %v6177_v32 = vor.u32 %v6642_v34, %v6174_v2  ;;  %v5774_v44 = vld [vmem:[#allocation13 + $0x90] sm:$0xf0]  ;;  %v6574_v50 = vld [vmem:[#allocation13 + $0x184] sm:$0xf]  ;;  %v8310_v35 = vpop.eup %6719 }
 0x369   :  { %v3009_v30 = vsel %vm3008_vm0, %v8272_v36, %v3005_v31  ;;  %v6092_v36 = vld [vmem:[#allocation13 + $0x300] sm:$0xf]  ;;  %4035 = vmatpush.bf16.msra.mxu3 %v5953_v15  ;;  %v5777_v20 = vor.u32 %v6542_v21, %v5774_v44  ;;  %v6606_v55 = vld [vmem:[#allocation13 + $0x284] sm:$0xf]  ;;  %v8312_v27 = vpop.eup %6721  ;;  %v5758_v25 = vld [vmem:[#allocation13 + $0x70] sm:$0xf0]  ;;  %v3104_v13 = vmul.f32 %v8310_v35, %v8288_v46  ;;  %vm3110_vm2 = vweird.f32 %v8310_v35 }
 0x36a   :  { %v3014_v43 = vsel %vm3011_vm1, %v3013_v12, %v3009_v30  ;;  %v6093_v49 = vor.u32 %v6624_v53, %v6092_v36  ;;  %4022 = vmatpush.bf16.msra.mxu2 %v5825_v52  ;;  %v5918_v12 = vld [vmem:[#allocation13 + $0x1b0] sm:$0xf0]  ;;  %v6610_v30 = vld [vmem:[#allocation13 + $0x2a4] sm:$0xf]  ;;  %vm3120_vm4 = vweird.f32 %v8312_v27  ;;  %vm3111_vm5 = vmor %vm3109_vm3, %vm3110_vm2 }
 0x36b   :  { %v8298_v47 = vmul.f32 %v3014_v43, %v8253_v5  ;;  %v6618_v5 = vld [vmem:[#allocation13 + $0x2e4] sm:$0xf]  ;;  %v5921_v39 = vor.u32 %v6578_v10, %v5918_v12  ;;  %v6049_v43 = vor.u32 %v6610_v30, %v6046_v38  ;;  %v6158_v52 = vld [vmem:[#allocation13 + $0x390] sm:$0xf0]  ;;  %vm3121_vm8 = vmor %vm3119_vm6, %vm3120_vm4 }
 0x36c   :  { %v6081_v57 = vor.u32 %v6618_v5, %v6078_v24  ;;  %4016 = vmatpush.bf16.msra.mxu1 %v6093_v49  ;;  %v5902_v49 = vld [vmem:[#allocation13 + $0x190] sm:$0xf0]  ;;  %v6570_v0 = vld [vmem:[#allocation13 + $0x164] sm:$0xf] }
 0x36d   :  { %v3038_v61 = vrot.slane %v8298_v47, 4  ;;  %v3051_v48 = vmul.f32 %v8298_v47, %v8298_v47  ;;  %4036 = vmatpush.bf16.msra.mxu3 %v5937_v37  ;;  %v5905_v22 = vor.u32 %v6574_v50, %v5902_v49  ;;  %v6014_v7 = vld [vmem:[#allocation13 + $0x270] sm:$0xf0]  ;;  %v6634_v33 = vld [vmem:[#allocation13 + $0x364] sm:$0xf] }
 0x36e   :  { %4048 = vmatpush.bf16.msrb.mxu0 %v6081_v57  ;;  %4023 = vmatpush.bf16.msra.mxu2 %v5809_v4  ;;  %v6538_v57 = vld [vmem:[#allocation13 + $0x64] sm:$0xf]  ;;  %v6142_v59 = vld [vmem:[#allocation13 + $0x370] sm:$0xf0] }
 0x36f   :  { %v3039_v1 = vadd.f32 %v3038_v61, %v8298_v47  ;;  %v3070_v3 = vrot.slane %v3051_v48, 4  ;;  %v6030_v61 = vld [vmem:[#allocation13 + $0x290] sm:$0xf0]  ;;  %v5761_v4 = vor.u32 %v6538_v57, %v5758_v25  ;;  %v6534_v63 = vld [vmem:[#allocation13 + $0x44] sm:$0xf]  ;;  %v6145_v19 = vor.u32 %v6634_v33, %v6142_v59 }
 0x370   :  { %4061 = vmatpush.bf16.msrb.mxu1 %v6209_v51  ;;  %v6033_v24 = vor.u32 %v6606_v55, %v6030_v61  ;;  %v3114_v51 = vmul.f32 %v8312_v27, %v8290_v45  ;;  %v6566_v54 = vld [vmem:[#allocation13 + $0x144] sm:$0xf]  ;;  %v5998_v10 = vld [vmem:[#allocation13 + $0x250] sm:$0xf0] }
 0x371   :  { %v3040_v62 = vrot.slane %v3039_v1, 2  ;;  %v3071_v56 = vadd.f32 %v3070_v3, %v3051_v48  ;;  %4037 = vmatpush.bf16.msra.mxu3 %v5921_v39  ;;  %v6638_v48 = vld [vmem:[#allocation13 + $0x384] sm:$0xf]  ;;  %v5726_v2 = vld [vmem:[#allocation13 + $0x30] sm:$0xf0] }
 0x372   :  { %4049 = vmatpush.bf16.msrb.mxu0 %v6065_v6  ;;  %4024 = vmatpush.bf16.msra.mxu2 %v5793_v23  ;;  %v6161_v42 = vor.u32 %v6638_v48, %v6158_v52  ;;  %v6602_v3 = vld [vmem:[#allocation13 + $0x264] sm:$0xf]  ;;  %v5742_v6 = vld [vmem:[#allocation13 + $0x50] sm:$0xf0]  ;;  %v3115_v23 = vmul.f32 %v8312_v27, %v3114_v51 }
 0x373   :  { %v3041_v16 = vadd.f32 %v3040_v62, %v3039_v1  ;;  %v3072_v31 = vrot.slane %v3071_v56, 2  ;;  %v5886_v1 = vld [vmem:[#allocation13 + $0x170] sm:$0xf0]  ;;  %v8322_v62 = vpop.eup %6723  ;;  %v6017_v37 = vor.u32 %v6602_v3, %v6014_v7  ;;  %v5745_v30 = vor.u32 %v6534_v63, %v5742_v6  ;;  %v6630_v38 = vld [vmem:[#allocation13 + $0x344] sm:$0xf] }
 0x374   :  { %4062 = vmatpush.bf16.msrb.mxu1 %v6193_v18  ;;  %v3105_v18 = vmul.f32 %v8310_v35, %v3104_v13  ;;  %v6530_v34 = vld [vmem:[#allocation13 + $0x24] sm:$0xf]  ;;  %v5854_v21 = vld [vmem:[#allocation13 + $0x130] sm:$0xf0]  ;;  %vm3100_vm9 = vweird.f32 %v8322_v62 }
 0x375   :  { %v3042_v40 = vrot.slane %v3041_v16, 1  ;;  %v3073_v28 = vadd.f32 %v3072_v31, %v3071_v56  ;;  %4038 = vmatpush.bf16.msra.mxu3 %v5905_v22  ;;  %v5889_v56 = vor.u32 %v6570_v0, %v5886_v1  ;;  %v6598_v31 = vld [vmem:[#allocation13 + $0x244] sm:$0xf]  ;;  %v5982_v50 = vld [vmem:[#allocation13 + $0x230] sm:$0xf0]  ;;  %v5729_v49 = vor.u32 %v6530_v34, %v5726_v2  ;;  %vm3101_vm0 = vmor %vm3099_vm15, %vm3100_vm9 }
 0x376   :  { %4050 = vmatpush.bf16.msrb.mxu0 %v6049_v43  ;;  %4025 = vmatpush.bf16.msra.mxu2 %v5777_v20  ;;  %v6001_v43 = vor.u32 %v6598_v31, %v5998_v10  ;;  %v6594_v44 = vld [vmem:[#allocation13 + $0x224] sm:$0xf]  ;;  %v3116_v20 = vmul.f32 0.5, %v3115_v23  ;;  %v6110_v22 = vld [vmem:[#allocation13 + $0x330] sm:$0xf0] }
 0x377   :  { %v3043_v36 = vadd.f32 %v3042_v40, %v3041_v16  ;;  %v3074_v53 = vrot.slane %v3073_v28, 1  ;;  %v5870_v16 = vld [vmem:[#allocation13 + $0x150] sm:$0xf0]  ;;  %v6626_v55 = vld [vmem:[#allocation13 + $0x324] sm:$0xf]  ;;  %v5985_v52 = vor.u32 %v6594_v44, %v5982_v50 }
 0x378   :  { %4063 = vmatpush.bf16.msrb.mxu1 %v6177_v32  ;;  %v6126_v40 = vld [vmem:[#allocation13 + $0x350] sm:$0xf0]  ;;  %v5873_v39 = vor.u32 %v6566_v54, %v5870_v16  ;;  %v6562_v32 = vld [vmem:[#allocation13 + $0x124] sm:$0xf]  ;;  %v6113_v1 = vor.u32 %v6626_v55, %v6110_v22  ;;  %v3117_v7 = vsub.f32 1.5, %v3116_v20 }
 0x379   :  { %v8314_v15 = vmul.f32 0.125, %v3043_v36  ;;  %v3075_v5 = vadd.f32 %v3074_v53, %v3073_v28  ;;  %v3094_v28 = vmul.f32 %v8322_v62, %v8307_v14  ;;  %4039 = vmatpush.bf16.msra.mxu3 %v5889_v56  ;;  %v3106_v36 = vmul.f32 0.5, %v3105_v18  ;;  %v6558_v57 = vld [vmem:[#allocation13 + $0x104] sm:$0xf]  ;;  %v5838_v25 = vld [vmem:[#allocation13 + $0x110] sm:$0xf0] }
 0x37a   :  { %4051 = vmatpush.bf16.msrb.mxu0 %v6033_v24  ;;  %4026 = vmatpush.bf16.msra.mxu2 %v5761_v4  ;;  %v6129_v53 = vor.u32 %v6630_v38, %v6126_v40  ;;  %v5857_v48 = vor.u32 %v6562_v32, %v5854_v21  ;;  %v5710_v24 = vld [vmem:[#allocation13 + $0x10] sm:$0xf0]  ;;  %v6590_v13 = vld [vmem:[#allocation13 + $0x204] sm:$0xf]  ;;  %v5841_v56 = vor.u32 %v6558_v57, %v5838_v25  ;;  %v3145_v20 = vld [vmem:[#allocation11] sm:$0xf] }
 0x37b   :  { %v3079_v8 = vmul.f32 0.125, %v3075_v5  ;;  %v3083_v9 = vmul.f32 %v8314_v15, %v8314_v15  ;;  %v3095_v61 = vmul.f32 %v8322_v62, %v3094_v28  ;;  %v6526_v5 = vld [vmem:[#allocation13 + $0x4] sm:$0xf]  ;;  %v3107_v0 = vsub.f32 1.5, %v3106_v36 }
 0x37c   :  { %4064 = vmatpush.bf16.msrb.mxu1 %v6161_v42  ;;  %v5966_v42 = vld [vmem:[#allocation13 + $0x210] sm:$0xf0]  ;;  %v5713_v51 = vor.u32 %v6526_v5, %v5710_v24  ;;  %v3118_v16 = vmul.f32 %v8312_v27, %v3117_v7  ;;  %v5956_v5 = vld [vmem:[#allocation13 + $0x1e8] sm:$0xf] }
 0x37d   :  { %v3087_v60 = vsub.f32 %v3079_v8, %v3083_v9  ;;  %4040 = vmatpush.bf16.msra.mxu3 %v5873_v39  ;;  %v6622_v8 = vld [vmem:[#allocation13 + $0x304] sm:$0xf]  ;;  %v6094_v9 = vld [vmem:[#allocation13 + $0x310] sm:$0xf0]  ;;  %v3096_v4 = vmul.f32 0.5, %v3095_v61  ;;  %v3108_v6 = vmul.f32 %v8310_v35, %v3107_v0 }
 0x37e   :  { %4052 = vmatpush.bf16.msrb.mxu0 %v6017_v37  ;;  %4027 = vmatpush.bf16.msra.mxu2 %v5745_v30  ;;  %v5969_v37 = vor.u32 %v6590_v13, %v5966_v42  ;;  %v6097_v63 = vor.u32 %v6622_v8, %v6094_v9  ;;  %v6589_v42 = vld [vmem:[#allocation13 + $0x1f4] sm:$0xf0]  ;;  %v6084_v0 = vld [vmem:[#allocation13 + $0x2e8] sm:$0xf] }
 0x37f   :  { %v8326_v12 = vadd.f32 1e-05, %v3087_v60  ;;  %v3097_v54 = vsub.f32 1.5, %v3096_v4  ;;  %v3112_v18 = vsel %vm3111_vm5, %v8310_v35, %v3108_v6  ;;  %v3088_v35 = vld [vmem:[%s8468_s11] sm:$0xf]  ;;  %s7051_s11 = smov [#allocation19]  }
 0x380   :  { %4065 = vmatpush.bf16.msrb.mxu1 %v6145_v19  ;;  %v3122_v19 = vsel %vm3121_vm8, %v8312_v27, %v3118_v16  ;;  %v3137_v23 = vrot.slane %v3112_v18, 7  ;;  %v6212_v9 = vld [vmem:[#allocation13 + $0x3e8] sm:$0xf]  ;;  %s4463_s9 = sshll.u32 %s7051_s11, 4  ;;  %s4464_s9 = int_to_ptr.vmem [resolvable:$true] %s4463_s9 }
 0x381   :  { %6725 = vrsqrt.f32 %v8326_v12  ;;  %4041 = vmatpush.bf16.msra.mxu3 %v5857_v48  ;;  %vm3129_vm10 = vweird.f32 %v8326_v12  ;;  %v3098_v46 = vmul.f32 %v8322_v62, %v3097_v54  ;;  %v3138_v30 = vrot.slane %v3122_v19, 6  ;;  %v6585_v54 = vld [vmem:[#allocation13 + $0x1d4] sm:$0xf0]  ;;  %v6068_v16 = vld [vmem:[#allocation13 + $0x2c8] sm:$0xf] }
 0x382   :  { %4053 = vmatpush.bf16.msrb.mxu0 %v6001_v43  ;;  %4028 = vmatpush.bf16.msra.mxu2 %v5729_v49  ;;  %v6196_v18 = vld [vmem:[#allocation13 + $0x3c8] sm:$0xf] }
 0x383   :  { %v3102_v40 = vsel %vm3101_vm0, %v8322_v62, %v3098_v46  ;;  %v6649_v46 = vld [vmem:[#allocation13 + $0x3d4] sm:$0xf0] }
 0x384   :  { %4066 = vmatpush.bf16.msrb.mxu1 %v6129_v53 }
 0x385   :  { %4042 = vmatpush.bf16.msra.mxu3 %v5841_v56 }
 0x386   :  { %4054 = vmatpush.bf16.msrb.mxu0 %v5985_v52  ;;  %4029 = vmatpush.bf16.msra.mxu2 %v5713_v51  ;;  %v6557_v52 = vld [vmem:[#allocation13 + $0xf4] sm:$0xf0] }
 0x387   :  { %v6726_v3 = vpop.eup %6725 }
 0x388   :  { %v3124_v33 = vmul.f32 %v6726_v3, %v8326_v12  ;;  %4067 = vmatpush.bf16.msrb.mxu1 %v6113_v1  ;;  %vm3130_vm7 = vweird.f32 %v6726_v3  ;;  %v3140_v12 = vsel %vm1173_vm11, %v3102_v40, %v3137_v23  ;;  %v5796_v23 = vld [vmem:[#allocation13 + $0xa8] sm:$0xf]  ;;  %v6581_v40 = vld [vmem:[#allocation13 + $0x1b4] sm:$0xf0] }
 0x389   :  { %vm3131_vm12 = vmor %vm3129_vm10, %vm3130_vm7 }
 0x38a   :  { %v3125_v59 = vmul.f32 %v6726_v3, %v3124_v33  ;;  %4055 = vmatpush.bf16.msrb.mxu0 %v5969_v37  ;;  %v5812_v37 = vld [vmem:[#allocation13 + $0xc8] sm:$0xf] }
 0x38c   :  { %v3126_v60 = vmul.f32 0.5, %v3125_v59  ;;  %4068 = vmatpush.bf16.msrb.mxu1 %v6097_v63  ;;  %v6553_v59 = vld [vmem:[#allocation13 + $0xd4] sm:$0xf0] }
 0x38d   :  { %v5813_v19 = vor.u32 %v6553_v59, %v5812_v37  ;;  %v5732_v37 = vld [vmem:[#allocation13 + $0x28] sm:$0xf]  ;;  %v6533_v59 = vld [vmem:[#allocation13 + $0x34] sm:$0xf0] }
 0x38e   :  { %v3127_v31 = vsub.f32 1.5, %v3126_v60  ;;  %v5940_v60 = vld [vmem:[#allocation13 + $0x1c8] sm:$0xf] }
 0x390   :  { %v3128_v10 = vmul.f32 %v6726_v3, %v3127_v31  ;;  %v6617_v31 = vld [vmem:[#allocation13 + $0x2d4] sm:$0xf0] }
 0x392   :  { %v3132_v45 = vsel %vm3131_vm12, %v6726_v3, %v3128_v10  ;;  %v5941_v10 = vor.u32 %v6585_v54, %v5940_v60  ;;  %v5860_v60 = vld [vmem:[#allocation13 + $0x128] sm:$0xf]  ;;  %v6565_v54 = vld [vmem:[#allocation13 + $0x134] sm:$0xf0] }
 0x393   :  { %v3139_v38 = vrot.slane %v3132_v45, 5  ;;  %v6549_v45 = vld [vmem:[#allocation13 + $0xb4] sm:$0xf0] }
 0x395   :  { %v3141_v28 = vsel %vm1901_vm13, %v3138_v30, %v3139_v38  ;;  %v6069_v30 = vor.u32 %v6617_v31, %v6068_v16  ;;  %v6197_v38 = vor.u32 %v6649_v46, %v6196_v18  ;;  %v5988_v16 = vld [vmem:[#allocation13 + $0x228] sm:$0xf]  ;;  %v6597_v31 = vld [vmem:[#allocation13 + $0x234] sm:$0xf0] }
 0x396   :  { %v3142_v27 = vsel %vm1903_vm14, %v3140_v12, %v3141_v28  ;;  %v6052_v12 = vld [vmem:[#allocation13 + $0x2a8] sm:$0xf]  ;;  %v6613_v28 = vld [vmem:[#allocation13 + $0x2b4] sm:$0xf0] }
 0x397   :  { %v3144_v39 = vmul.f32 %v3142_v27, %v3088_v35  ;;  %v5924_v35 = vld [vmem:[#allocation13 + $0x1a8] sm:$0xf]  ;;  %v6629_v46 = vld [vmem:[#allocation13 + $0x334] sm:$0xf0] }
 0x398   :  { %v6180_v27 = vld [vmem:[#allocation13 + $0x3a8] sm:$0xf] }
 0x399   :  { %v3147_v43 = vperm.slane %v3144_v39, 0  ;;  %v3148_v34 = vperm.slane %v3144_v39, 1  ;;  %v3149_v14 = vperm.slane %v3144_v39, 2  ;;  %v3150_v2 = vperm.slane %v3144_v39, 3  ;;  %v6645_v39 = vld [vmem:[#allocation13 + $0x3b4] sm:$0xf0] }
 0x39a   :  { %v6116_v18 = vld [vmem:[#allocation13 + $0x328] sm:$0xf] }
 0x39b   :  { %v3156_v32 = vmul.f32 %v3148_v34, %v8265_v11  ;;  %v3157_v21 = vmul.f32 %v3149_v14, %v8268_v26  ;;  %v3158_v44 = vmul.f32 %v3150_v2, %v8314_v15  ;;  %v3155_v50 = vmul.f32 %v3147_v43, %v8278_v58  ;;  %v5828_v58 = vld [vmem:[#allocation13 + $0xe8] sm:$0xf] }
 0x39c   :  { %v3171_v48 = vmul.f32 %v3147_v43, %v8242_v29  ;;  %v3172_v11 = vmul.f32 %v3148_v34, %v8239_v41  ;;  %v3173_v26 = vmul.f32 %v3149_v14, %v8256_v17  ;;  %v3174_v15 = vmul.f32 %v3150_v2, %v8298_v47  ;;  %v6621_v29 = vld [vmem:[#allocation13 + $0x2f4] sm:$0xf0]  ;;  %v5780_v14 = vld [vmem:[#allocation13 + $0x88] sm:$0xf] }
 0x39d   :  { %v3163_v62 = vrot.slane %v3156_v32, 7  ;;  %v3164_v36 = vrot.slane %v3157_v21, 6  ;;  %v3165_v53 = vrot.slane %v3158_v44, 5  ;;  %v6653_v41 = vld [vmem:[#allocation13 + $0x3f4] sm:$0xf0]  ;;  %v5829_v4 = vor.u32 %v6557_v52, %v5828_v58 }
 0x39e   :  { %v5957_v17 = vor.u32 %v6589_v42, %v5956_v5  ;;  %v6085_v63 = vor.u32 %v6621_v29, %v6084_v0  ;;  %v6213_v6 = vor.u32 %v6653_v41, %v6212_v9  ;;  %v5797_v43 = vor.u32 %v6549_v45, %v5796_v23  ;;  %v6545_v2 = vld [vmem:[#allocation13 + $0x94] sm:$0xf0]  ;;  %v5908_v44 = vld [vmem:[#allocation13 + $0x188] sm:$0xf] }
 0x39f   :  { %v3166_v49 = vsel %vm1173_vm11, %v3155_v50, %v3163_v62  ;;  %v3167_v55 = vsel %vm1901_vm13, %v3164_v36, %v3165_v53  ;;  %v5925_v34 = vor.u32 %v6581_v40, %v5924_v35  ;;  %v6053_v32 = vor.u32 %v6613_v28, %v6052_v12  ;;  %v6577_v50 = vld [vmem:[#allocation13 + $0x194] sm:$0xf0]  ;;  %v6036_v62 = vld [vmem:[#allocation13 + $0x288] sm:$0xf] }
 0x3a0   :  { %v3168_v22 = vsel %vm1903_vm14, %v3166_v49, %v3167_v55  ;;  %v6181_v21 = vor.u32 %v6645_v39, %v6180_v27  ;;  %v6609_v36 = vld [vmem:[#allocation13 + $0x294] sm:$0xf0]  ;;  %v6164_v53 = vld [vmem:[#allocation13 + $0x388] sm:$0xf]  ;;  %v5781_v49 = vor.u32 %v6545_v2, %v5780_v14  ;;  %v5909_v55 = vor.u32 %v6577_v50, %v5908_v44  ;;  %v6587_v14 = vld [vmem:[#allocation13 + $0x1ec] sm:$0xf] }
 0x3a1   :  { %v3170_v61 = vsub.f32 %v3145_v20, %v3168_v22  ;;  %v6641_v20 = vld [vmem:[#allocation13 + $0x394] sm:$0xf0]  ;;  %v5764_v22 = vld [vmem:[#allocation13 + $0x68] sm:$0xf]  ;;  %v5861_v23 = vor.u32 %v6565_v54, %v5860_v60  ;;  %v5989_v35 = vor.u32 %v6597_v31, %v5988_v16  ;;  %v6117_v40 = vor.u32 %v6629_v46, %v6116_v18  ;;  %v5958_v2 = vld [vmem:[#allocation13 + $0x1f8] sm:$0xf0] }
 0x3a2   :  { %v6020_v58 = vld [vmem:[#allocation13 + $0x268] sm:$0xf]  ;;  %v6605_v52 = vld [vmem:[#allocation13 + $0x274] sm:$0xf0]  ;;  %v6086_v50 = vld [vmem:[#allocation13 + $0x2f8] sm:$0xf0] }
 0x3a3   :  { %v3176_v24 = vperm.slane %v3170_v61, 0  ;;  %v3177_v57 = vperm.slane %v3170_v61, 1  ;;  %v3178_v25 = vperm.slane %v3170_v61, 2  ;;  %v3179_v13 = vperm.slane %v3170_v61, 3  ;;  %v6541_v61 = vld [vmem:[#allocation13 + $0x74] sm:$0xf0] }
 0x3a4   :  { %v6148_v5 = vld [vmem:[#allocation13 + $0x368] sm:$0xf]  ;;  %v6537_v42 = vld [vmem:[#allocation13 + $0x54] sm:$0xf0]  ;;  %v6021_v0 = vor.u32 %v6605_v52, %v6020_v58  ;;  %v6615_v58 = vld [vmem:[#allocation13 + $0x2cc] sm:$0xf] }
 0x3a5   :  { %v3184_v1 = vadd.f32 %v3176_v24, %v3171_v48  ;;  %v3185_v3 = vadd.f32 %v3177_v57, %v3172_v11  ;;  %v3186_v51 = vadd.f32 %v3178_v25, %v3173_v26  ;;  %v3187_v8 = vadd.f32 %v3179_v13, %v3174_v15  ;;  %v5892_v26 = vld [vmem:[#allocation13 + $0x168] sm:$0xf]  ;;  %v6573_v15 = vld [vmem:[#allocation13 + $0x174] sm:$0xf0]  ;;  %v6070_v52 = vld [vmem:[#allocation13 + $0x2d8] sm:$0xf0] }
 0x3a6   :  { %v6037_v48 = vor.u32 %v6609_v36, %v6036_v62  ;;  %v6165_v11 = vor.u32 %v6641_v20, %v6164_v53  ;;  %v6637_v24 = vld [vmem:[#allocation13 + $0x374] sm:$0xf0]  ;;  %v5765_v57 = vor.u32 %v6541_v61, %v5764_v22  ;;  %v5893_v25 = vor.u32 %v6573_v15, %v5892_v26  ;;  %v5748_v13 = vld [vmem:[#allocation13 + $0x48] sm:$0xf]  ;;  %v6651_v62 = vld [vmem:[#allocation13 + $0x3ec] sm:$0xf] }
 0x3a7   :  { %v8363_v7 = vpack.c.bf16 %v3184_v1, %v3184_v1  ;;  %v8365_v47 = vpack.c.bf16 %v3185_v3, %v3185_v3  ;;  %v8367_v33 = vpack.c.bf16 %v3186_v51, %v3186_v51  ;;  %v8369_v56 = vpack.c.bf16 %v3187_v8, %v3187_v8  ;;  %v5876_v3 = vld [vmem:[#allocation13 + $0x148] sm:$0xf]  ;;  %v6569_v51 = vld [vmem:[#allocation13 + $0x154] sm:$0xf0]  ;;  %v6214_v36 = vld [vmem:[#allocation13 + $0x3f8] sm:$0xf0] }
 0x3a8   :  { %v6149_v1 = vor.u32 %v6637_v24, %v6148_v5  ;;  %v6004_v8 = vld [vmem:[#allocation13 + $0x248] sm:$0xf]  ;;  %v6601_v29 = vld [vmem:[#allocation13 + $0x254] sm:$0xf0]  ;;  %v6551_v22 = vld [vmem:[#allocation13 + $0xcc] sm:$0xf] }
 0x3a9   :  { %3978 = vmatmul.bf16.vlgmr.msrb.gmra.mxu2 %v8363_v7  ;;  %3991 = vmatmul.bf16.vlgmr.msrb.gmra.mxu3 %v8365_v47  ;;  %v6132_v9 = vld [vmem:[#allocation13 + $0x348] sm:$0xf]  ;;  %v6633_v41 = vld [vmem:[#allocation13 + $0x354] sm:$0xf0]  ;;  %v5814_v61 = vld [vmem:[#allocation13 + $0xd8] sm:$0xf0] }
 0x3aa   :  { %4004 = vmatmul.bf16.vlgmr.msra.gmra.mxu0 %v8367_v33  ;;  %4017 = vmatmul.bf16.vlgmr.msra.gmra.mxu1 %v8369_v56  ;;  %v6529_v45 = vld [vmem:[#allocation13 + $0x14] sm:$0xf0]  ;;  %v5972_v12 = vld [vmem:[#allocation13 + $0x208] sm:$0xf]  ;;  %v6583_v26 = vld [vmem:[#allocation13 + $0x1cc] sm:$0xf] }
 0x3ab   :  { %4074 = vmatpush.bf16.msrb.mxu2 %v5829_v4  ;;  %4087 = vmatpush.bf16.msrb.mxu3 %v5957_v17  ;;  %v5749_v4 = vor.u32 %v6537_v42, %v5748_v13  ;;  %v5877_v17 = vor.u32 %v6569_v51, %v5876_v3  ;;  %v6593_v28 = vld [vmem:[#allocation13 + $0x214] sm:$0xf0]  ;;  %v6100_v27 = vld [vmem:[#allocation13 + $0x308] sm:$0xf]  ;;  %v5942_v15 = vld [vmem:[#allocation13 + $0x1d8] sm:$0xf0] }
 0x3ac   :  { %4100 = vmatpush.bf16.msra.mxu0 %v6085_v63  ;;  %4113 = vmatpush.bf16.msra.mxu1 %v6213_v6  ;;  %v6005_v63 = vor.u32 %v6601_v29, %v6004_v8  ;;  %v6133_v6 = vor.u32 %v6633_v41, %v6132_v9  ;;  %v6625_v39 = vld [vmem:[#allocation13 + $0x314] sm:$0xf0]  ;;  %v5973_v53 = vor.u32 %v6593_v28, %v5972_v12  ;;  %v6647_v5 = vld [vmem:[#allocation13 + $0x3cc] sm:$0xf]  ;;  %v6198_v24 = vld [vmem:[#allocation13 + $0x3d8] sm:$0xf0] }
 0x3ad   :  { %v6101_v20 = vor.u32 %v6625_v39, %v6100_v27  ;;  %v6547_v13 = vld [vmem:[#allocation13 + $0xac] sm:$0xf]  ;;  %v5798_v42 = vld [vmem:[#allocation13 + $0xb8] sm:$0xf0] }
 0x3ae   :  { %v6579_v3 = vld [vmem:[#allocation13 + $0x1ac] sm:$0xf]  ;;  %v5926_v51 = vld [vmem:[#allocation13 + $0x1b8] sm:$0xf0] }
 0x3af   :  { %4075 = vmatpush.bf16.msrb.mxu2 %v5813_v19  ;;  %4088 = vmatpush.bf16.msrb.mxu3 %v5941_v10  ;;  %v5716_v19 = vld [vmem:[#allocation13 + $0x8] sm:$0xf]  ;;  %v5733_v10 = vor.u32 %v6533_v59, %v5732_v37  ;;  %v6611_v8 = vld [vmem:[#allocation13 + $0x2ac] sm:$0xf]  ;;  %v6054_v29 = vld [vmem:[#allocation13 + $0x2b8] sm:$0xf0] }
 0x3b0   :  { %4101 = vmatpush.bf16.msra.mxu0 %v6069_v30  ;;  %4114 = vmatpush.bf16.msra.mxu1 %v6197_v38  ;;  %v5844_v30 = vld [vmem:[#allocation13 + $0x108] sm:$0xf]  ;;  %v6561_v38 = vld [vmem:[#allocation13 + $0x114] sm:$0xf0]  ;;  %v6643_v9 = vld [vmem:[#allocation13 + $0x3ac] sm:$0xf] }
 0x3b1   :  { %v5845_v44 = vor.u32 %v6561_v38, %v5844_v30  ;;  %v6182_v41 = vld [vmem:[#allocation13 + $0x3b8] sm:$0xf0]  ;;  %v6543_v37 = vld [vmem:[#allocation13 + $0x8c] sm:$0xf] }
 0x3b2   :  { %v5782_v59 = vld [vmem:[#allocation13 + $0x98] sm:$0xf0]  ;;  %v6575_v60 = vld [vmem:[#allocation13 + $0x18c] sm:$0xf] }
 0x3b3   :  { %4076 = vmatpush.bf16.msrb.mxu2 %v5797_v43  ;;  %4089 = vmatpush.bf16.msrb.mxu3 %v5925_v34  ;;  %v6555_v43 = vld [vmem:[#allocation13 + $0xec] sm:$0xf]  ;;  %v5830_v34 = vld [vmem:[#allocation13 + $0xf8] sm:$0xf0] }
 0x3b4   :  { %4102 = vmatpush.bf16.msra.mxu0 %v6053_v32  ;;  %4115 = vmatpush.bf16.msra.mxu1 %v6181_v21  ;;  %v6619_v32 = vld [vmem:[#allocation13 + $0x2ec] sm:$0xf]  ;;  %v5717_v21 = vor.u32 %v6529_v45, %v5716_v19  ;;  %v5910_v54 = vld [vmem:[#allocation13 + $0x198] sm:$0xf0]  ;;  %v5785_v19 = vor.u32 %v6543_v37, %v5782_v59 }
 0x3b5   :  { %v6607_v16 = vld [vmem:[#allocation13 + $0x28c] sm:$0xf]  ;;  %v6038_v31 = vld [vmem:[#allocation13 + $0x298] sm:$0xf0] }
 0x3b6   :  { %v6639_v18 = vld [vmem:[#allocation13 + $0x38c] sm:$0xf]  ;;  %v6166_v46 = vld [vmem:[#allocation13 + $0x398] sm:$0xf0]  ;;  %v6041_v30 = vor.u32 %v6607_v16, %v6038_v31 }
 0x3b7   :  { %4077 = vmatpush.bf16.msrb.mxu2 %v5781_v49  ;;  %4090 = vmatpush.bf16.msrb.mxu3 %v5909_v55  ;;  %v5833_v49 = vor.u32 %v6555_v43, %v5830_v34  ;;  %v5961_v55 = vor.u32 %v6587_v14, %v5958_v2  ;;  %v5766_v45 = vld [vmem:[#allocation13 + $0x78] sm:$0xf0]  ;;  %v6169_v38 = vor.u32 %v6639_v18, %v6166_v46  ;;  %v6603_v12 = vld [vmem:[#allocation13 + $0x26c] sm:$0xf] }
 0x3b8   :  { %4103 = vmatpush.bf16.msra.mxu0 %v6037_v48  ;;  %4116 = vmatpush.bf16.msra.mxu1 %v6165_v11  ;;  %v6089_v48 = vor.u32 %v6619_v32, %v6086_v50  ;;  %v6217_v11 = vor.u32 %v6651_v62, %v6214_v36  ;;  %v6022_v28 = vld [vmem:[#allocation13 + $0x278] sm:$0xf0]  ;;  %v6635_v27 = vld [vmem:[#allocation13 + $0x36c] sm:$0xf] }
 0x3b9   :  { %4030 = vmatmul.bf16.vlgmr.msra.gmra.mxu2 %v8363_v7  ;;  %4043 = vmatmul.bf16.vlgmr.msra.gmra.mxu3 %v8365_v47  ;;  %v6150_v39 = vld [vmem:[#allocation13 + $0x378] sm:$0xf0]  ;;  %v6535_v14 = vld [vmem:[#allocation13 + $0x4c] sm:$0xf]  ;;  %v6025_v32 = vor.u32 %v6603_v12, %v6022_v28 }
 0x3ba   :  { %4056 = vmatmul.bf16.vlgmr.msrb.gmra.mxu0 %v8367_v33  ;;  %4069 = vmatmul.bf16.vlgmr.msrb.gmra.mxu1 %v8369_v56  ;;  %v5750_v2 = vld [vmem:[#allocation13 + $0x58] sm:$0xf0]  ;;  %v6599_v62 = vld [vmem:[#allocation13 + $0x24c] sm:$0xf] }
 0x3bb   :  { %4078 = vmatpush.bf16.msrb.mxu2 %v5765_v57  ;;  %4091 = vmatpush.bf16.msrb.mxu3 %v5893_v25  ;;  %v5817_v57 = vor.u32 %v6551_v22, %v5814_v61  ;;  %v5945_v25 = vor.u32 %v6583_v26, %v5942_v15  ;;  %v5878_v50 = vld [vmem:[#allocation13 + $0x158] sm:$0xf0]  ;;  %v6531_v22 = vld [vmem:[#allocation13 + $0x2c] sm:$0xf] }
 0x3bc   :  { %4104 = vmatpush.bf16.msra.mxu0 %v6021_v0  ;;  %4117 = vmatpush.bf16.msra.mxu1 %v6149_v1  ;;  %v6073_v0 = vor.u32 %v6615_v58, %v6070_v52  ;;  %v6201_v1 = vor.u32 %v6647_v5, %v6198_v24  ;;  %v6006_v36 = vld [vmem:[#allocation13 + $0x258] sm:$0xf0]  ;;  %v6563_v26 = vld [vmem:[#allocation13 + $0x12c] sm:$0xf] }
 0x3bd   :  { %v5734_v61 = vld [vmem:[#allocation13 + $0x38] sm:$0xf0]  ;;  %v6595_v58 = vld [vmem:[#allocation13 + $0x22c] sm:$0xf] }
 0x3be   :  { %v5862_v15 = vld [vmem:[#allocation13 + $0x138] sm:$0xf0]  ;;  %v6627_v5 = vld [vmem:[#allocation13 + $0x32c] sm:$0xf] }
 0x3bf   :  { %4079 = vmatpush.bf16.msrb.mxu2 %v5749_v4  ;;  %4092 = vmatpush.bf16.msrb.mxu3 %v5877_v17  ;;  %v5801_v4 = vor.u32 %v6547_v13, %v5798_v42  ;;  %v5929_v17 = vor.u32 %v6579_v3, %v5926_v51  ;;  %v5990_v52 = vld [vmem:[#allocation13 + $0x238] sm:$0xf0]  ;;  %v6527_v13 = vld [vmem:[#allocation13 + $0xc] sm:$0xf] }
 0x3c0   :  { %4105 = vmatpush.bf16.msra.mxu0 %v6005_v63  ;;  %4118 = vmatpush.bf16.msra.mxu1 %v6133_v6  ;;  %v6057_v63 = vor.u32 %v6611_v8, %v6054_v29  ;;  %v6185_v6 = vor.u32 %v6643_v9, %v6182_v41  ;;  %v6118_v24 = vld [vmem:[#allocation13 + $0x338] sm:$0xf0]  ;;  %v6559_v3 = vld [vmem:[#allocation13 + $0x10c] sm:$0xf] }
 0x3c1   :  { %v5718_v42 = vld [vmem:[#allocation13 + $0x18] sm:$0xf0]  ;;  %v6591_v8 = vld [vmem:[#allocation13 + $0x20c] sm:$0xf] }
 0x3c2   :  { %v5846_v51 = vld [vmem:[#allocation13 + $0x118] sm:$0xf0]  ;;  %v6623_v9 = vld [vmem:[#allocation13 + $0x30c] sm:$0xf] }
 0x3c3   :  { %4080 = vmatpush.bf16.msrb.mxu2 %v5733_v10  ;;  %4093 = vmatpush.bf16.msrb.mxu3 %v5861_v23  ;;  %v5913_v10 = vor.u32 %v6575_v60, %v5910_v54  ;;  %v6539_v23 = vld [vmem:[#allocation13 + $0x6c] sm:$0xf]  ;;  %v5974_v29 = vld [vmem:[#allocation13 + $0x218] sm:$0xf0] }
 0x3c4   :  { %4106 = vmatpush.bf16.msra.mxu0 %v5989_v35  ;;  %4119 = vmatpush.bf16.msra.mxu1 %v6117_v40  ;;  %v6571_v35 = vld [vmem:[#allocation13 + $0x16c] sm:$0xf]  ;;  %v5894_v40 = vld [vmem:[#allocation13 + $0x178] sm:$0xf0]  ;;  %v5769_v43 = vor.u32 %v6539_v23, %v5766_v45  ;;  %v5977_v37 = vor.u32 %v6591_v8, %v5974_v29 }
 0x3c5   :  { %v5897_v34 = vor.u32 %v6571_v35, %v5894_v40  ;;  %v6102_v41 = vld [vmem:[#allocation13 + $0x318] sm:$0xf0] }
 0x3c6   :  { %v6105_v59 = vor.u32 %v6623_v9, %v6102_v41 }
 0x3c7   :  { %4081 = vmatpush.bf16.msrb.mxu2 %v5717_v21  ;;  %4094 = vmatpush.bf16.msrb.mxu3 %v5845_v44  ;;  %v6153_v21 = vor.u32 %v6635_v27, %v6150_v39  ;;  %v6567_v44 = vld [vmem:[#allocation13 + $0x14c] sm:$0xf] }
 0x3c8   :  { %4107 = vmatpush.bf16.msra.mxu0 %v5973_v53  ;;  %4120 = vmatpush.bf16.msra.mxu1 %v6101_v20  ;;  %v6631_v53 = vld [vmem:[#allocation13 + $0x34c] sm:$0xf]  ;;  %v6134_v20 = vld [vmem:[#allocation13 + $0x358] sm:$0xf0] }
 0x3ca   :  { %4082 = vmatmul.bf16.vlgmr.msrb.gmra.mxu2 %v8363_v7  ;;  %4095 = vmatmul.bf16.vlgmr.msrb.gmra.mxu3 %v8365_v47 }
 0x3cb   :  { %4126 = vmatpush.bf16.msra.mxu2 %v5833_v49  ;;  %4139 = vmatpush.bf16.msra.mxu3 %v5961_v55  ;;  %v5753_v49 = vor.u32 %v6535_v14, %v5750_v2  ;;  %v5881_v55 = vor.u32 %v6567_v44, %v5878_v50 }
 0x3cc   :  { %4152 = vmatpush.bf16.msrb.mxu0 %v6089_v48  ;;  %4165 = vmatpush.bf16.msrb.mxu1 %v6217_v11  ;;  %v6009_v48 = vor.u32 %v6599_v62, %v6006_v36  ;;  %v6137_v11 = vor.u32 %v6631_v53, %v6134_v20 }
 0x3cd   :  { %4108 = vmatmul.bf16.vlgmr.msra.gmra.mxu0 %v8367_v33  ;;  %4121 = vmatmul.bf16.vlgmr.msra.gmra.mxu1 %v8369_v56 }
 0x3cf   :  { %4127 = vmatpush.bf16.msra.mxu2 %v5817_v57  ;;  %4140 = vmatpush.bf16.msra.mxu3 %v5945_v25  ;;  %v5737_v57 = vor.u32 %v6531_v22, %v5734_v61  ;;  %v5865_v25 = vor.u32 %v6563_v26, %v5862_v15 }
 0x3d0   :  { %4153 = vmatpush.bf16.msrb.mxu0 %v6073_v0  ;;  %4166 = vmatpush.bf16.msrb.mxu1 %v6201_v1  ;;  %v5993_v0 = vor.u32 %v6595_v58, %v5990_v52  ;;  %v6121_v1 = vor.u32 %v6627_v5, %v6118_v24 }
 0x3d3   :  { %4128 = vmatpush.bf16.msra.mxu2 %v5801_v4  ;;  %4141 = vmatpush.bf16.msra.mxu3 %v5929_v17  ;;  %v5721_v4 = vor.u32 %v6527_v13, %v5718_v42  ;;  %v5849_v17 = vor.u32 %v6559_v3, %v5846_v51 }
 0x3d4   :  { %4154 = vmatpush.bf16.msrb.mxu0 %v6057_v63  ;;  %4167 = vmatpush.bf16.msrb.mxu1 %v6185_v6  ;;  %v8387_v63 = vld [vmem:[#allocation14] sm:$0xf] }
 0x3d5   :  { %v3322_v54 = vperm.slane %v8387_v63, 0  ;;  %v3324_v36 = vperm.slane %v8387_v63, 2 }
 0x3d7   :  { %4129 = vmatpush.bf16.msra.mxu2 %v5785_v19  ;;  %4142 = vmatpush.bf16.msra.mxu3 %v5913_v10 }
 0x3d8   :  { %4155 = vmatpush.bf16.msrb.mxu0 %v6041_v30  ;;  %4168 = vmatpush.bf16.msrb.mxu1 %v6169_v38 }
 0x3db   :  { %4130 = vmatpush.bf16.msra.mxu2 %v5769_v43  ;;  %4143 = vmatpush.bf16.msra.mxu3 %v5897_v34 }
 0x3dc   :  { %4156 = vmatpush.bf16.msrb.mxu0 %v6025_v32  ;;  %4169 = vmatpush.bf16.msrb.mxu1 %v6153_v21 }
 0x3df   :  { %4131 = vmatpush.bf16.msra.mxu2 %v5753_v49  ;;  %4144 = vmatpush.bf16.msra.mxu3 %v5881_v55 }
 0x3e0   :  { %4157 = vmatpush.bf16.msrb.mxu0 %v6009_v48  ;;  %4170 = vmatpush.bf16.msrb.mxu1 %v6137_v11 }
 0x3e3   :  { %4132 = vmatpush.bf16.msra.mxu2 %v5737_v57  ;;  %4145 = vmatpush.bf16.msra.mxu3 %v5865_v25 }
 0x3e4   :  { %4158 = vmatpush.bf16.msrb.mxu0 %v5993_v0  ;;  %4171 = vmatpush.bf16.msrb.mxu1 %v6121_v1 }
 0x3e7   :  { %4133 = vmatpush.bf16.msra.mxu2 %v5721_v4  ;;  %4146 = vmatpush.bf16.msra.mxu3 %v5849_v17 }
 0x3e8   :  { %4159 = vmatpush.bf16.msrb.mxu0 %v5977_v37  ;;  %4172 = vmatpush.bf16.msrb.mxu1 %v6105_v59 }
 0x3ea   :  { %4134 = vmatmul.bf16.vlgmr.msra.gmra.mxu2 %v8363_v7  ;;  %4147 = vmatmul.bf16.vlgmr.msra.gmra.mxu3 %v8365_v47 }
 0x3eb   :  { %4160 = vmatmul.bf16.vlgmr.msrb.gmra.mxu0 %v8367_v33  ;;  %4173 = vmatmul.bf16.vlgmr.msrb.gmra.mxu1 %v8369_v56  ;;  %v3323_v56 = vperm.slane %v8387_v63, 1 }
 0x427   :  { %v4005_v6 = vpop.f32.mrf.mxu0  ;;  %v4018_v60 = vpop.f32.mrf.mxu1 }
 0x42c   :  { %v3979_v16 = vpop.f32.mrf.mxu2  ;;  %v3992_v31 = vpop.f32.mrf.mxu3 }
 0x42d   :  { %v3980_v18 = vadd.f32 %v3979_v16, %v3322_v54 }
 0x42f   :  { %v3993_v46 = vadd.f32 %v3992_v31, %v3980_v18  ;;  %v4007_v19 = vpop.f32.mrf.mxu0  ;;  %v4020_v10 = vpop.f32.mrf.mxu1  ;;  %v3325_v18 = vperm.slane %v8387_v63, 3 }
 0x431   :  { %v4006_v23 = vadd.f32 %v4005_v6, %v3993_v46 }
 0x433   :  { %v8390_v7 = vadd.f32 %v4018_v60, %v4006_v23 }
 0x434   :  { %v3981_v47 = vpop.f32.mrf.mxu2  ;;  %v3994_v45 = vpop.f32.mrf.mxu3 }
 0x435   :  { %v6218_v12 = vmul.f32 -1.442695, %v8390_v7 }
 0x437   :  { %v4057_v33 = vpop.f32.mrf.mxu0  ;;  %v4070_v30 = vpop.f32.mrf.mxu1  ;;  %6727 = vpow2.f32 %v6218_v12 }
 0x43c   :  { %v4031_v38 = vpop.f32.mrf.mxu2  ;;  %v4044_v35 = vpop.f32.mrf.mxu3 }
 0x43d   :  { %v4032_v40 = vadd.f32 %v4031_v38, %v3323_v56  ;;  %v6728_v21 = vpop.eup %6727 }
 0x43e   :  { %v4190_v62 = vadd.f32 1.0, %v6728_v21 }
 0x43f   :  { %v4045_v28 = vadd.f32 %v4044_v35, %v4032_v40  ;;  %v4059_v27 = vpop.f32.mrf.mxu0  ;;  %v4072_v39 = vpop.f32.mrf.mxu1 }
 0x440   :  { %v4205_v59 = vand.u32 2147483648, %v4190_v62  ;;  %vm4199_vm6 = vweird.f32 %v4190_v62  ;;  %v4203_v16 = vand.u32 2147483647, %v4190_v62 }
 0x441   :  { %v4058_v43 = vadd.f32 %v4057_v33, %v4045_v28 }
 0x442   :  { %v4206_v23 = vor.u32 1.1754944e-38, %v4205_v59  ;;  %vm4204_vm8 = vcmp.eq.f32.partialorder %v4203_v16, 8.507059e+37 }
 0x443   :  { %v4071_v34 = vadd.f32 %v4070_v30, %v4058_v43 }
 0x444   :  { %v4033_v14 = vpop.f32.mrf.mxu2  ;;  %v4046_v2 = vpop.f32.mrf.mxu3 }
 0x445   :  { %v6219_v32 = vmul.f32 -1.442695, %v4071_v34 }
 0x447   :  { %6729 = vpow2.f32 %v6219_v32 }
 0x448   :  { %6731 = vrcp.f32 %v4190_v62 }
 0x44a   :  { %v4109_v44 = vpop.f32.mrf.mxu0  ;;  %v4122_v50 = vpop.f32.mrf.mxu1 }
 0x44d   :  { %v6730_v53 = vpop.eup %6729  ;;  %v4083_v49 = vpop.f32.mrf.mxu2 }
 0x44e   :  { %v4191_v20 = vadd.f32 1.0, %v6730_v53  ;;  %v4096_v55 = vpop.f32.mrf.mxu3  ;;  %v4084_v22 = vadd.f32 %v4083_v49, %v3324_v36  ;;  %v6732_v15 = vpop.eup %6731 }
 0x44f   :  { %v4195_v13 = vmul.f32 %v6732_v15, %v4190_v62  ;;  %vm4200_vm4 = vweird.f32 %v6732_v15 }
 0x450   :  { %6733 = vrcp.f32 %v4191_v20  ;;  %v4097_v61 = vadd.f32 %v4096_v55, %v4084_v22  ;;  %v4220_v8 = vand.u32 2147483648, %v4191_v20  ;;  %vm4214_vm2 = vweird.f32 %v4191_v20  ;;  %vm4201_vm7 = vmor %vm4199_vm6, %vm4200_vm4 }
 0x451   :  { %v4196_v1 = vsub.f32 1.0, %v4195_v13  ;;  %v4218_v41 = vand.u32 2147483647, %v4191_v20 }
 0x452   :  { %v4111_v48 = vpop.f32.mrf.mxu0  ;;  %v4124_v11 = vpop.f32.mrf.mxu1  ;;  %v4110_v26 = vadd.f32 %v4109_v44, %v4097_v61  ;;  %v4221_v17 = vor.u32 1.1754944e-38, %v4220_v8 }
 0x453   :  { %v4197_v9 = vmul.f32 %v6732_v15, %v4196_v1  ;;  %vm4219_vm5 = vcmp.eq.f32.partialorder %v4218_v41, 8.507059e+37 }
 0x454   :  { %v8395_v58 = vadd.f32 %v4122_v50, %v4110_v26 }
 0x455   :  { %v4085_v5 = vpop.f32.mrf.mxu2  ;;  %v4198_v37 = vadd.f32 %v6732_v15, %v4197_v9 }
 0x456   :  { %v6734_v52 = vpop.eup %6733  ;;  %v4098_v24 = vpop.f32.mrf.mxu3  ;;  %v6220_v25 = vmul.f32 -1.442695, %v8395_v58 }
 0x457   :  { %v4210_v57 = vmul.f32 %v6734_v52, %v4191_v20  ;;  %vm4215_vm1 = vweird.f32 %v6734_v52  ;;  %v4202_v46 = vsel %vm4201_vm7, %v6732_v15, %v4198_v37 }
 0x458   :  { %6735 = vpow2.f32 %v6220_v25  ;;  %vm4216_vm3 = vmor %vm4214_vm2, %vm4215_vm1  ;;  %v4207_v30 = vsel %vm4204_vm8, %v4206_v23, %v4202_v46 }
 0x459   :  { %v4211_v42 = vsub.f32 1.0, %v4210_v57  ;;  %v8405_v43 = vmul.f32 %v4207_v30, %v8390_v7 }
 0x45b   :  { %v4212_v0 = vmul.f32 %v6734_v52, %v4211_v42  ;;  %v4258_v36 = vrot.slane %v8405_v43, 4  ;;  %v4286_v53 = vmul.f32 %v8405_v43, %v8405_v43 }
 0x45d   :  { %v4213_v51 = vadd.f32 %v6734_v52, %v4212_v0  ;;  %v4259_v26 = vadd.f32 %v4258_v36, %v8405_v43  ;;  %v4290_v15 = vrot.slane %v4286_v53, 4 }
 0x45e   :  { %v6736_v3 = vpop.eup %6735 }
 0x45f   :  { %v4192_v29 = vadd.f32 1.0, %v6736_v3  ;;  %v4217_v4 = vsel %vm4216_vm3, %v6734_v52, %v4213_v51  ;;  %v4291_v13 = vadd.f32 %v4290_v15, %v4286_v53  ;;  %v4260_v42 = vrot.slane %v4259_v26, 2 }
 0x460   :  { %v4222_v6 = vsel %vm4219_vm5, %v4221_v17, %v4217_v4 }
 0x461   :  { %6737 = vrcp.f32 %v4192_v29  ;;  %v8399_v19 = vmul.f32 %v4222_v6, %v4071_v34  ;;  %v4235_v56 = vand.u32 2147483648, %v4192_v29  ;;  %v4233_v12 = vand.u32 2147483647, %v4192_v29 }
 0x462   :  { %vm4229_vm10 = vweird.f32 %v4192_v29  ;;  %v4292_v9 = vrot.slane %v4291_v13, 2  ;;  %v4261_v41 = vadd.f32 %v4260_v42, %v4259_v26 }
 0x463   :  { %v4287_v35 = vmul.f32 %v8399_v19, %v8399_v19  ;;  %v4264_v63 = vrot.slane %v8399_v19, 4  ;;  %v4236_v14 = vor.u32 1.1754944e-38, %v4235_v56  ;;  %vm4234_vm15 = vcmp.eq.f32.partialorder %v4233_v12, 8.507059e+37 }
 0x464   :  { %v4293_v6 = vadd.f32 %v4292_v9, %v4291_v13 }
 0x465   :  { %v4296_v32 = vrot.slane %v4287_v35, 4  ;;  %v4265_v44 = vadd.f32 %v4264_v63, %v8399_v19 }
 0x467   :  { %v6738_v31 = vpop.eup %6737  ;;  %v4297_v22 = vadd.f32 %v4296_v32, %v4287_v35  ;;  %v4266_v11 = vrot.slane %v4265_v44, 2 }
 0x468   :  { %v4161_v60 = vpop.f32.mrf.mxu0  ;;  %v4174_v54 = vpop.f32.mrf.mxu1  ;;  %v4225_v10 = vmul.f32 %v6738_v31, %v4192_v29  ;;  %vm4230_vm9 = vweird.f32 %v6738_v31 }
 0x469   :  { %vm4231_vm12 = vmor %vm4229_vm10, %vm4230_vm9  ;;  %v4267_v25 = vadd.f32 %v4266_v11, %v4265_v44 }
 0x46a   :  { %v4226_v47 = vsub.f32 1.0, %v4225_v10 }
 0x46b   :  { %v4268_v29 = vrot.slane %v4267_v25, 1 }
 0x46c   :  { %v4227_v40 = vmul.f32 %v6738_v31, %v4226_v47  ;;  %v4294_v47 = vrot.slane %v4293_v6, 1 }
 0x46d   :  { %v4135_v45 = vpop.f32.mrf.mxu2  ;;  %v4148_v33 = vpop.f32.mrf.mxu3  ;;  %v4269_v59 = vadd.f32 %v4268_v29, %v4267_v25 }
 0x46e   :  { %v4136_v38 = vadd.f32 %v4135_v45, %v3325_v18  ;;  %v4228_v34 = vadd.f32 %v6738_v31, %v4227_v40 }
 0x46f   :  { %v8422_v10 = vmul.f32 0.125, %v4269_v59 }
 0x470   :  { %v4149_v28 = vadd.f32 %v4148_v33, %v4136_v38  ;;  %v4163_v27 = vpop.f32.mrf.mxu0  ;;  %v4176_v39 = vpop.f32.mrf.mxu1  ;;  %v4232_v21 = vsel %vm4231_vm12, %v6738_v31, %v4228_v34 }
 0x471   :  { %v4237_v50 = vsel %vm4234_vm15, %v4236_v14, %v4232_v21  ;;  %v4319_v12 = vmul.f32 %v8422_v10, %v8422_v10 }
 0x472   :  { %v4162_v2 = vadd.f32 %v4161_v60, %v4149_v28  ;;  %v8414_v7 = vmul.f32 %v4237_v50, %v8395_v58  ;;  %v4298_v58 = vrot.slane %v4297_v22, 2  ;;  %v4262_v60 = vrot.slane %v4261_v41, 1 }
 0x473   :  { %v4295_v28 = vadd.f32 %v4294_v47, %v4293_v6 }
 0x474   :  { %v8408_v62 = vadd.f32 %v4174_v54, %v4162_v2  ;;  %v4270_v61 = vrot.slane %v8414_v7, 4  ;;  %v4288_v48 = vmul.f32 %v8414_v7, %v8414_v7  ;;  %v4299_v51 = vadd.f32 %v4298_v58, %v4297_v22 }
 0x475   :  { %v4137_v20 = vpop.f32.mrf.mxu2  ;;  %v4150_v49 = vpop.f32.mrf.mxu3  ;;  %v4263_v23 = vadd.f32 %v4262_v60, %v4261_v41  ;;  %v4314_v44 = vmul.f32 0.125, %v4295_v28 }
 0x476   :  { %v6221_v55 = vmul.f32 -1.442695, %v8408_v62  ;;  %v4271_v52 = vadd.f32 %v4270_v61, %v8414_v7  ;;  %v4302_v5 = vrot.slane %v4288_v48, 4  ;;  %v4300_v37 = vrot.slane %v4299_v51, 1 }
 0x477   :  { %v8428_v63 = vmul.f32 0.125, %v4263_v23 }
 0x478   :  { %6739 = vpow2.f32 %v6221_v55  ;;  %v4303_v24 = vadd.f32 %v4302_v5, %v4288_v48  ;;  %v4272_v57 = vrot.slane %v4271_v52, 2  ;;  %v4301_v18 = vadd.f32 %v4300_v37, %v4299_v51 }
 0x479   :  { %v4318_v50 = vmul.f32 %v8428_v63, %v8428_v63 }
 0x47a   :  { %v4304_v1 = vrot.slane %v4303_v24, 2  ;;  %v4273_v3 = vadd.f32 %v4272_v57, %v4271_v52  ;;  %v4315_v38 = vmul.f32 0.125, %v4301_v18 }
 0x47b   :  { %v4322_v22 = vsub.f32 %v4314_v44, %v4318_v50 }
 0x47c   :  { %v4305_v4 = vadd.f32 %v4304_v1, %v4303_v24  ;;  %v4274_v17 = vrot.slane %v4273_v3, 1  ;;  %v4323_v32 = vsub.f32 %v4315_v38, %v4319_v12 }
 0x47d   :  { %v4327_v52 = vadd.f32 1e-05, %v4322_v22 }
 0x47e   :  { %v6740_v0 = vpop.eup %6739  ;;  %v4275_v54 = vadd.f32 %v4274_v17, %v4273_v3  ;;  %v4306_v16 = vrot.slane %v4305_v4, 1  ;;  %v4328_v55 = vadd.f32 1e-05, %v4323_v32  ;;  %v4326_v32 = vld [vmem:[#allocation16] sm:$0xf] }
 0x47f   :  { %v4193_v8 = vadd.f32 1.0, %v6740_v0 }
 0x480   :  { %v8424_v33 = vmul.f32 0.125, %v4275_v54  ;;  %v4307_v30 = vadd.f32 %v4306_v16, %v4305_v4  ;;  %vm4347_vm5 = vweird.f32 %v4328_v55 }
 0x481   :  { %6741 = vrcp.f32 %v4193_v8  ;;  %v4250_v56 = vand.u32 2147483648, %v4193_v8  ;;  %v4248_v40 = vand.u32 2147483647, %v4193_v8  ;;  %vm4244_vm1 = vweird.f32 %v4193_v8 }
 0x482   :  { %v4316_v39 = vmul.f32 0.125, %v4307_v30  ;;  %v4320_v34 = vmul.f32 %v8424_v33, %v8424_v33  ;;  %6743 = vrsqrt.f32 %v4328_v55 }
 0x483   :  { %v4251_v14 = vor.u32 1.1754944e-38, %v4250_v56  ;;  %vm4249_vm3 = vcmp.eq.f32.partialorder %v4248_v40, 8.507059e+37 }
 0x484   :  { %v4324_v53 = vsub.f32 %v4316_v39, %v4320_v34 }
 0x486   :  { %v4329_v11 = vadd.f32 1e-05, %v4324_v53 }
 0x487   :  { %v6742_v31 = vpop.eup %6741 }
 0x488   :  { %v4240_v46 = vmul.f32 %v6742_v31, %v4193_v8  ;;  %vm4245_vm0 = vweird.f32 %v6742_v31  ;;  %6745 = vrsqrt.f32 %v4329_v11  ;;  %v6744_v57 = vpop.eup %6743  ;;  %vm4357_vm8 = vweird.f32 %v4329_v11 }
 0x489   :  { %vm4246_vm2 = vmor %vm4244_vm1, %vm4245_vm0  ;;  %6747 = vrsqrt.f32 %v4327_v52  ;;  %v4342_v3 = vmul.f32 %v6744_v57, %v4328_v55  ;;  %vm4348_vm4 = vweird.f32 %v6744_v57  ;;  %vm4337_vm1 = vweird.f32 %v4327_v52 }
 0x48a   :  { %v4241_v45 = vsub.f32 1.0, %v4240_v46  ;;  %vm4349_vm7 = vmor %vm4347_vm5, %vm4348_vm4 }
 0x48b   :  { %v4343_v4 = vmul.f32 %v6744_v57, %v4342_v3 }
 0x48c   :  { %v4242_v35 = vmul.f32 %v6742_v31, %v4241_v45 }
 0x48d   :  { %v4344_v6 = vmul.f32 0.5, %v4343_v4 }
 0x48e   :  { %v4243_v27 = vadd.f32 %v6742_v31, %v4242_v35  ;;  %v6746_v42 = vpop.eup %6745 }
 0x48f   :  { %v6748_v29 = vpop.eup %6747  ;;  %v4352_v9 = vmul.f32 %v6746_v42, %v4329_v11  ;;  %v4345_v16 = vsub.f32 1.5, %v4344_v6  ;;  %vm4358_vm6 = vweird.f32 %v6746_v42 }
 0x490   :  { %v4247_v2 = vsel %vm4246_vm2, %v6742_v31, %v4243_v27  ;;  %v4332_v37 = vmul.f32 %v6748_v29, %v4327_v52  ;;  %vm4338_vm10 = vweird.f32 %v6748_v29  ;;  %vm4359_vm12 = vmor %vm4357_vm8, %vm4358_vm6 }
 0x491   :  { %v4252_v21 = vsel %vm4249_vm3, %v4251_v14, %v4247_v2  ;;  %v4353_v59 = vmul.f32 %v6746_v42, %v4352_v9  ;;  %v4346_v47 = vmul.f32 %v6744_v57, %v4345_v16  ;;  %vm4339_vm2 = vmor %vm4337_vm1, %vm4338_vm10 }
 0x492   :  { %v8435_v36 = vmul.f32 %v4252_v21, %v8408_v62  ;;  %v4333_v60 = vmul.f32 %v6748_v29, %v4332_v37 }
 0x493   :  { %v4354_v54 = vmul.f32 0.5, %v4353_v59  ;;  %v4350_v35 = vsel %vm4349_vm7, %v6744_v57, %v4346_v47 }
 0x494   :  { %v4276_v20 = vrot.slane %v8435_v36, 4  ;;  %v4289_v49 = vmul.f32 %v8435_v36, %v8435_v36  ;;  %v4334_v18 = vmul.f32 0.5, %v4333_v60  ;;  %v4375_v39 = vrot.slane %v4350_v35, 7 }
 0x495   :  { %v4355_v46 = vsub.f32 1.5, %v4354_v54 }
 0x496   :  { %v4277_v61 = vadd.f32 %v4276_v20, %v8435_v36  ;;  %v4308_v48 = vrot.slane %v4289_v49, 4  ;;  %v4335_v30 = vsub.f32 1.5, %v4334_v18 }
 0x497   :  { %v4356_v56 = vmul.f32 %v6746_v42, %v4355_v46 }
 0x498   :  { %v4309_v26 = vadd.f32 %v4308_v48, %v4289_v49  ;;  %v4278_v15 = vrot.slane %v4277_v61, 2  ;;  %v4336_v12 = vmul.f32 %v6748_v29, %v4335_v30 }
 0x499   :  { %v4360_v28 = vsel %vm4359_vm12, %v6746_v42, %v4356_v56 }
 0x49a   :  { %v4310_v5 = vrot.slane %v4309_v26, 2  ;;  %v4279_v58 = vadd.f32 %v4278_v15, %v4277_v61  ;;  %v4376_v14 = vrot.slane %v4360_v28, 6  ;;  %v4340_v21 = vsel %vm4339_vm2, %v6748_v29, %v4336_v12 }
 0x49b   :  { %v4378_v44 = vsel %vm1173_vm11, %v4340_v21, %v4375_v39 }
 0x49c   :  { %v4311_v62 = vadd.f32 %v4310_v5, %v4309_v26  ;;  %v4280_v24 = vrot.slane %v4279_v58, 1 }
 0x49e   :  { %v4281_v25 = vadd.f32 %v4280_v24, %v4279_v58  ;;  %v4312_v13 = vrot.slane %v4311_v62, 1 }
 0x4a0   :  { %v4285_v0 = vmul.f32 0.125, %v4281_v25  ;;  %v4313_v1 = vadd.f32 %v4312_v13, %v4311_v62  ;;  %v4383_v62 = vld [vmem:[#allocation17] sm:$0xf] }
 0x4a2   :  { %v4317_v51 = vmul.f32 0.125, %v4313_v1  ;;  %v4321_v8 = vmul.f32 %v4285_v0, %v4285_v0 }
 0x4a4   :  { %v4325_v41 = vsub.f32 %v4317_v51, %v4321_v8 }
 0x4a6   :  { %v4330_v17 = vadd.f32 1e-05, %v4325_v41 }
 0x4a8   :  { %6749 = vrsqrt.f32 %v4330_v17  ;;  %vm4367_vm15 = vweird.f32 %v4330_v17 }
 0x4ae   :  { %v6750_v31 = vpop.eup %6749 }
 0x4af   :  { %v4362_v23 = vmul.f32 %v6750_v31, %v4330_v17  ;;  %vm4368_vm9 = vweird.f32 %v6750_v31 }
 0x4b0   :  { %vm4369_vm0 = vmor %vm4367_vm15, %vm4368_vm9 }
 0x4b1   :  { %v4363_v45 = vmul.f32 %v6750_v31, %v4362_v23 }
 0x4b3   :  { %v4364_v38 = vmul.f32 0.5, %v4363_v45 }
 0x4b5   :  { %v4365_v40 = vsub.f32 1.5, %v4364_v38 }
 0x4b7   :  { %v4366_v27 = vmul.f32 %v6750_v31, %v4365_v40 }
 0x4b9   :  { %v4370_v34 = vsel %vm4369_vm0, %v6750_v31, %v4366_v27 }
 0x4ba   :  { %v4377_v2 = vrot.slane %v4370_v34, 5 }
 0x4bc   :  { %v4379_v50 = vsel %vm1901_vm13, %v4376_v14, %v4377_v2 }
 0x4bd   :  { %v4380_v53 = vsel %vm1903_vm14, %v4378_v44, %v4379_v50 }
 0x4be   :  { %v4382_v20 = vmul.f32 %v4380_v53, %v4326_v32 }
 0x4c0   :  { %v4385_v49 = vperm.slane %v4382_v20, 0  ;;  %v4386_v55 = vperm.slane %v4382_v20, 1  ;;  %v4387_v22 = vperm.slane %v4382_v20, 2  ;;  %v4388_v61 = vperm.slane %v4382_v20, 3 }
 0x4c2   :  { %v4394_v48 = vmul.f32 %v4386_v55, %v8422_v10  ;;  %v4395_v11 = vmul.f32 %v4387_v22, %v8424_v33  ;;  %v4396_v26 = vmul.f32 %v4388_v61, %v4285_v0  ;;  %v4393_v15 = vmul.f32 %v4385_v49, %v8428_v63 }
 0x4c3   :  { %v4409_v42 = vmul.f32 %v4385_v49, %v8405_v43  ;;  %v4410_v10 = vmul.f32 %v4386_v55, %v8399_v19  ;;  %v4411_v33 = vmul.f32 %v4387_v22, %v8414_v7  ;;  %v4412_v0 = vmul.f32 %v4388_v61, %v8435_v36 }
 0x4c4   :  { %v4401_v52 = vrot.slane %v4394_v48, 7  ;;  %v4402_v5 = vrot.slane %v4395_v11, 6  ;;  %v4403_v58 = vrot.slane %v4396_v26, 5 }
 0x4c6   :  { %v4404_v24 = vsel %vm1173_vm11, %v4393_v15, %v4401_v52  ;;  %v4405_v57 = vsel %vm1901_vm13, %v4402_v5, %v4403_v58 }
 0x4c7   :  { %v4406_v25 = vsel %vm1903_vm14, %v4404_v24, %v4405_v57 }
 0x4c8   :  { %v4408_v13 = vsub.f32 %v4383_v62, %v4406_v25 }
 0x4ca   :  { %v4414_v63 = vperm.slane %v4408_v13, 0  ;;  %v4415_v1 = vperm.slane %v4408_v13, 1  ;;  %v4416_v3 = vperm.slane %v4408_v13, 2  ;;  %v4417_v51 = vperm.slane %v4408_v13, 3 }
 0x4cc   :  { %v4422_v8 = vadd.f32 %v4414_v63, %v4409_v42  ;;  %v4423_v29 = vadd.f32 %v4415_v1, %v4410_v10  ;;  %v4424_v9 = vadd.f32 %v4416_v3, %v4411_v33  ;;  %v4425_v41 = vadd.f32 %v4417_v51, %v4412_v0 }
 0x4ce   :  { %v4426_v4 = vmax.f32 %v4422_v8, %v4423_v29  ;;  %v4427_v17 = vmax.f32 %v4424_v9, %v4425_v41 }
 0x4d0   :  { %v4428_v37 = vmax.f32 %v4426_v4, %v4427_v17 }
 0x4d2   :  { %4429 = vmax.xlane.f32.xlu0 %v4428_v37 }
 0x545   :  { %v4430_v59 = vpop.xlane.xlu0 %4429 }
 0x546   :  { %v4431_v43 = vsub.f32 %v4422_v8, %v4430_v59  ;;  %v4432_v6 = vsub.f32 %v4423_v29, %v4430_v59  ;;  %v4433_v19 = vsub.f32 %v4424_v9, %v4430_v59  ;;  %v4434_v60 = vsub.f32 %v4425_v41, %v4430_v59 }
 0x548   :  { %v4435_v7 = vmul.f32 1.442695, %v4431_v43  ;;  %v4437_v54 = vmul.f32 1.442695, %v4432_v6  ;;  %v4439_v36 = vmul.f32 1.442695, %v4433_v19 }
 0x549   :  { %v4441_v16 = vmul.f32 1.442695, %v4434_v60 }
 0x54a   :  { %6751 = vpow2.f32 %v4435_v7 }
 0x54b   :  { %6753 = vpow2.f32 %v4437_v54 }
 0x54c   :  { %6755 = vpow2.f32 %v4439_v36 }
 0x54d   :  { %6757 = vpow2.f32 %v4441_v16 }
 0x550   :  { %v6752_v31 = vpop.eup %6751 }
 0x551   :  { %v6754_v18 = vpop.eup %6753 }
 0x552   :  { %v4443_v46 = vadd.f32 %v6754_v18, %v6752_v31  ;;  %v6756_v23 = vpop.eup %6755 }
 0x553   :  { %v6758_v45 = vpop.eup %6757 }
 0x554   :  { %v4444_v47 = vadd.f32 %v6756_v23, %v4443_v46 }
 0x556   :  { %v4445_v30 = vadd.f32 %v6758_v45, %v4444_v47 }
 0x558   :  { %4446 = vadd.xlane.f32.xlu0 %v4445_v30 }
 0x5cb   :  { %v4447_v56 = vpop.xlane.xlu0 %4446 }
 0x5cc   :  { %6759 = vlog2.f32 %v4447_v56 }
 0x5d2   :  { %v6760_v38 = vpop.eup %6759 }
 0x5d3   :  { %v4449_v35 = vmul.f32 0.6931472, %v6760_v38 }
 0x5d5   :  { %v4450_v40 = vsub.f32 %v4431_v43, %v4449_v35  ;;  %v4451_v12 = vsub.f32 %v4432_v6, %v4449_v35  ;;  %v4452_v28 = vsub.f32 %v4433_v19, %v4449_v35  ;;  %v4453_v27 = vsub.f32 %v4434_v60, %v4449_v35 }
 0x5d7   :  { %4454 = vst [vmem:[#allocation19] sm:$0xff] %v4450_v40 }
 0x5d8   :  { %4455 = vst [vmem:[#allocation19 + $0x8] sm:$0xff] %v4451_v12 }
 0x5d9   :  { %4456 = vst [vmem:[#allocation19 + $0x10] sm:$0xff] %v4452_v28 }
 0x5da   :  { %4457 = vst [vmem:[#allocation19 + $0x18] sm:$0xff] %v4453_v27 }
 0x5db   :  { %4468 = dma.vmem_to_hbm [thread:$0]  %s4464_s9, 512, %s4466_s18, [#allocation4]  }
 0x5dc   :  { %7037 = dma.done.wait [#allocation4], 512  }
 0x5dd   :  { %7038 = vsyncadd [#allocation4], 4294966784 }
 0x5de   :  { %4473 = vsyncpa [#allocation3], 1 }
 0x5df   :  { %4474 = vsyncpa [#allocation6], 1 }
 0x5e0   :  { %4475 = vsyncpa [#allocation9], 1 }
 0x5e1   :  { %4476 = vsyncpa [#allocation12], 1 }
 0x5e2   :  { %4477 = vsyncpa [#allocation15], 1 }
 0x5e3   :  { %4478 = vsyncpa [#allocation18], 1 }
 0x5e4   :  { %4479 = vsyncpa [#allocation4], 1 }

</bundles_post_ra>
